<compile_context>
chip_gen: v7x
topology: tpu7x:2x2x1
jax: 0.10.0
libtpu: 0.0.40
codegen_flags: <defaults>
</compile_context>

<pallas_src>
import functools
import math

import jax
import jax.numpy as jnp
from jax.experimental import pallas as pl
from jax.experimental.pallas import tpu as pltpu


# ----------------------------------------------------------------------------
# shared helper (used in-kernel and in the pure-JAX reference)
# ----------------------------------------------------------------------------
def _ln(x, g, b, eps=1e-5):
    mu = jnp.mean(x, axis=-1, keepdims=True)
    var = jnp.mean((x - mu) ** 2, axis=-1, keepdims=True)
    return (x - mu) * jax.lax.rsqrt(var + eps) * g + b


# ----------------------------------------------------------------------------
# the single fused encoder kernel
# ----------------------------------------------------------------------------
def clip_encoder_kernel(
    # global params
    xp_ref, wpatch_ref, bpatch_ref, cls_ref, pos_cls_ref, pos_patch_ref,
    lnpre_g_ref, lnpre_b_ref,
    # per-layer params (leading layer dim squeezed away by BlockSpec)
    ln1_g_ref, ln1_b_ref, wqkv_ref, bqkv_ref, wo_ref, bo_ref,
    ln2_g_ref, ln2_b_ref, w1_ref, b1_ref, w2_ref, b2_ref,
    # head params
    lnpost_g_ref, lnpost_b_ref, wproj_ref,
    # output + scratch
    out_ref, acc_ref,
    *, num_heads, n_patches, n_valid):
    l = pl.program_id(1)
    n_layers = pl.num_programs(1)
    Bc, Tp, D = acc_ref.shape
    H = num_heads
    dh = D // H
    N = n_patches
    bf16 = jnp.bfloat16
    f32 = jnp.float32

    # ---- prologue: patch embed + cls + pos + ln_pre (layer 0 only) ----------
    @pl.when(l == 0)
    def _():
        g = lnpre_g_ref[...]
        b = lnpre_b_ref[...]
        xp = xp_ref[...].astype(bf16)                        # (Bc, N, P)
        P = xp.shape[-1]
        emb = jnp.dot(xp.reshape(Bc * N, P), wpatch_ref[...],
                      preferred_element_type=f32) + bpatch_ref[...]
        patches = _ln(emb.reshape(Bc, N, D) + pos_patch_ref[...][None], g, b)
        cls_row = _ln(cls_ref[...] + pos_cls_ref[...], g, b)   # (1, D)
        # aligned 8-row stores: patches at rows 0..N-1, cls at rows N..Tp-1
        # (all padded rows hold the cls value; padded keys are masked below).
        acc_ref[:, 0:N, :] = patches
        acc_ref[:, N:Tp, :] = jnp.broadcast_to(cls_row[None], (Bc, Tp - N, D))

    # ---- transformer block l (pre-LN MHA + QuickGELU MLP) -------------------
    x = acc_ref[...].reshape(Bc * Tp, D)                     # f32
    h = _ln(x, ln1_g_ref[...], ln1_b_ref[...]).astype(bf16)

    # fused, lane-dense QKV projection (q pre-scaled by 1/sqrt(dh) host-side)
    qkv = jnp.dot(h, wqkv_ref[...],
                  preferred_element_type=f32) + bqkv_ref[...]   # (Bc*Tp, 3D)

    def split_heads(base):
        hs = [qkv[:, base + hd * dh: base + (hd + 1) * dh].reshape(Bc, Tp, dh)
              for hd in range(H)]
        return jnp.stack(hs).reshape(H * Bc, Tp, dh).astype(bf16)

    qh = split_heads(0)                                      # (H*Bc, Tp, dh)
    kh = split_heads(D)
    vh = split_heads(2 * D)

    s = jnp.einsum("xqd,xkd->xqk", qh, kh,
                   preferred_element_type=f32)               # (H*Bc, Tp, Tp)
    key_idx = jax.lax.broadcasted_iota(jnp.int32, (1, 1, Tp), 2)
    s = jnp.where(key_idx < n_valid, s, -1e30)               # mask padded keys
    p = jnp.exp(s - jnp.max(s, axis=-1, keepdims=True))
    p = p * pl.reciprocal(jnp.sum(p, axis=-1, keepdims=True), approx=True)

    o = jnp.einsum("xqk,xkd->xqd", p.astype(bf16), vh,
                   preferred_element_type=f32)               # (H*Bc, Tp, dh)

    # re-interleave heads onto the lane axis, then ONE (D,D) output projection
    om = jnp.concatenate([o[hd * Bc:(hd + 1) * Bc] for hd in range(H)],
                         axis=-1)                            # (Bc, Tp, D)
    attn = jnp.dot(om.reshape(Bc * Tp, D).astype(bf16), wo_ref[...],
                   preferred_element_type=f32) + bo_ref[...]
    x = x + attn

    h2 = _ln(x, ln2_g_ref[...], ln2_b_ref[...]).astype(bf16)
    hm = jnp.dot(h2, w1_ref[...], preferred_element_type=f32) + b1_ref[...]
    hm = hm * jax.nn.sigmoid(1.702 * hm)                     # QuickGELU (CLIP)
    x = x + jnp.dot(hm.astype(bf16), w2_ref[...],
                    preferred_element_type=f32) + b2_ref[...]
    acc_ref[...] = x.reshape(Bc, Tp, D)

    # ---- epilogue: ln_post on cls token + projection (last layer only) ------
    @pl.when(l == n_layers - 1)
    def _():
        c_blk = acc_ref[:, N:Tp, :]                          # aligned load
        c = _ln(c_blk[:, 0:1, :].reshape(Bc, D),
                lnpost_g_ref[...], lnpost_b_ref[...])
        out_ref[...] = jnp.dot(c.astype(bf16), wproj_ref[...],
                               preferred_element_type=f32)


# ----------------------------------------------------------------------------
# glue / wrappers
# ----------------------------------------------------------------------------
def patchify(x, p):
    # NCHW -> (B, N, C*p*p); patch vector ordered (C, ph, pw) to match PyTorch
    # conv-weight flattening.  (Layout plumbing done outside the kernel.)
    B, C, H, W = x.shape
    Hp, Wp = H // p, W // p
    x = x.reshape(B, C, Hp, p, Wp, p)
    x = x.transpose(0, 2, 4, 1, 3, 5)
    return x.reshape(B, Hp * Wp, C * p * p)


def encode_image(params, image, *, patch, num_heads, batch_chunk=None):
    bf16 = jnp.bfloat16
    xp = patchify(image, patch)                 # (B, N, P) f32
    B, N, P = xp.shape
    T, D = params["pos"].shape                  # T = N + 1
    E = params["wproj"].shape[1]
    L = len(params["blocks"])
    M = params["blocks"][0]["w1"].shape[1]
    H = num_heads
    dh = D // H
    Tp = ((T + 7) // 8) * 8                     # pad tokens to sublane multiple
    Bc = batch_chunk or B                       # images per grid step
    assert B % Bc == 0, "batch must be divisible by batch_chunk"

    # ---- pack parameters (host-side layout plumbing) ------------------------
    def stack(name):
        return jnp.stack([blk[name] for blk in params["blocks"]])

    # fold 1/sqrt(dh) into the q-portion of the fused QKV weights/bias
    scale = 1.0 / math.sqrt(dh)
    qscale = jnp.concatenate(
        [jnp.full((D,), scale, jnp.float32), jnp.ones((2 * D,), jnp.float32)])
    wqkv = (stack("wqkv") * qscale[None, None, :]).astype(bf16)   # (L, D, 3D)
    bqkv = stack("bqkv") * qscale[None, None, :]                   # (L, 1, 3D)

    wo = stack("wo").astype(bf16)               # (L, D, D)
    bo = stack("bo")
    ln1_g, ln1_b = stack("ln1_g"), stack("ln1_b")
    ln2_g, ln2_b = stack("ln2_g"), stack("ln2_b")
    w1 = stack("w1").astype(bf16)
    b1 = stack("b1")
    w2 = stack("w2").astype(bf16)
    b2 = stack("b2")

    pos_cls = params["pos"][0:1]                # (1, D)
    pos_patch = params["pos"][1:]               # (N, D)
    wpatch = params["wpatch"].astype(bf16)
    wproj = params["wproj"].astype(bf16)

    glob2 = lambda b, l: (0, 0)
    lay3 = lambda b, l: (l, 0, 0)

    in_specs = [
        pl.BlockSpec((Bc, N, P), lambda b, l: (b, 0, 0)),     # xp (batch chunk)
        pl.BlockSpec((P, D), glob2),                          # wpatch
        pl.BlockSpec((1, D), glob2),                          # bpatch
        pl.BlockSpec((1, D), glob2),                          # cls
        pl.BlockSpec((1, D), glob2),                          # pos_cls
        pl.BlockSpec((N, D), glob2),                          # pos_patch
        pl.BlockSpec((1, D), glob2),                          # lnpre_g
        pl.BlockSpec((1, D), glob2),                          # lnpre_b
        pl.BlockSpec((None, 1, D), lay3),                     # ln1_g
        pl.BlockSpec((None, 1, D), lay3),                     # ln1_b
        pl.BlockSpec((None, D, 3 * D), lay3),                 # wqkv (fused)
        pl.BlockSpec((None, 1, 3 * D), lay3),                 # bqkv (fused)
        pl.BlockSpec((None, D, D), lay3),                     # wo
        pl.BlockSpec((None, 1, D), lay3),                     # bo
        pl.BlockSpec((None, 1, D), lay3),                     # ln2_g
        pl.BlockSpec((None, 1, D), lay3),                     # ln2_b
        pl.BlockSpec((None, D, M), lay3),                     # w1
        pl.BlockSpec((None, 1, M), lay3),                     # b1
        pl.BlockSpec((None, M, D), lay3),                     # w2
        pl.BlockSpec((None, 1, D), lay3),                     # b2
        pl.BlockSpec((1, D), glob2),                          # lnpost_g
        pl.BlockSpec((1, D), glob2),                          # lnpost_b
        pl.BlockSpec((D, E), glob2),                          # wproj
    ]

    args = (xp, wpatch, params["bpatch"], params["cls"], pos_cls, pos_patch,
            params["lnpre_g"], params["lnpre_b"],
            ln1_g, ln1_b, wqkv, bqkv, wo, bo, ln2_g, ln2_b,
            w1, b1, w2, b2,
            params["lnpost_g"], params["lnpost_b"], wproj)

    # advisory cost estimate so XLA can schedule around the fused custom call
    flops = int(B * (2 * N * P * D
                     + L * (2 * Tp * D * 3 * D + 4 * H * Tp * Tp * dh
                            + 2 * Tp * D * D + 4 * Tp * D * M)
                     + 2 * D * E))
    transcendentals = int(B * L * (H * Tp * Tp + Tp * M))
    bytes_accessed = int(sum(a.size * a.dtype.itemsize for a in args)
                         + B * E * 4)

    kernel = functools.partial(clip_encoder_kernel,
                               num_heads=num_heads, n_patches=N, n_valid=T)

    out = pl.pallas_call(
        kernel,
        grid=(B // Bc, L),
        in_specs=in_specs,
        out_specs=pl.BlockSpec((Bc, E), lambda b, l: (b, 0)),
        out_shape=jax.ShapeDtypeStruct((B, E), jnp.float32),
        scratch_shapes=[pltpu.VMEM((Bc, Tp, D), jnp.float32)],  # resident acts
        compiler_params=pltpu.CompilerParams(
            dimension_semantics=("parallel", "arbitrary"),
            # size to the real working set at production shapes; generous here
            vmem_limit_bytes=64 * 1024 * 1024),
        cost_estimate=pl.CostEstimate(flops=flops,
                                      transcendentals=transcendentals,
                                      bytes_accessed=bytes_accessed),
    )(*args)
    return out


# ----------------------------------------------------------------------------
# pure-JAX f32 reference for validation
# ----------------------------------------------------------------------------
def encode_image_ref(params, image, *, patch, num_heads):
    xp = patchify(image, patch)
    emb = jnp.einsum("bnp,pd->bnd", xp, params["wpatch"]) + params["bpatch"]
    B = xp.shape[0]
    D = emb.shape[-1]
    cls = jnp.broadcast_to(params["cls"][None], (B, 1, D))
    x = jnp.concatenate([cls, emb], axis=1) + params["pos"][None]
    x = _ln(x, params["lnpre_g"], params["lnpre_b"])
    dh = D // num_heads
    for blk in params["blocks"]:
        h = _ln(x, blk["ln1_g"], blk["ln1_b"])
        qkv = jnp.einsum("btd,de->bte", h, blk["wqkv"]) + blk["bqkv"]
        q, k, v = qkv[..., :D], qkv[..., D:2 * D], qkv[..., 2 * D:]
        outs = []
        for hd in range(num_heads):
            sl = slice(hd * dh, (hd + 1) * dh)
            s = jnp.einsum("bqd,bkd->bqk", q[..., sl], k[..., sl]) / math.sqrt(dh)
            outs.append(jnp.einsum("bqk,bkd->bqd", jax.nn.softmax(s, -1), v[..., sl]))
        ao = jnp.concatenate(outs, axis=-1)
        x = x + jnp.einsum("btd,de->bte", ao, blk["wo"]) + blk["bo"]
        h2 = _ln(x, blk["ln2_g"], blk["ln2_b"])
        hm = jnp.einsum("btd,de->bte", h2, blk["w1"]) + blk["b1"]
        hm = hm * jax.nn.sigmoid(1.702 * hm)
        x = x + jnp.einsum("bte,ed->btd", hm, blk["w2"]) + blk["b2"]
    c = _ln(x[:, 0, :], params["lnpost_g"], params["lnpost_b"])
    return c @ params["wproj"]


# ----------------------------------------------------------------------------
# parameter init (f32 master weights; kernel path casts matmul weights to bf16)
# ----------------------------------------------------------------------------
def init_params(key, *, C, patch, D, num_heads, layers, mlp, E, n_tokens):
    P = C * patch * patch
    ks = jax.random.split(key, 8 + 8 * layers)
    s = 0.02
    kw = iter(ks)
    params = {
        "wpatch": s * jax.random.normal(next(kw), (P, D), jnp.float32),
        "bpatch": jnp.zeros((1, D), jnp.float32),
        "cls": s * jax.random.normal(next(kw), (1, D), jnp.float32),
        "pos": s * jax.random.normal(next(kw), (n_tokens, D), jnp.float32),
        "lnpre_g": jnp.ones((1, D), jnp.float32),
        "lnpre_b": jnp.zeros((1, D), jnp.float32),
        "lnpost_g": jnp.ones((1, D), jnp.float32),
        "lnpost_b": jnp.zeros((1, D), jnp.float32),
        "wproj": s * jax.random.normal(next(kw), (D, E), jnp.float32),
        "blocks": [],
    }
    for _ in range(layers):
        params["blocks"].append({
            "ln1_g": jnp.ones((1, D), jnp.float32),
            "ln1_b": jnp.zeros((1, D), jnp.float32),
            "wqkv": s * jax.random.normal(next(kw), (D, 3 * D), jnp.float32),
            "bqkv": jnp.zeros((1, 3 * D), jnp.float32),
            "wo": s * jax.random.normal(next(kw), (D, D), jnp.float32),
            "bo": jnp.zeros((1, D), jnp.float32),
            "ln2_g": jnp.ones((1, D), jnp.float32),
            "ln2_b": jnp.zeros((1, D), jnp.float32),
            "w1": s * jax.random.normal(next(kw), (D, mlp), jnp.float32),
            "b1": jnp.zeros((1, mlp), jnp.float32),
            "w2": s * jax.random.normal(next(kw), (mlp, D), jnp.float32),
            "b2": jnp.zeros((1, D), jnp.float32),
        })
    return params


if __name__ == "__main__":
    # small CLIP-like visual encoder config
    B, C, HW = 2, 3, 16
    PATCH = 4
    D, HEADS, LAYERS, MLP, E = 32, 4, 2, 128, 16
    N = (HW // PATCH) ** 2          # 16 patches
    T = N + 1                       # +cls token

    key = jax.random.PRNGKey(0)
    kx, kp = jax.random.split(key)
    image = jax.random.normal(kx, (B, C, HW, HW), jnp.float32)
    params = init_params(kp, C=C, patch=PATCH, D=D, num_heads=HEADS,
                         layers=LAYERS, mlp=MLP, E=E, n_tokens=T)

    out = encode_image(params, image, patch=PATCH, num_heads=HEADS,
                       batch_chunk=B)
    out = jax.block_until_ready(out)

    ref = encode_image_ref(params, image, patch=PATCH, num_heads=HEADS)
    assert out.shape == (B, E)
    # bf16 matmul operands (f32 accumulation) + approx reciprocal -> loosened
    # tolerance vs the pure-f32 reference.
    assert jnp.allclose(out, ref, atol=2e-2, rtol=2e-2), "mismatch vs reference"

    print("KERNEL_OK")
</pallas_src>

<mosaic_0001>
module attributes {stable_mosaic.version = 11 : i64} {
  func.func @clip_encoder_kernel(%arg0: i32, %arg1: i32, %arg2: memref<2x16x48xf32, #tpu.memory_space<vmem>>, %arg3: memref<48x32xbf16, #tpu.memory_space<vmem>>, %arg4: memref<1x32xf32, #tpu.memory_space<vmem>>, %arg5: memref<1x32xf32, #tpu.memory_space<vmem>>, %arg6: memref<1x32xf32, #tpu.memory_space<vmem>>, %arg7: memref<16x32xf32, #tpu.memory_space<vmem>>, %arg8: memref<1x32xf32, #tpu.memory_space<vmem>>, %arg9: memref<1x32xf32, #tpu.memory_space<vmem>>, %arg10: memref<1x1x32xf32, #tpu.memory_space<vmem>>, %arg11: memref<1x1x32xf32, #tpu.memory_space<vmem>>, %arg12: memref<1x32x96xbf16, #tpu.memory_space<vmem>>, %arg13: memref<1x1x96xf32, #tpu.memory_space<vmem>>, %arg14: memref<1x32x32xbf16, #tpu.memory_space<vmem>>, %arg15: memref<1x1x32xf32, #tpu.memory_space<vmem>>, %arg16: memref<1x1x32xf32, #tpu.memory_space<vmem>>, %arg17: memref<1x1x32xf32, #tpu.memory_space<vmem>>, %arg18: memref<1x32x128xbf16, #tpu.memory_space<vmem>>, %arg19: memref<1x1x128xf32, #tpu.memory_space<vmem>>, %arg20: memref<1x128x32xbf16, #tpu.memory_space<vmem>>, %arg21: memref<1x1x32xf32, #tpu.memory_space<vmem>>, %arg22: memref<1x32xf32, #tpu.memory_space<vmem>>, %arg23: memref<1x32xf32, #tpu.memory_space<vmem>>, %arg24: memref<32x16xbf16, #tpu.memory_space<vmem>>, %arg25: memref<2x16xf32, #tpu.memory_space<vmem>>, %arg26: memref<2x24x32xf32, #tpu.memory_space<vmem>>) attributes {dimension_semantics = [#tpu.dimension_semantics<parallel>, #tpu.dimension_semantics<arbitrary>], iteration_bounds = array<i64: 1, 2>, scalar_prefetch = 0 : i64, scratch_operands = 1 : i64, tpu.core_type = #tpu.core_type<tc>, window_params = [{transform_indices = @transform_0, window_bounds = array<i64: 2, 16, 48>}, {pipeline_mode = #tpu.pipeline_mode<synchronous>, transform_indices = @transform_1, window_bounds = array<i64: 48, 32>}, {pipeline_mode = #tpu.pipeline_mode<synchronous>, transform_indices = @transform_2, window_bounds = array<i64: 1, 32>}, {pipeline_mode = #tpu.pipeline_mode<synchronous>, transform_indices = @transform_3, window_bounds = array<i64: 1, 32>}, {pipeline_mode = #tpu.pipeline_mode<synchronous>, transform_indices = @transform_4, window_bounds = array<i64: 1, 32>}, {pipeline_mode = #tpu.pipeline_mode<synchronous>, transform_indices = @transform_5, window_bounds = array<i64: 16, 32>}, {pipeline_mode = #tpu.pipeline_mode<synchronous>, transform_indices = @transform_6, window_bounds = array<i64: 1, 32>}, {pipeline_mode = #tpu.pipeline_mode<synchronous>, transform_indices = @transform_7, window_bounds = array<i64: 1, 32>}, {transform_indices = @transform_8, window_bounds = array<i64: 1, 1, 32>}, {transform_indices = @transform_9, window_bounds = array<i64: 1, 1, 32>}, {transform_indices = @transform_10, window_bounds = array<i64: 1, 32, 96>}, {transform_indices = @transform_11, window_bounds = array<i64: 1, 1, 96>}, {transform_indices = @transform_12, window_bounds = array<i64: 1, 32, 32>}, {transform_indices = @transform_13, window_bounds = array<i64: 1, 1, 32>}, {transform_indices = @transform_14, window_bounds = array<i64: 1, 1, 32>}, {transform_indices = @transform_15, window_bounds = array<i64: 1, 1, 32>}, {transform_indices = @transform_16, window_bounds = array<i64: 1, 32, 128>}, {transform_indices = @transform_17, window_bounds = array<i64: 1, 1, 128>}, {transform_indices = @transform_18, window_bounds = array<i64: 1, 128, 32>}, {transform_indices = @transform_19, window_bounds = array<i64: 1, 1, 32>}, {pipeline_mode = #tpu.pipeline_mode<synchronous>, transform_indices = @transform_20, window_bounds = array<i64: 1, 32>}, {pipeline_mode = #tpu.pipeline_mode<synchronous>, transform_indices = @transform_21, window_bounds = array<i64: 1, 32>}, {pipeline_mode = #tpu.pipeline_mode<synchronous>, transform_indices = @transform_22, window_bounds = array<i64: 32, 16>}, {transform_indices = @transform_23, window_bounds = array<i64: 2, 16>}]} {
    %c0_i32 = arith.constant 0 : i32
    %0 = arith.cmpi eq, %arg1, %c0_i32 : i32
    %1 = arith.extui %0 : i1 to i32
    %c0_i32_0 = arith.constant 0 : i32
    %2 = arith.cmpi ne, %1, %c0_i32_0 : i32
    scf.if %2 {
      %c0_63 = arith.constant 0 : index
      %c0_64 = arith.constant 0 : index
      %175 = vector.load %arg8[%c0_63, %c0_64] : memref<1x32xf32, #tpu.memory_space<vmem>>, vector<1x32xf32>
      %c0_65 = arith.constant 0 : index
      %c0_66 = arith.constant 0 : index
      %176 = vector.load %arg9[%c0_65, %c0_66] : memref<1x32xf32, #tpu.memory_space<vmem>>, vector<1x32xf32>
      %c0_67 = arith.constant 0 : index
      %c0_68 = arith.constant 0 : index
      %c0_69 = arith.constant 0 : index
      %177 = vector.load %arg2[%c0_67, %c0_68, %c0_69] : memref<2x16x48xf32, #tpu.memory_space<vmem>>, vector<2x16x48xf32>
      %178 = arith.truncf %177 : vector<2x16x48xf32> to vector<2x16x48xbf16>
      %179 = vector.shape_cast %178 : vector<2x16x48xbf16> to vector<32x48xbf16>
      %c0_70 = arith.constant 0 : index
      %c0_71 = arith.constant 0 : index
      %180 = vector.load %arg3[%c0_70, %c0_71] : memref<48x32xbf16, #tpu.memory_space<vmem>>, vector<48x32xbf16>
      %cst_72 = arith.constant dense<0.000000e+00> : vector<32x32xf32>
      %181 = tpu.matmul %179, %180, %cst_72 {dimension_numbers = #tpu.dot_dimension_numbers<[1], [0], [0], [1], [0, 0, 1, 1], [], []>} : vector<32x48xbf16>, vector<48x32xbf16>, vector<32x32xf32> -> vector<32x32xf32>
      %c0_73 = arith.constant 0 : index
      %c0_74 = arith.constant 0 : index
      %182 = vector.load %arg4[%c0_73, %c0_74] : memref<1x32xf32, #tpu.memory_space<vmem>>, vector<1x32xf32>
      %183 = vector.broadcast %182 : vector<1x32xf32> to vector<32x32xf32>
      %184 = arith.addf %181, %183 : vector<32x32xf32>
      %185 = vector.shape_cast %184 : vector<32x32xf32> to vector<2x16x32xf32>
      %c0_75 = arith.constant 0 : index
      %c0_76 = arith.constant 0 : index
      %186 = vector.load %arg7[%c0_75, %c0_76] : memref<16x32xf32, #tpu.memory_space<vmem>>, vector<16x32xf32>
      %187 = vector.shape_cast %186 : vector<16x32xf32> to vector<1x16x32xf32>
      %188 = vector.broadcast %187 : vector<1x16x32xf32> to vector<2x16x32xf32>
      %189 = arith.addf %185, %188 : vector<2x16x32xf32>
      %cst_77 = arith.constant dense<0.000000e+00> : vector<2x16xf32>
      %190 = vector.multi_reduction <add>, %189, %cst_77 [2] : vector<2x16x32xf32> to vector<2x16xf32>
      %191 = vector.shape_cast %190 : vector<2x16xf32> to vector<2x16x1xf32>
      %cst_78 = arith.constant 3.200000e+01 : f32
      %192 = vector.broadcast %cst_78 : f32 to vector<2x16x1xf32>
      %193 = arith.divf %191, %192 : vector<2x16x1xf32>
      %194 = vector.broadcast %193 : vector<2x16x1xf32> to vector<2x16x32xf32>
      %195 = arith.subf %189, %194 : vector<2x16x32xf32>
      %196 = arith.mulf %195, %195 : vector<2x16x32xf32>
      %cst_79 = arith.constant dense<0.000000e+00> : vector<2x16xf32>
      %197 = vector.multi_reduction <add>, %196, %cst_79 [2] : vector<2x16x32xf32> to vector<2x16xf32>
      %198 = vector.shape_cast %197 : vector<2x16xf32> to vector<2x16x1xf32>
      %cst_80 = arith.constant 3.200000e+01 : f32
      %199 = vector.broadcast %cst_80 : f32 to vector<2x16x1xf32>
      %200 = arith.divf %198, %199 : vector<2x16x1xf32>
      %201 = vector.broadcast %193 : vector<2x16x1xf32> to vector<2x16x32xf32>
      %202 = arith.subf %189, %201 : vector<2x16x32xf32>
      %cst_81 = arith.constant 9.99999974E-6 : f32
      %203 = vector.broadcast %cst_81 : f32 to vector<2x16x1xf32>
      %204 = arith.addf %200, %203 : vector<2x16x1xf32>
      %205 = math.rsqrt %204 : vector<2x16x1xf32>
      %206 = vector.broadcast %205 : vector<2x16x1xf32> to vector<2x16x32xf32>
      %207 = arith.mulf %202, %206 : vector<2x16x32xf32>
      %208 = vector.shape_cast %175 : vector<1x32xf32> to vector<1x1x32xf32>
      %209 = vector.broadcast %208 : vector<1x1x32xf32> to vector<2x16x32xf32>
      %210 = arith.mulf %207, %209 : vector<2x16x32xf32>
      %211 = vector.shape_cast %176 : vector<1x32xf32> to vector<1x1x32xf32>
      %212 = vector.broadcast %211 : vector<1x1x32xf32> to vector<2x16x32xf32>
      %213 = arith.addf %210, %212 : vector<2x16x32xf32>
      %c0_82 = arith.constant 0 : index
      %c0_83 = arith.constant 0 : index
      %214 = vector.load %arg5[%c0_82, %c0_83] : memref<1x32xf32, #tpu.memory_space<vmem>>, vector<1x32xf32>
      %c0_84 = arith.constant 0 : index
      %c0_85 = arith.constant 0 : index
      %215 = vector.load %arg6[%c0_84, %c0_85] : memref<1x32xf32, #tpu.memory_space<vmem>>, vector<1x32xf32>
      %216 = arith.addf %214, %215 : vector<1x32xf32>
      %cst_86 = arith.constant dense<0.000000e+00> : vector<1xf32>
      %217 = vector.multi_reduction <add>, %216, %cst_86 [1] : vector<1x32xf32> to vector<1xf32>
      %218 = vector.shape_cast %217 : vector<1xf32> to vector<1x1xf32>
      %cst_87 = arith.constant 3.200000e+01 : f32
      %219 = vector.broadcast %cst_87 : f32 to vector<1x1xf32>
      %220 = arith.divf %218, %219 : vector<1x1xf32>
      %221 = vector.broadcast %220 : vector<1x1xf32> to vector<1x32xf32>
      %222 = arith.subf %216, %221 : vector<1x32xf32>
      %223 = arith.mulf %222, %222 : vector<1x32xf32>
      %cst_88 = arith.constant dense<0.000000e+00> : vector<1xf32>
      %224 = vector.multi_reduction <add>, %223, %cst_88 [1] : vector<1x32xf32> to vector<1xf32>
      %225 = vector.shape_cast %224 : vector<1xf32> to vector<1x1xf32>
      %cst_89 = arith.constant 3.200000e+01 : f32
      %226 = vector.broadcast %cst_89 : f32 to vector<1x1xf32>
      %227 = arith.divf %225, %226 : vector<1x1xf32>
      %228 = vector.broadcast %220 : vector<1x1xf32> to vector<1x32xf32>
      %229 = arith.subf %216, %228 : vector<1x32xf32>
      %cst_90 = arith.constant 9.99999974E-6 : f32
      %230 = vector.broadcast %cst_90 : f32 to vector<1x1xf32>
      %231 = arith.addf %227, %230 : vector<1x1xf32>
      %232 = math.rsqrt %231 : vector<1x1xf32>
      %233 = vector.broadcast %232 : vector<1x1xf32> to vector<1x32xf32>
      %234 = arith.mulf %229, %233 : vector<1x32xf32>
      %235 = arith.mulf %234, %175 : vector<1x32xf32>
      %236 = arith.addf %235, %176 : vector<1x32xf32>
      %c0_91 = arith.constant 0 : index
      %c0_92 = arith.constant 0 : index
      %c0_93 = arith.constant 0 : index
      %237 = vector.load %arg26[%c0_91, %c0_92, %c0_93] : memref<2x24x32xf32, #tpu.memory_space<vmem>>, vector<2x16x32xf32>
      tpu.vector_store %arg26[%c0_91, %c0_92, %c0_93], %213 {strides = array<i32>} : memref<2x24x32xf32, #tpu.memory_space<vmem>>, vector<2x16x32xf32>,
      %238 = vector.shape_cast %236 : vector<1x32xf32> to vector<1x1x32xf32>
      %239 = vector.shape_cast %238 : vector<1x1x32xf32> to vector<1x1x32xf32>
      %240 = vector.broadcast %239 : vector<1x1x32xf32> to vector<2x8x32xf32>
      %c0_94 = arith.constant 0 : index
      %c16 = arith.constant 16 : index
      %c0_95 = arith.constant 0 : index
      %241 = vector.load %arg26[%c0_94, %c16, %c0_95] : memref<2x24x32xf32, #tpu.memory_space<vmem>>, vector<2x8x32xf32>
      tpu.vector_store %arg26[%c0_94, %c16, %c0_95], %240 {strides = array<i32>} : memref<2x24x32xf32, #tpu.memory_space<vmem>>, vector<2x8x32xf32>,
    } else {
    }
    %c0 = arith.constant 0 : index
    %c0_1 = arith.constant 0 : index
    %c0_2 = arith.constant 0 : index
    %3 = vector.load %arg26[%c0, %c0_1, %c0_2] : memref<2x24x32xf32, #tpu.memory_space<vmem>>, vector<2x24x32xf32>
    %4 = vector.shape_cast %3 : vector<2x24x32xf32> to vector<48x32xf32>
    %c0_3 = arith.constant 0 : index
    %c0_4 = arith.constant 0 : index
    %c0_5 = arith.constant 0 : index
    %5 = vector.load %arg10[%c0_3, %c0_4, %c0_5] : memref<1x1x32xf32, #tpu.memory_space<vmem>>, vector<1x1x32xf32>
    %6 = vector.shape_cast %5 : vector<1x1x32xf32> to vector<1x32xf32>
    %c0_6 = arith.constant 0 : index
    %c0_7 = arith.constant 0 : index
    %c0_8 = arith.constant 0 : index
    %7 = vector.load %arg11[%c0_6, %c0_7, %c0_8] : memref<1x1x32xf32, #tpu.memory_space<vmem>>, vector<1x1x32xf32>
    %8 = vector.shape_cast %7 : vector<1x1x32xf32> to vector<1x32xf32>
    %cst = arith.constant dense<0.000000e+00> : vector<48xf32>
    %9 = vector.multi_reduction <add>, %4, %cst [1] : vector<48x32xf32> to vector<48xf32>
    %10 = vector.shape_cast %9 : vector<48xf32> to vector<48x1xf32>
    %cst_9 = arith.constant 3.200000e+01 : f32
    %11 = vector.broadcast %cst_9 : f32 to vector<48x1xf32>
    %12 = arith.divf %10, %11 : vector<48x1xf32>
    %13 = vector.broadcast %12 : vector<48x1xf32> to vector<48x32xf32>
    %14 = arith.subf %4, %13 : vector<48x32xf32>
    %15 = arith.mulf %14, %14 : vector<48x32xf32>
    %cst_10 = arith.constant dense<0.000000e+00> : vector<48xf32>
    %16 = vector.multi_reduction <add>, %15, %cst_10 [1] : vector<48x32xf32> to vector<48xf32>
    %17 = vector.shape_cast %16 : vector<48xf32> to vector<48x1xf32>
    %cst_11 = arith.constant 3.200000e+01 : f32
    %18 = vector.broadcast %cst_11 : f32 to vector<48x1xf32>
    %19 = arith.divf %17, %18 : vector<48x1xf32>
    %20 = vector.broadcast %12 : vector<48x1xf32> to vector<48x32xf32>
    %21 = arith.subf %4, %20 : vector<48x32xf32>
    %cst_12 = arith.constant 9.99999974E-6 : f32
    %22 = vector.broadcast %cst_12 : f32 to vector<48x1xf32>
    %23 = arith.addf %19, %22 : vector<48x1xf32>
    %24 = math.rsqrt %23 : vector<48x1xf32>
    %25 = vector.broadcast %24 : vector<48x1xf32> to vector<48x32xf32>
    %26 = arith.mulf %21, %25 : vector<48x32xf32>
    %27 = vector.broadcast %6 : vector<1x32xf32> to vector<48x32xf32>
    %28 = arith.mulf %26, %27 : vector<48x32xf32>
    %29 = vector.broadcast %8 : vector<1x32xf32> to vector<48x32xf32>
    %30 = arith.addf %28, %29 : vector<48x32xf32>
    %31 = arith.truncf %30 : vector<48x32xf32> to vector<48x32xbf16>
    %c0_13 = arith.constant 0 : index
    %c0_14 = arith.constant 0 : index
    %c0_15 = arith.constant 0 : index
    %32 = vector.load %arg12[%c0_13, %c0_14, %c0_15] : memref<1x32x96xbf16, #tpu.memory_space<vmem>>, vector<1x32x96xbf16>
    %33 = vector.shape_cast %32 : vector<1x32x96xbf16> to vector<32x96xbf16>
    %cst_16 = arith.constant dense<0.000000e+00> : vector<48x96xf32>
    %34 = tpu.matmul %31, %33, %cst_16 {dimension_numbers = #tpu.dot_dimension_numbers<[1], [0], [0], [1], [0, 0, 1, 1], [], []>} : vector<48x32xbf16>, vector<32x96xbf16>, vector<48x96xf32> -> vector<48x96xf32>
    %c0_17 = arith.constant 0 : index
    %c0_18 = arith.constant 0 : index
    %c0_19 = arith.constant 0 : index
    %35 = vector.load %arg13[%c0_17, %c0_18, %c0_19] : memref<1x1x96xf32, #tpu.memory_space<vmem>>, vector<1x1x96xf32>
    %36 = vector.shape_cast %35 : vector<1x1x96xf32> to vector<1x96xf32>
    %37 = vector.broadcast %36 : vector<1x96xf32> to vector<48x96xf32>
    %38 = arith.addf %34, %37 : vector<48x96xf32>
    %39 = vector.extract_strided_slice %38 {offsets = [0, 0], sizes = [48, 8], strides = [1, 1]} : vector<48x96xf32> to vector<48x8xf32>
    %40 = vector.shape_cast %39 : vector<48x8xf32> to vector<2x24x8xf32>
    %41 = vector.extract_strided_slice %38 {offsets = [0, 8], sizes = [48, 8], strides = [1, 1]} : vector<48x96xf32> to vector<48x8xf32>
    %42 = vector.shape_cast %41 : vector<48x8xf32> to vector<2x24x8xf32>
    %43 = vector.extract_strided_slice %38 {offsets = [0, 16], sizes = [48, 8], strides = [1, 1]} : vector<48x96xf32> to vector<48x8xf32>
    %44 = vector.shape_cast %43 : vector<48x8xf32> to vector<2x24x8xf32>
    %45 = vector.extract_strided_slice %38 {offsets = [0, 24], sizes = [48, 8], strides = [1, 1]} : vector<48x96xf32> to vector<48x8xf32>
    %46 = vector.shape_cast %45 : vector<48x8xf32> to vector<2x24x8xf32>
    %47 = vector.shape_cast %40 : vector<2x24x8xf32> to vector<1x2x24x8xf32>
    %48 = vector.shape_cast %42 : vector<2x24x8xf32> to vector<1x2x24x8xf32>
    %49 = vector.shape_cast %44 : vector<2x24x8xf32> to vector<1x2x24x8xf32>
    %50 = vector.shape_cast %46 : vector<2x24x8xf32> to vector<1x2x24x8xf32>
    %51 = tpu.concatenate %47, %48, %49, %50 in 0 : vector<1x2x24x8xf32>, vector<1x2x24x8xf32>, vector<1x2x24x8xf32>, vector<1x2x24x8xf32> -> vector<4x2x24x8xf32>
    %52 = vector.shape_cast %51 : vector<4x2x24x8xf32> to vector<8x24x8xf32>
    %53 = arith.truncf %52 : vector<8x24x8xf32> to vector<8x24x8xbf16>
    %54 = vector.extract_strided_slice %38 {offsets = [0, 32], sizes = [48, 8], strides = [1, 1]} : vector<48x96xf32> to vector<48x8xf32>
    %55 = vector.shape_cast %54 : vector<48x8xf32> to vector<2x24x8xf32>
    %56 = vector.extract_strided_slice %38 {offsets = [0, 40], sizes = [48, 8], strides = [1, 1]} : vector<48x96xf32> to vector<48x8xf32>
    %57 = vector.shape_cast %56 : vector<48x8xf32> to vector<2x24x8xf32>
    %58 = vector.extract_strided_slice %38 {offsets = [0, 48], sizes = [48, 8], strides = [1, 1]} : vector<48x96xf32> to vector<48x8xf32>
    %59 = vector.shape_cast %58 : vector<48x8xf32> to vector<2x24x8xf32>
    %60 = vector.extract_strided_slice %38 {offsets = [0, 56], sizes = [48, 8], strides = [1, 1]} : vector<48x96xf32> to vector<48x8xf32>
    %61 = vector.shape_cast %60 : vector<48x8xf32> to vector<2x24x8xf32>
    %62 = vector.shape_cast %55 : vector<2x24x8xf32> to vector<1x2x24x8xf32>
    %63 = vector.shape_cast %57 : vector<2x24x8xf32> to vector<1x2x24x8xf32>
    %64 = vector.shape_cast %59 : vector<2x24x8xf32> to vector<1x2x24x8xf32>
    %65 = vector.shape_cast %61 : vector<2x24x8xf32> to vector<1x2x24x8xf32>
    %66 = tpu.concatenate %62, %63, %64, %65 in 0 : vector<1x2x24x8xf32>, vector<1x2x24x8xf32>, vector<1x2x24x8xf32>, vector<1x2x24x8xf32> -> vector<4x2x24x8xf32>
    %67 = vector.shape_cast %66 : vector<4x2x24x8xf32> to vector<8x24x8xf32>
    %68 = arith.truncf %67 : vector<8x24x8xf32> to vector<8x24x8xbf16>
    %69 = vector.extract_strided_slice %38 {offsets = [0, 64], sizes = [48, 8], strides = [1, 1]} : vector<48x96xf32> to vector<48x8xf32>
    %70 = vector.shape_cast %69 : vector<48x8xf32> to vector<2x24x8xf32>
    %71 = vector.extract_strided_slice %38 {offsets = [0, 72], sizes = [48, 8], strides = [1, 1]} : vector<48x96xf32> to vector<48x8xf32>
    %72 = vector.shape_cast %71 : vector<48x8xf32> to vector<2x24x8xf32>
    %73 = vector.extract_strided_slice %38 {offsets = [0, 80], sizes = [48, 8], strides = [1, 1]} : vector<48x96xf32> to vector<48x8xf32>
    %74 = vector.shape_cast %73 : vector<48x8xf32> to vector<2x24x8xf32>
    %75 = vector.extract_strided_slice %38 {offsets = [0, 88], sizes = [48, 8], strides = [1, 1]} : vector<48x96xf32> to vector<48x8xf32>
    %76 = vector.shape_cast %75 : vector<48x8xf32> to vector<2x24x8xf32>
    %77 = vector.shape_cast %70 : vector<2x24x8xf32> to vector<1x2x24x8xf32>
    %78 = vector.shape_cast %72 : vector<2x24x8xf32> to vector<1x2x24x8xf32>
    %79 = vector.shape_cast %74 : vector<2x24x8xf32> to vector<1x2x24x8xf32>
    %80 = vector.shape_cast %76 : vector<2x24x8xf32> to vector<1x2x24x8xf32>
    %81 = tpu.concatenate %77, %78, %79, %80 in 0 : vector<1x2x24x8xf32>, vector<1x2x24x8xf32>, vector<1x2x24x8xf32>, vector<1x2x24x8xf32> -> vector<4x2x24x8xf32>
    %82 = vector.shape_cast %81 : vector<4x2x24x8xf32> to vector<8x24x8xf32>
    %83 = arith.truncf %82 : vector<8x24x8xf32> to vector<8x24x8xbf16>
    "tpu.trace_start"() <{level = 10 : i32, message = "xqd,xkd->xqk"}> : () -> ()
    %cst_20 = arith.constant dense<0.000000e+00> : vector<8x24x24xf32>
    %84 = tpu.matmul %53, %68, %cst_20 {dimension_numbers = #tpu.dot_dimension_numbers<[2], [2], [1], [1], [0, 0, 0, 1, 1, 1], [0], [0]>} : vector<8x24x8xbf16>, vector<8x24x8xbf16>, vector<8x24x24xf32> -> vector<8x24x24xf32>
    "tpu.trace_stop"() : () -> ()
    %85 = tpu.iota {dimensions = array<i32: 2>} : vector<1x1x24xi32>
    %c17_i32 = arith.constant 17 : i32
    %86 = vector.broadcast %c17_i32 : i32 to vector<1x1x24xi32>
    %87 = arith.cmpi slt, %85, %86 : vector<1x1x24xi32>
    %cst_21 = arith.constant -1.000000e+30 : f32
    %88 = vector.shape_cast %87 : vector<1x1x24xi1> to vector<1x1x24xi1>
    %89 = vector.broadcast %88 : vector<1x1x24xi1> to vector<8x24x24xi1>
    %90 = vector.broadcast %cst_21 : f32 to vector<8x24x24xf32>
    %91 = arith.select %89, %84, %90 : vector<8x24x24xi1>, vector<8x24x24xf32>
    %cst_22 = arith.constant dense<0xFF800000> : vector<8x24xf32>
    %92 = vector.multi_reduction <maximumf>, %91, %cst_22 [2] : vector<8x24x24xf32> to vector<8x24xf32>
    %93 = vector.shape_cast %92 : vector<8x24xf32> to vector<8x24x1xf32>
    %94 = vector.broadcast %93 : vector<8x24x1xf32> to vector<8x24x24xf32>
    %95 = arith.subf %91, %94 : vector<8x24x24xf32>
    %96 = math.exp %95 : vector<8x24x24xf32>
    %cst_23 = arith.constant dense<0.000000e+00> : vector<8x24xf32>
    %97 = vector.multi_reduction <add>, %96, %cst_23 [2] : vector<8x24x24xf32> to vector<8x24xf32>
    %98 = vector.shape_cast %97 : vector<8x24xf32> to vector<8x24x1xf32>
    %99 = tpu.reciprocal %98 {approx = true} : vector<8x24x1xf32> -> vector<8x24x1xf32>
    %100 = vector.broadcast %99 : vector<8x24x1xf32> to vector<8x24x24xf32>
    %101 = arith.mulf %96, %100 : vector<8x24x24xf32>
    %102 = arith.truncf %101 : vector<8x24x24xf32> to vector<8x24x24xbf16>
    "tpu.trace_start"() <{level = 10 : i32, message = "xqk,xkd->xqd"}> : () -> ()
    %cst_24 = arith.constant dense<0.000000e+00> : vector<8x24x8xf32>
    %103 = tpu.matmul %102, %83, %cst_24 {dimension_numbers = #tpu.dot_dimension_numbers<[2], [1], [1], [2], [0, 0, 0, 1, 1, 2], [0], [0]>} : vector<8x24x24xbf16>, vector<8x24x8xbf16>, vector<8x24x8xf32> -> vector<8x24x8xf32>
    "tpu.trace_stop"() : () -> ()
    %104 = vector.extract_strided_slice %103 {offsets = [0, 0, 0], sizes = [2, 24, 8], strides = [1, 1, 1]} : vector<8x24x8xf32> to vector<2x24x8xf32>
    %105 = vector.extract_strided_slice %103 {offsets = [2, 0, 0], sizes = [2, 24, 8], strides = [1, 1, 1]} : vector<8x24x8xf32> to vector<2x24x8xf32>
    %106 = vector.extract_strided_slice %103 {offsets = [4, 0, 0], sizes = [2, 24, 8], strides = [1, 1, 1]} : vector<8x24x8xf32> to vector<2x24x8xf32>
    %107 = vector.extract_strided_slice %103 {offsets = [6, 0, 0], sizes = [2, 24, 8], strides = [1, 1, 1]} : vector<8x24x8xf32> to vector<2x24x8xf32>
    %108 = tpu.concatenate %104, %105, %106, %107 in 2 : vector<2x24x8xf32>, vector<2x24x8xf32>, vector<2x24x8xf32>, vector<2x24x8xf32> -> vector<2x24x32xf32>
    %109 = vector.shape_cast %108 : vector<2x24x32xf32> to vector<48x32xf32>
    %110 = arith.truncf %109 : vector<48x32xf32> to vector<48x32xbf16>
    %c0_25 = arith.constant 0 : index
    %c0_26 = arith.constant 0 : index
    %c0_27 = arith.constant 0 : index
    %111 = vector.load %arg14[%c0_25, %c0_26, %c0_27] : memref<1x32x32xbf16, #tpu.memory_space<vmem>>, vector<1x32x32xbf16>
    %112 = vector.shape_cast %111 : vector<1x32x32xbf16> to vector<32x32xbf16>
    %cst_28 = arith.constant dense<0.000000e+00> : vector<48x32xf32>
    %113 = tpu.matmul %110, %112, %cst_28 {dimension_numbers = #tpu.dot_dimension_numbers<[1], [0], [0], [1], [0, 0, 1, 1], [], []>} : vector<48x32xbf16>, vector<32x32xbf16>, vector<48x32xf32> -> vector<48x32xf32>
    %c0_29 = arith.constant 0 : index
    %c0_30 = arith.constant 0 : index
    %c0_31 = arith.constant 0 : index
    %114 = vector.load %arg15[%c0_29, %c0_30, %c0_31] : memref<1x1x32xf32, #tpu.memory_space<vmem>>, vector<1x1x32xf32>
    %115 = vector.shape_cast %114 : vector<1x1x32xf32> to vector<1x32xf32>
    %116 = vector.broadcast %115 : vector<1x32xf32> to vector<48x32xf32>
    %117 = arith.addf %113, %116 : vector<48x32xf32>
    %118 = arith.addf %4, %117 : vector<48x32xf32>
    %c0_32 = arith.constant 0 : index
    %c0_33 = arith.constant 0 : index
    %c0_34 = arith.constant 0 : index
    %119 = vector.load %arg16[%c0_32, %c0_33, %c0_34] : memref<1x1x32xf32, #tpu.memory_space<vmem>>, vector<1x1x32xf32>
    %120 = vector.shape_cast %119 : vector<1x1x32xf32> to vector<1x32xf32>
    %c0_35 = arith.constant 0 : index
    %c0_36 = arith.constant 0 : index
    %c0_37 = arith.constant 0 : index
    %121 = vector.load %arg17[%c0_35, %c0_36, %c0_37] : memref<1x1x32xf32, #tpu.memory_space<vmem>>, vector<1x1x32xf32>
    %122 = vector.shape_cast %121 : vector<1x1x32xf32> to vector<1x32xf32>
    %cst_38 = arith.constant dense<0.000000e+00> : vector<48xf32>
    %123 = vector.multi_reduction <add>, %118, %cst_38 [1] : vector<48x32xf32> to vector<48xf32>
    %124 = vector.shape_cast %123 : vector<48xf32> to vector<48x1xf32>
    %cst_39 = arith.constant 3.200000e+01 : f32
    %125 = vector.broadcast %cst_39 : f32 to vector<48x1xf32>
    %126 = arith.divf %124, %125 : vector<48x1xf32>
    %127 = vector.broadcast %126 : vector<48x1xf32> to vector<48x32xf32>
    %128 = arith.subf %118, %127 : vector<48x32xf32>
    %129 = arith.mulf %128, %128 : vector<48x32xf32>
    %cst_40 = arith.constant dense<0.000000e+00> : vector<48xf32>
    %130 = vector.multi_reduction <add>, %129, %cst_40 [1] : vector<48x32xf32> to vector<48xf32>
    %131 = vector.shape_cast %130 : vector<48xf32> to vector<48x1xf32>
    %cst_41 = arith.constant 3.200000e+01 : f32
    %132 = vector.broadcast %cst_41 : f32 to vector<48x1xf32>
    %133 = arith.divf %131, %132 : vector<48x1xf32>
    %134 = vector.broadcast %126 : vector<48x1xf32> to vector<48x32xf32>
    %135 = arith.subf %118, %134 : vector<48x32xf32>
    %cst_42 = arith.constant 9.99999974E-6 : f32
    %136 = vector.broadcast %cst_42 : f32 to vector<48x1xf32>
    %137 = arith.addf %133, %136 : vector<48x1xf32>
    %138 = math.rsqrt %137 : vector<48x1xf32>
    %139 = vector.broadcast %138 : vector<48x1xf32> to vector<48x32xf32>
    %140 = arith.mulf %135, %139 : vector<48x32xf32>
    %141 = vector.broadcast %120 : vector<1x32xf32> to vector<48x32xf32>
    %142 = arith.mulf %140, %141 : vector<48x32xf32>
    %143 = vector.broadcast %122 : vector<1x32xf32> to vector<48x32xf32>
    %144 = arith.addf %142, %143 : vector<48x32xf32>
    %145 = arith.truncf %144 : vector<48x32xf32> to vector<48x32xbf16>
    %c0_43 = arith.constant 0 : index
    %c0_44 = arith.constant 0 : index
    %c0_45 = arith.constant 0 : index
    %146 = vector.load %arg18[%c0_43, %c0_44, %c0_45] : memref<1x32x128xbf16, #tpu.memory_space<vmem>>, vector<1x32x128xbf16>
    %147 = vector.shape_cast %146 : vector<1x32x128xbf16> to vector<32x128xbf16>
    %cst_46 = arith.constant dense<0.000000e+00> : vector<48x128xf32>
    %148 = tpu.matmul %145, %147, %cst_46 {dimension_numbers = #tpu.dot_dimension_numbers<[1], [0], [0], [1], [0, 0, 1, 1], [], []>} : vector<48x32xbf16>, vector<32x128xbf16>, vector<48x128xf32> -> vector<48x128xf32>
    %c0_47 = arith.constant 0 : index
    %c0_48 = arith.constant 0 : index
    %c0_49 = arith.constant 0 : index
    %149 = vector.load %arg19[%c0_47, %c0_48, %c0_49] : memref<1x1x128xf32, #tpu.memory_space<vmem>>, vector<1x1x128xf32>
    %150 = vector.shape_cast %149 : vector<1x1x128xf32> to vector<1x128xf32>
    %151 = vector.broadcast %150 : vector<1x128xf32> to vector<48x128xf32>
    %152 = arith.addf %148, %151 : vector<48x128xf32>
    %cst_50 = arith.constant 1.702000e+00 : f32
    %153 = vector.broadcast %cst_50 : f32 to vector<48x128xf32>
    %154 = arith.mulf %153, %152 : vector<48x128xf32>
    %155 = arith.negf %154 : vector<48x128xf32>
    %156 = math.exp %155 : vector<48x128xf32>
    %cst_51 = arith.constant 1.000000e+00 : f32
    %157 = vector.broadcast %cst_51 : f32 to vector<48x128xf32>
    %158 = arith.addf %157, %156 : vector<48x128xf32>
    %159 = arith.divf %157, %158 : vector<48x128xf32>
    %160 = arith.mulf %152, %159 : vector<48x128xf32>
    %161 = arith.truncf %160 : vector<48x128xf32> to vector<48x128xbf16>
    %c0_52 = arith.constant 0 : index
    %c0_53 = arith.constant 0 : index
    %c0_54 = arith.constant 0 : index
    %162 = vector.load %arg20[%c0_52, %c0_53, %c0_54] : memref<1x128x32xbf16, #tpu.memory_space<vmem>>, vector<1x128x32xbf16>
    %163 = vector.shape_cast %162 : vector<1x128x32xbf16> to vector<128x32xbf16>
    %cst_55 = arith.constant dense<0.000000e+00> : vector<48x32xf32>
    %164 = tpu.matmul %161, %163, %cst_55 {dimension_numbers = #tpu.dot_dimension_numbers<[1], [0], [0], [1], [0, 0, 1, 1], [], []>} : vector<48x128xbf16>, vector<128x32xbf16>, vector<48x32xf32> -> vector<48x32xf32>
    %165 = arith.addf %118, %164 : vector<48x32xf32>
    %c0_56 = arith.constant 0 : index
    %c0_57 = arith.constant 0 : index
    %c0_58 = arith.constant 0 : index
    %166 = vector.load %arg21[%c0_56, %c0_57, %c0_58] : memref<1x1x32xf32, #tpu.memory_space<vmem>>, vector<1x1x32xf32>
    %167 = vector.shape_cast %166 : vector<1x1x32xf32> to vector<1x32xf32>
    %168 = vector.broadcast %167 : vector<1x32xf32> to vector<48x32xf32>
    %169 = arith.addf %165, %168 : vector<48x32xf32>
    %170 = vector.shape_cast %169 : vector<48x32xf32> to vector<2x24x32xf32>
    %c0_59 = arith.constant 0 : index
    %c0_60 = arith.constant 0 : index
    %c0_61 = arith.constant 0 : index
    %171 = vector.load %arg26[%c0_59, %c0_60, %c0_61] : memref<2x24x32xf32, #tpu.memory_space<vmem>>, vector<2x24x32xf32>
    tpu.vector_store %arg26[%c0_59, %c0_60, %c0_61], %170 {strides = array<i32>} : memref<2x24x32xf32, #tpu.memory_space<vmem>>, vector<2x24x32xf32>,
    %c1_i32 = arith.constant 1 : i32
    %172 = arith.cmpi eq, %arg1, %c1_i32 : i32
    %173 = arith.extui %172 : i1 to i32
    %c0_i32_62 = arith.constant 0 : i32
    %174 = arith.cmpi ne, %173, %c0_i32_62 : i32
    scf.if %174 {
      %c0_63 = arith.constant 0 : index
      %c16 = arith.constant 16 : index
      %c0_64 = arith.constant 0 : index
      %175 = vector.load %arg26[%c0_63, %c16, %c0_64] : memref<2x24x32xf32, #tpu.memory_space<vmem>>, vector<2x8x32xf32>
      %176 = vector.extract_strided_slice %175 {offsets = [0, 0, 0], sizes = [2, 1, 32], strides = [1, 1, 1]} : vector<2x8x32xf32> to vector<2x1x32xf32>
      %177 = vector.shape_cast %176 : vector<2x1x32xf32> to vector<2x32xf32>
      %c0_65 = arith.constant 0 : index
      %c0_66 = arith.constant 0 : index
      %178 = vector.load %arg22[%c0_65, %c0_66] : memref<1x32xf32, #tpu.memory_space<vmem>>, vector<1x32xf32>
      %c0_67 = arith.constant 0 : index
      %c0_68 = arith.constant 0 : index
      %179 = vector.load %arg23[%c0_67, %c0_68] : memref<1x32xf32, #tpu.memory_space<vmem>>, vector<1x32xf32>
      %cst_69 = arith.constant dense<0.000000e+00> : vector<2xf32>
      %180 = vector.multi_reduction <add>, %177, %cst_69 [1] : vector<2x32xf32> to vector<2xf32>
      %181 = vector.shape_cast %180 : vector<2xf32> to vector<2x1xf32>
      %cst_70 = arith.constant 3.200000e+01 : f32
      %182 = vector.broadcast %cst_70 : f32 to vector<2x1xf32>
      %183 = arith.divf %181, %182 : vector<2x1xf32>
      %184 = vector.broadcast %183 : vector<2x1xf32> to vector<2x32xf32>
      %185 = arith.subf %177, %184 : vector<2x32xf32>
      %186 = arith.mulf %185, %185 : vector<2x32xf32>
      %cst_71 = arith.constant dense<0.000000e+00> : vector<2xf32>
      %187 = vector.multi_reduction <add>, %186, %cst_71 [1] : vector<2x32xf32> to vector<2xf32>
      %188 = vector.shape_cast %187 : vector<2xf32> to vector<2x1xf32>
      %cst_72 = arith.constant 3.200000e+01 : f32
      %189 = vector.broadcast %cst_72 : f32 to vector<2x1xf32>
      %190 = arith.divf %188, %189 : vector<2x1xf32>
      %191 = vector.broadcast %183 : vector<2x1xf32> to vector<2x32xf32>
      %192 = arith.subf %177, %191 : vector<2x32xf32>
      %cst_73 = arith.constant 9.99999974E-6 : f32
      %193 = vector.broadcast %cst_73 : f32 to vector<2x1xf32>
      %194 = arith.addf %190, %193 : vector<2x1xf32>
      %195 = math.rsqrt %194 : vector<2x1xf32>
      %196 = vector.broadcast %195 : vector<2x1xf32> to vector<2x32xf32>
      %197 = arith.mulf %192, %196 : vector<2x32xf32>
      %198 = vector.broadcast %178 : vector<1x32xf32> to vector<2x32xf32>
      %199 = arith.mulf %197, %198 : vector<2x32xf32>
      %200 = vector.broadcast %179 : vector<1x32xf32> to vector<2x32xf32>
      %201 = arith.addf %199, %200 : vector<2x32xf32>
      %202 = arith.truncf %201 : vector<2x32xf32> to vector<2x32xbf16>
      %c0_74 = arith.constant 0 : index
      %c0_75 = arith.constant 0 : index
      %203 = vector.load %arg24[%c0_74, %c0_75] : memref<32x16xbf16, #tpu.memory_space<vmem>>, vector<32x16xbf16>
      %cst_76 = arith.constant dense<0.000000e+00> : vector<2x16xf32>
      %204 = tpu.matmul %202, %203, %cst_76 {dimension_numbers = #tpu.dot_dimension_numbers<[1], [0], [0], [1], [0, 0, 1, 1], [], []>} : vector<2x32xbf16>, vector<32x16xbf16>, vector<2x16xf32> -> vector<2x16xf32>
      %c0_77 = arith.constant 0 : index
      %c0_78 = arith.constant 0 : index
      %205 = vector.load %arg25[%c0_77, %c0_78] : memref<2x16xf32, #tpu.memory_space<vmem>>, vector<2x16xf32>
      tpu.vector_store %arg25[%c0_77, %c0_78], %204 {strides = array<i32>} : memref<2x16xf32, #tpu.memory_space<vmem>>, vector<2x16xf32>,
    } else {
    }
    return
  }
  func.func @transform_0(%arg0: i32, %arg1: i32) -> (i32, i32, i32) {
    %c0_i32 = arith.constant 0 : i32
    %c0_i32_0 = arith.constant 0 : i32
    %c0_i32_1 = arith.constant 0 : i32
    return %arg0, %c0_i32, %c0_i32_0 : i32, i32, i32
  }
  func.func @transform_1(%arg0: i32, %arg1: i32) -> (i32, i32) {
    %c0_i32 = arith.constant 0 : i32
    %c0_i32_0 = arith.constant 0 : i32
    %c0_i32_1 = arith.constant 0 : i32
    return %c0_i32, %c0_i32_0 : i32, i32
  }
  func.func @transform_2(%arg0: i32, %arg1: i32) -> (i32, i32) {
    %c0_i32 = arith.constant 0 : i32
    %c0_i32_0 = arith.constant 0 : i32
    %c0_i32_1 = arith.constant 0 : i32
    return %c0_i32, %c0_i32_0 : i32, i32
  }
  func.func @transform_3(%arg0: i32, %arg1: i32) -> (i32, i32) {
    %c0_i32 = arith.constant 0 : i32
    %c0_i32_0 = arith.constant 0 : i32
    %c0_i32_1 = arith.constant 0 : i32
    return %c0_i32, %c0_i32_0 : i32, i32
  }
  func.func @transform_4(%arg0: i32, %arg1: i32) -> (i32, i32) {
    %c0_i32 = arith.constant 0 : i32
    %c0_i32_0 = arith.constant 0 : i32
    %c0_i32_1 = arith.constant 0 : i32
    return %c0_i32, %c0_i32_0 : i32, i32
  }
  func.func @transform_5(%arg0: i32, %arg1: i32) -> (i32, i32) {
    %c0_i32 = arith.constant 0 : i32
    %c0_i32_0 = arith.constant 0 : i32
    %c0_i32_1 = arith.constant 0 : i32
    return %c0_i32, %c0_i32_0 : i32, i32
  }
  func.func @transform_6(%arg0: i32, %arg1: i32) -> (i32, i32) {
    %c0_i32 = arith.constant 0 : i32
    %c0_i32_0 = arith.constant 0 : i32
    %c0_i32_1 = arith.constant 0 : i32
    return %c0_i32, %c0_i32_0 : i32, i32
  }
  func.func @transform_7(%arg0: i32, %arg1: i32) -> (i32, i32) {
    %c0_i32 = arith.constant 0 : i32
    %c0_i32_0 = arith.constant 0 : i32
    %c0_i32_1 = arith.constant 0 : i32
    return %c0_i32, %c0_i32_0 : i32, i32
  }
  func.func @transform_8(%arg0: i32, %arg1: i32) -> (i32, i32, i32) {
    %c0_i32 = arith.constant 0 : i32
    %c0_i32_0 = arith.constant 0 : i32
    %c0_i32_1 = arith.constant 0 : i32
    return %arg1, %c0_i32, %c0_i32_0 : i32, i32, i32
  }
  func.func @transform_9(%arg0: i32, %arg1: i32) -> (i32, i32, i32) {
    %c0_i32 = arith.constant 0 : i32
    %c0_i32_0 = arith.constant 0 : i32
    %c0_i32_1 = arith.constant 0 : i32
    return %arg1, %c0_i32, %c0_i32_0 : i32, i32, i32
  }
  func.func @transform_10(%arg0: i32, %arg1: i32) -> (i32, i32, i32) {
    %c0_i32 = arith.constant 0 : i32
    %c0_i32_0 = arith.constant 0 : i32
    %c0_i32_1 = arith.constant 0 : i32
    return %arg1, %c0_i32, %c0_i32_0 : i32, i32, i32
  }
  func.func @transform_11(%arg0: i32, %arg1: i32) -> (i32, i32, i32) {
    %c0_i32 = arith.constant 0 : i32
    %c0_i32_0 = arith.constant 0 : i32
    %c0_i32_1 = arith.constant 0 : i32
    return %arg1, %c0_i32, %c0_i32_0 : i32, i32, i32
  }
  func.func @transform_12(%arg0: i32, %arg1: i32) -> (i32, i32, i32) {
    %c0_i32 = arith.constant 0 : i32
    %c0_i32_0 = arith.constant 0 : i32
    %c0_i32_1 = arith.constant 0 : i32
    return %arg1, %c0_i32, %c0_i32_0 : i32, i32, i32
  }
  func.func @transform_13(%arg0: i32, %arg1: i32) -> (i32, i32, i32) {
    %c0_i32 = arith.constant 0 : i32
    %c0_i32_0 = arith.constant 0 : i32
    %c0_i32_1 = arith.constant 0 : i32
    return %arg1, %c0_i32, %c0_i32_0 : i32, i32, i32
  }
  func.func @transform_14(%arg0: i32, %arg1: i32) -> (i32, i32, i32) {
    %c0_i32 = arith.constant 0 : i32
    %c0_i32_0 = arith.constant 0 : i32
    %c0_i32_1 = arith.constant 0 : i32
    return %arg1, %c0_i32, %c0_i32_0 : i32, i32, i32
  }
  func.func @transform_15(%arg0: i32, %arg1: i32) -> (i32, i32, i32) {
    %c0_i32 = arith.constant 0 : i32
    %c0_i32_0 = arith.constant 0 : i32
    %c0_i32_1 = arith.constant 0 : i32
    return %arg1, %c0_i32, %c0_i32_0 : i32, i32, i32
  }
  func.func @transform_16(%arg0: i32, %arg1: i32) -> (i32, i32, i32) {
    %c0_i32 = arith.constant 0 : i32
    %c0_i32_0 = arith.constant 0 : i32
    %c0_i32_1 = arith.constant 0 : i32
    return %arg1, %c0_i32, %c0_i32_0 : i32, i32, i32
  }
  func.func @transform_17(%arg0: i32, %arg1: i32) -> (i32, i32, i32) {
    %c0_i32 = arith.constant 0 : i32
    %c0_i32_0 = arith.constant 0 : i32
    %c0_i32_1 = arith.constant 0 : i32
    return %arg1, %c0_i32, %c0_i32_0 : i32, i32, i32
  }
  func.func @transform_18(%arg0: i32, %arg1: i32) -> (i32, i32, i32) {
    %c0_i32 = arith.constant 0 : i32
    %c0_i32_0 = arith.constant 0 : i32
    %c0_i32_1 = arith.constant 0 : i32
    return %arg1, %c0_i32, %c0_i32_0 : i32, i32, i32
  }
  func.func @transform_19(%arg0: i32, %arg1: i32) -> (i32, i32, i32) {
    %c0_i32 = arith.constant 0 : i32
    %c0_i32_0 = arith.constant 0 : i32
    %c0_i32_1 = arith.constant 0 : i32
    return %arg1, %c0_i32, %c0_i32_0 : i32, i32, i32
  }
  func.func @transform_20(%arg0: i32, %arg1: i32) -> (i32, i32) {
    %c0_i32 = arith.constant 0 : i32
    %c0_i32_0 = arith.constant 0 : i32
    %c0_i32_1 = arith.constant 0 : i32
    return %c0_i32, %c0_i32_0 : i32, i32
  }
  func.func @transform_21(%arg0: i32, %arg1: i32) -> (i32, i32) {
    %c0_i32 = arith.constant 0 : i32
    %c0_i32_0 = arith.constant 0 : i32
    %c0_i32_1 = arith.constant 0 : i32
    return %c0_i32, %c0_i32_0 : i32, i32
  }
  func.func @transform_22(%arg0: i32, %arg1: i32) -> (i32, i32) {
    %c0_i32 = arith.constant 0 : i32
    %c0_i32_0 = arith.constant 0 : i32
    %c0_i32_1 = arith.constant 0 : i32
    return %c0_i32, %c0_i32_0 : i32, i32
  }
  func.func @transform_23(%arg0: i32, %arg1: i32) -> (i32, i32) {
    %c0_i32 = arith.constant 0 : i32
    %c0_i32_0 = arith.constant 0 : i32
    return %arg0, %c0_i32 : i32, i32
  }
}

</mosaic_0001>

<bundles_post_ra>
// kernel: tpu_custom_call.1
= control target key start
LH: loop header
LB: loop body
LE: loop exit
PB: predicated region body
PF: predicated region fallthrough
CT: control target
= control target key end

     0   :  { %s7625_s0 = inlined_call_operand.hbm [shape: f32[2,16,48], index: 0, kind: input, shape index: {}]   ;;  %s7626_s1 = inlined_call_operand.hbm [shape: bf16[48,32], index: 1, kind: input, shape index: {}]   ;;  %s7627_s2 = inlined_call_operand.hbm [shape: f32[1,32], index: 2, kind: input, shape index: {}]   ;;  %s7628_s3 = inlined_call_operand.hbm [shape: f32[1,32], index: 3, kind: input, shape index: {}]   ;;  %s7629_s4 = inlined_call_operand.hbm [shape: f32[1,32], index: 4, kind: input, shape index: {}]   ;;  %s7630_s5 = inlined_call_operand.hbm [shape: f32[16,32], index: 5, kind: input, shape index: {}]   ;;  %s7631_s6 = inlined_call_operand.hbm [shape: f32[1,32], index: 6, kind: input, shape index: {}]   ;;  %s7632_s7 = inlined_call_operand.hbm [shape: f32[1,32], index: 7, kind: input, shape index: {}]   ;;  %s7633_s8 = inlined_call_operand.hbm [shape: f32[2,1,32], index: 8, kind: input, shape index: {}]   ;;  %s7634_s9 = inlined_call_operand.hbm [shape: f32[2,1,32], index: 9, kind: input, shape index: {}]   ;;  %s7635_s10 = inlined_call_operand.hbm [shape: bf16[2,32,96], index: 10, kind: input, shape index: {}]   ;;  %s7636_s11 = inlined_call_operand.hbm [shape: f32[2,1,96], index: 11, kind: input, shape index: {}]   ;;  %s7637_s12 = inlined_call_operand.hbm [shape: bf16[2,32,32], index: 12, kind: input, shape index: {}]   ;;  %s7638_s13 = inlined_call_operand.hbm [shape: f32[2,1,32], index: 13, kind: input, shape index: {}]   ;;  %s7639_s14 = inlined_call_operand.hbm [shape: f32[2,1,32], index: 14, kind: input, shape index: {}]   ;;  %s7640_s15 = inlined_call_operand.hbm [shape: f32[2,1,32], index: 15, kind: input, shape index: {}]   ;;  %s7641_s16 = inlined_call_operand.hbm [shape: bf16[2,32,128], index: 16, kind: input, shape index: {}]   ;;  %s7642_s17 = inlined_call_operand.hbm [shape: f32[2,1,128], index: 17, kind: input, shape index: {}]   ;;  %s7643_s18 = inlined_call_operand.hbm [shape: bf16[2,128,32], index: 18, kind: input, shape index: {}]   ;;  %s7644_s19 = inlined_call_operand.hbm [shape: f32[2,1,32], index: 19, kind: input, shape index: {}]   ;;  %s7645_s20 = inlined_call_operand.hbm [shape: f32[1,32], index: 20, kind: input, shape index: {}]   ;;  %s7646_s21 = inlined_call_operand.hbm [shape: f32[1,32], index: 21, kind: input, shape index: {}]   ;;  %s7647_s22 = inlined_call_operand.hbm [shape: bf16[32,16], index: 22, kind: input, shape index: {}]   ;;  %s7648_s23 = inlined_call_operand.hbm [shape: f32[2,16], index: 23, kind: output, shape index: {}]  }
   0x1   :  { %7702 = sst [smem:[#allocation53_spill]] %s7625_s0 }
   0x2   :  { %7703 = sst [smem:[#allocation54_spill]] %s7626_s1 }
   0x3   :  { %7704 = sst [smem:[#allocation55_spill]] %s7627_s2 }
   0x4   :  { %7705 = sst [smem:[#allocation56_spill]] %s7628_s3 }
   0x5   :  { %7706 = sst [smem:[#allocation57_spill]] %s7629_s4 }
   0x6   :  { %7707 = sst [smem:[#allocation58_spill]] %s7630_s5 }
   0x7   :  { %7708 = sst [smem:[#allocation59_spill]] %s7631_s6 }
   0x8   :  { %7709 = sst [smem:[#allocation60_spill]] %s7632_s7 }
   0x9   :  { %7710 = sst [smem:[#allocation61_spill]] %s7633_s8 }
   0xa   :  { %7711 = sst [smem:[#allocation62_spill]] %s7634_s9 }
   0xb   :  { %7712 = sst [smem:[#allocation63_spill]] %s7635_s10 }
   0xc   :  { %7713 = sst [smem:[#allocation64_spill]] %s7636_s11 }
   0xd   :  { %7714 = sst [smem:[#allocation65_spill]] %s7637_s12 }
   0xe   :  { %7715 = sst [smem:[#allocation66_spill]] %s7638_s13 }
   0xf   :  { %7716 = sst [smem:[#allocation67_spill]] %s7639_s14 }
  0x10   :  { %7717 = sst [smem:[#allocation68_spill]] %s7640_s15 }
  0x11   :  { %7718 = sst [smem:[#allocation69_spill]] %s7641_s16 }
  0x12   :  { %7719 = sst [smem:[#allocation70_spill]] %s7642_s17 }
  0x13   :  { %7720 = sst [smem:[#allocation71_spill]] %s7643_s18 }
  0x14   :  { %7721 = sst [smem:[#allocation72_spill]] %s7644_s19 }
  0x15   :  { %7722 = sst [smem:[#allocation73_spill]] %s7645_s20 }
  0x16   :  { %7723 = sst [smem:[#allocation74_spill]] %s7646_s21 }
  0x17   :  { %7724 = sst [smem:[#allocation75_spill]] %s7647_s22 }
  0x18   :  { %7725 = sst [smem:[#allocation76_spill]] %s7648_s23 }
  0x19   :  { %28 = vsyncpa [#allocation4], 0 }
  0x1a   :  { %29 = vsyncpa [#allocation7], 0 }
  0x1b   :  { %30 = vsyncpa [#allocation10], 0 }
  0x1c   :  { %31 = vsyncpa [#allocation13], 0 }
  0x1d   :  { %32 = vsyncpa [#allocation16], 0 }
  0x1e   :  { %33 = vsyncpa [#allocation5], 0  ;;  %s6081_s4 = smov 0   ;;  %s6083_s30 = smov 0  }
  0x1f   :  { %s6085_s24 = smov 0   ;;  %s6087_s25 = smov 0  }
  0x20   :  { %s6089_s5 = smov 0   ;;  %s6091_s1 = smov 0  }
  0x21 LB: > { %7726 = sst [smem:[#allocation43_spill]] %s5903_s30  ;;  %s6112_s26 = sadd.s32 4294967295, %s5919_s1   ;;  %s5919_s1 = sphi %s6091_s1, %s39_s1   ;;  %s5915_s5 = sphi %s6089_s5, %s7825_s5   ;;  %s5911_s25 = sphi %s6087_s25, %s7824_s25   ;;  %s5907_s24 = sphi %s6085_s24, %s7823_s24   ;;  %s5903_s30 = sphi %s6083_s30, %s7822_s30   ;;  %s5899_s4 = sphi %s6081_s4, %s7821_s4  }
  0x22   : > { %7727 = sst [smem:[#allocation44_spill]] %s5907_s24  ;;  %p4156_p0 = scmp.ge.s32.totalorder %s5919_s1, 1 }
  0x23   : > { %7728 = sst [smem:[#allocation45_spill]] %s5911_s25  ;;  %p7660_p1 = scmp.eq.s32.totalorder %s6112_s26, 0 }
  0x24   : > { %7729 = sst [smem:[#allocation46_spill]] %s5915_s5  ;;  %p630_p2 = scmp.lt.s32.totalorder %s5919_s1, 3 }
  0x25   : > { %7730 = sst [smem:[#allocation47_spill]] %s5919_s1  ;;  %s5921_s6 = smov [#allocation3]  }
  0x26   : > { %7731 = sst [smem:[#allocation48_spill]] %s6112_s26  ;;  %p6117_p3 = pnand %p4156_p0, %p630_p2 }
  0x27   : > { %s646_s27 = sshll.u32 %s5921_s6, 4  ;;  %s7735_s3 = sld [smem:[#allocation53_spill]]  ;;  %s647_s27 = int_to_ptr.vmem [resolvable:$true] %s646_s27 }
  0x28   : > { %s7732_s2 = scalar_select %p6117_p3, 1, 0 }
  0x29   : > { %p4711_p4 = pneg %p6117_p3 }
  0x2a   : > { %7733 = sst [smem:[#allocation49_spill]] %s7732_s2 }
  0x2b   : > { %p6125_p5 = pnand %p4711_p4, %p7660_p1 }
  0x2d   : > { %s7734_s7 = scalar_select %p6125_p5, 1, 0 }
  0x2e   : > { %s5139_s0 = scalar_lea.hbm %s7735_s3, 512  ;;  %p6137_p7 = pneg %p6125_p5 }
  0x2f   : > { %p5140_p6 = scmp.ne.s32.totalorder %s7735_s3, %s5139_s0  ;;  %p5146_p10 = scmp.lt.u32.totalorder %s5139_s0, %s7735_s3 }
  0x30   : > { %s7736_s6 = scalar_select %p6137_p7, 1, 0 }
  0x31   : > { %p5142_p8 = pnand %p6137_p7, %p5140_p6 }
  0x33   : > { %p5143_p9 = pneg %p5142_p8 }
  0x35   : > { %p5148_p11 = pnand %p5146_p10, %p5143_p9 }
  0x37   : > { %5151 = shalt.err (!%p5148_p11)
}
  0x38   : > { %s5152_s28 = scalar_lea.vmem %s647_s27, 512  ;;  %p5160_p2 = scmp.lt.s32.totalorder %s647_s27, %s647_s27 }
  0x39   : > { %p5153_p12 = scmp.ne.s32.totalorder %s647_s27, %s5152_s28  ;;  %p5161_p4 = scmp.lt.s32.totalorder %s5152_s28, %s5152_s28 }
  0x3b   : > { %p5155_p13 = pnand %p5153_p12, %p6137_p7  ;;  %p5162_p1 = por %p5161_p4, %p5160_p2 }
  0x3d   : > { %p5156_p0 = pneg %p5155_p13 }
  0x3f   : > { %p5163_p3 = pnand %p5162_p1, %p5156_p0 }
  0x41   : > { %5166 = shalt.err (!%p5163_p3)
}
  0x42   : > { %s7663_s23 = smov 128   ;;  %s7664_s19 = smov 8  }
  0x43   : > { %4714 = dma.hbm_to_vmem [thread:$0]  (!%p6125_p5), %s7735_s3, 512, %s647_s27, [#allocation4], %s7663_s23, %s7663_s23, %s7664_s19  }
  0x44   : > { %s48_s29 = sadd.s32 1, %s5915_s5  ;;  %s231_s0 = sadd.s32 1, %s5907_s24 }
  0x45   : > { %p49_p1 = scmp.ge.s32.totalorder %s48_s29, 2  ;;  %p238_p3 = scmp.ne.s32.totalorder %s5907_s24, %s5903_s30 }
  0x46   : > { %p239_p6 = scmp.eq.s32.totalorder %s5919_s1, 0  ;;  %p244_p9 = scmp.ne.s32.totalorder %s5903_s30, %s5899_s4 }
  0x47   : > { %s7827_s29 = smov (%p49_p1, %s48_s29), 0  ;;  %p4793_p10 = scmp.lt.s32.totalorder %s5919_s1, 2 }
  0x48   : > { %7737 = sst [smem:[#allocation50_spill]] %s7827_s29  ;;  %p6163_p8 = por %p239_p6, %p238_p3 }
  0x49   : > { %s228_s22 = ssub.s32 %s5915_s5, %s7827_s29  ;;  %p7739_p12 = scmp.eq.s32.totalorder %s6112_s26, 0 }
  0x4a   : > { %p229_p11 = scmp.eq.s32.totalorder %s228_s22, 0  ;;  %s776_s25 = sand.u32 1, %s5919_s1  }
  0x4b   : > { %p6174_p13 = por %p7739_p12, %p244_p9  ;;  %s6180_s2 = sand.u32 1, %s5907_s24  }
  0x4c   : > { %s6183_s23 = scalar_select %p229_p11, %s5907_s24, %s231_s0  }
  0x4d   : > { %s7740_s27 = scalar_select %p6174_p13, 1, 0 }
  0x4e   : > { %7742 = sst [smem:[#allocation52_spill]] %s6183_s23  ;;  %s6186_s19 = sshll.u32 %s5915_s5, 4 }
  0x4f   : > { %7741 = sst [smem:[#allocation51_spill]] %s7740_s27  ;;  %s779_s4 = scalar_lea.vmem [#allocation17], %s6180_s2 }
  0x50   : > { %s786_s3 = sshll.u32 %s779_s4, 4  ;;  %s7743_s8 = sld [smem:[#allocation61_spill]]  ;;  %s6195_s3 = int_to_ptr.vmem [resolvable:$true] %s786_s3 }
  0x51   : > { %p6199_p0 = pnand %p4793_p10, %p6163_p8  ;;  %s7745_s9 = sld [smem:[#allocation62_spill]] }
  0x52   : > { %s796_s29 = scalar_lea.vmem [#allocation18], %s6180_s2  ;;  %s6212_s1 = scalar_lea.sflag [#allocation4], %s776_s25 }
  0x53   : > { %s7744_s0 = scalar_select %p6199_p0, 1, 0 }
  0x54   : > { %s803_s22 = sshll.u32 %s796_s29, 4  ;;  %p6218_p4 = pneg %p6199_p0  ;;  %s6210_s22 = int_to_ptr.vmem [resolvable:$true] %s803_s22 }
  0x56   : > { %s6193_s30 = scalar_lea.hbm %s7743_s8, %s6186_s19  ;;  %s5172_s26 = scalar_lea.hbm %s7743_s8, 32 }
  0x57   : > { %s6207_s4 = scalar_lea.hbm %s7745_s9, %s6186_s19  ;;  %s5167_s27 = scalar_lea.hbm %s6193_s30, 16 }
  0x58   : > { %p5168_p2 = scmp.ne.s32.totalorder %s6193_s30, %s5167_s27  ;;  %p5173_p6 = scmp.lt.u32.totalorder %s6193_s30, %s7743_s8 }
  0x59   : > { %s7746_s28 = scalar_select %p6218_p4, 1, 0 }
  0x5a   : > { %p5170_p1 = pnand %p6218_p4, %p5168_p2  ;;  %p5174_p8 = scmp.lt.u32.totalorder %s5172_s26, %s5167_s27 }
  0x5b   : > { %p5176_p10 = scmp.lt.u32.totalorder %s5167_s27, %s6193_s30 }
  0x5c   : > { %p5171_p3 = pneg %p5170_p1  ;;  %p5175_p9 = por %p5174_p8, %p5173_p6 }
  0x5e   : > { %p5177_p11 = por %p5176_p10, %p5175_p9 }
  0x60   : > { %p5178_p12 = pnand %p5177_p11, %p5171_p3 }
  0x62   : > { %5181 = shalt.err (!%p5178_p12)
}
  0x63   : > { %s5182_s25 = scalar_lea.vmem %s6195_s3, 16  ;;  %s5924_s24 = smov [#allocation17]  }
  0x64   : > { %p5183_p2 = scmp.ne.s32.totalorder %s6195_s3, %s5182_s25  ;;  %s5187_s23 = sshll.u32 %s5924_s24, 4  ;;  %s5188_s23 = int_to_ptr.vmem [resolvable:$false] %s5187_s23 }
  0x65   : > { %s5189_s21 = scalar_lea.vmem %s5188_s23, 32  ;;  %p5190_p5 = scmp.lt.s32.totalorder %s6195_s3, %s5188_s23 }
  0x66   : > { %p5185_p1 = pnand %p5183_p2, %p6218_p4  ;;  %p5191_p7 = scmp.lt.s32.totalorder %s5189_s21, %s5182_s25 }
  0x68   : > { %p5186_p13 = pneg %p5185_p1  ;;  %p5192_p6 = por %p5191_p7, %p5190_p5 }
  0x6a   : > { %p5193_p8 = pnand %p5192_p6, %p5186_p13 }
  0x6c   : > { %5196 = shalt.err (!%p5193_p8)
}
  0x6d   : > { %4748 = dma.hbm_to_vmem [thread:$0]  (!%p6199_p0), %s6193_s30, 16, %s6195_s3, %s6212_s1  }
  0x6e   : > { %s5197_s26 = scalar_lea.hbm %s6207_s4, 16  ;;  %s5202_s25 = scalar_lea.hbm %s7745_s9, 32 }
  0x6f   : > { %p5198_p3 = scmp.ne.s32.totalorder %s6207_s4, %s5197_s26  ;;  %p5203_p5 = scmp.lt.u32.totalorder %s6207_s4, %s7745_s9 }
  0x70   : > { %p5204_p7 = scmp.lt.u32.totalorder %s5202_s25, %s5197_s26  ;;  %p5206_p11 = scmp.lt.u32.totalorder %s5197_s26, %s6207_s4 }
  0x71   : > { %p5200_p9 = pnand %p5198_p3, %p6218_p4 }
  0x72   : > { %p5205_p13 = por %p5204_p7, %p5203_p5 }
  0x73   : > { %p5201_p10 = pneg %p5200_p9 }
  0x74   : > { %p5207_p12 = por %p5206_p11, %p5205_p13 }
  0x76   : > { %p5208_p2 = pnand %p5207_p12, %p5201_p10 }
  0x78   : > { %5211 = shalt.err (!%p5208_p2)
}
  0x79   : > { %s5212_s30 = scalar_lea.vmem %s6210_s22, 16  ;;  %s5925_s3 = smov [#allocation18]  }
  0x7a   : > { %p5213_p1 = scmp.ne.s32.totalorder %s6210_s22, %s5212_s30  ;;  %s5217_s21 = sshll.u32 %s5925_s3, 4  ;;  %s5218_s21 = int_to_ptr.vmem [resolvable:$false] %s5217_s21 }
  0x7b   : > { %s5219_s27 = scalar_lea.vmem %s5218_s21, 32  ;;  %p5220_p3 = scmp.lt.s32.totalorder %s6210_s22, %s5218_s21 }
  0x7c   : > { %p5215_p6 = pnand %p5213_p1, %p6218_p4  ;;  %p5221_p9 = scmp.lt.s32.totalorder %s5219_s27, %s5212_s30 }
  0x7e   : > { %p5216_p8 = pneg %p5215_p6  ;;  %p5222_p5 = por %p5221_p9, %p5220_p3 }
  0x80   : > { %p5223_p7 = pnand %p5222_p5, %p5216_p8 }
  0x82   : > { %5226 = shalt.err (!%p5223_p7)
}
  0x83   : > { %4751 = dma.hbm_to_vmem [thread:$0]  (!%p6199_p0), %s6207_s4, 16, %s6210_s22, %s6212_s1  }
  0x84   : > { %s6265_s26 = sshll.u32 %s6180_s2, 4  ;;  %s6268_s29 = sshll.u32 %s5915_s5, 8 }
  0x85   : > { %s7747_s10 = sld [smem:[#allocation63_spill]]  ;;  %s814_s30 = scalar_lea.vmem [#allocation19], %s6265_s26 }
  0x86   : > { %s821_s3 = sshll.u32 %s814_s30, 4  ;;  %s7748_s11 = sld [smem:[#allocation64_spill]]  ;;  %s6277_s3 = int_to_ptr.vmem [resolvable:$true] %s821_s3 }
  0x8b   : > { %s6274_s23 = scalar_lea.hbm %s7747_s10, %s6268_s29  ;;  %s5232_s8 = scalar_lea.hbm %s7747_s10, 512 }
  0x8c   : > { %s6283_s21 = scalar_lea.hbm %s7748_s11, %s6186_s19  ;;  %s5227_s27 = scalar_lea.hbm %s6274_s23, 256 }
  0x8d   : > { %p5228_p10 = scmp.ne.s32.totalorder %s6274_s23, %s5227_s27  ;;  %p5233_p12 = scmp.lt.u32.totalorder %s6274_s23, %s7747_s10 }
  0x8e   : > { %p5234_p2 = scmp.lt.u32.totalorder %s5232_s8, %s5227_s27  ;;  %p5236_p6 = scmp.lt.u32.totalorder %s5227_s27, %s6274_s23 }
  0x8f   : > { %p5230_p13 = pnand %p5228_p10, %p6218_p4 }
  0x90   : > { %p5235_p1 = por %p5234_p2, %p5233_p12 }
  0x91   : > { %p5231_p11 = pneg %p5230_p13 }
  0x92   : > { %p5237_p8 = por %p5236_p6, %p5235_p1 }
  0x94   : > { %p5238_p3 = pnand %p5237_p8, %p5231_p11 }
  0x96   : > { %5241 = shalt.err (!%p5238_p3)
}
  0x97   : > { %s5242_s30 = scalar_lea.vmem %s6277_s3, 256  ;;  %s5926_s4 = smov [#allocation19]  }
  0x98   : > { %p5243_p9 = scmp.ne.s32.totalorder %s6277_s3, %s5242_s30  ;;  %s5247_s22 = sshll.u32 %s5926_s4, 4  ;;  %s5248_s22 = int_to_ptr.vmem [resolvable:$false] %s5247_s22 }
  0x99   : > { %s5249_s9 = scalar_lea.vmem %s5248_s22, 512  ;;  %p5250_p10 = scmp.lt.s32.totalorder %s6277_s3, %s5248_s22 }
  0x9a   : > { %p5245_p5 = pnand %p5243_p9, %p6218_p4  ;;  %p5251_p13 = scmp.lt.s32.totalorder %s5249_s9, %s5242_s30 }
  0x9c   : > { %p5246_p7 = pneg %p5245_p5  ;;  %p5252_p12 = por %p5251_p13, %p5250_p10 }
  0x9e   : > { %p5253_p2 = pnand %p5252_p12, %p5246_p7 }
  0xa0   : > { %5256 = shalt.err (!%p5253_p2)
}
  0xa1   : > { %s7693_s8 = smov 64   ;;  %s7695_s20 = smov 4  }
  0xa2   : > { %4754 = dma.hbm_to_vmem [thread:$0]  (!%p6199_p0), %s6274_s23, 256, %s6277_s3, %s6212_s1, %s7693_s8, %s7693_s8, %s7695_s20  }
  0xa3   : > { %s834_s27 = scalar_lea.vmem [#allocation20], %s6180_s2  ;;  %s7749_s12 = sld [smem:[#allocation65_spill]] }
  0xa4   : > { %s841_s25 = sshll.u32 %s834_s27, 4  ;;  %s5257_s22 = scalar_lea.hbm %s6283_s21, 16  ;;  %s842_s25 = int_to_ptr.vmem [resolvable:$true] %s841_s25 }
  0xa5   : > { %p5258_p11 = scmp.ne.s32.totalorder %s6283_s21, %s5257_s22  ;;  %s5262_s18 = scalar_lea.hbm %s7748_s11, 32 }
  0xa6   : > { %p5263_p8 = scmp.lt.u32.totalorder %s6283_s21, %s7748_s11  ;;  %p5264_p3 = scmp.lt.u32.totalorder %s5262_s18, %s5257_s22 }
  0xa7   : > { %p5260_p1 = pnand %p5258_p11, %p6218_p4  ;;  %p5266_p5 = scmp.lt.u32.totalorder %s5257_s22, %s6283_s21 }
  0xa8   : > { %p5265_p9 = por %p5264_p3, %p5263_p8 }
  0xa9   : > { %s6315_s4 = scalar_lea.hbm %s7749_s12, %s6268_s29  ;;  %p5261_p6 = pneg %p5260_p1 }
  0xaa   : > { %p5267_p7 = por %p5266_p5, %p5265_p9 }
  0xac   : > { %p5268_p10 = pnand %p5267_p7, %p5261_p6 }
  0xae   : > { %5271 = shalt.err (!%p5268_p10)
}
  0xaf   : > { %s5272_s23 = scalar_lea.vmem %s842_s25, 16  ;;  %s5929_s3 = smov [#allocation20]  }
  0xb0   : > { %p5273_p13 = scmp.ne.s32.totalorder %s842_s25, %s5272_s23  ;;  %s5277_s27 = sshll.u32 %s5929_s3, 4  ;;  %s5278_s27 = int_to_ptr.vmem [resolvable:$false] %s5277_s27 }
  0xb1   : > { %s5279_s10 = scalar_lea.vmem %s5278_s27, 32  ;;  %p5280_p11 = scmp.lt.s32.totalorder %s842_s25, %s5278_s27 }
  0xb2   : > { %p5275_p12 = pnand %p5273_p13, %p6218_p4  ;;  %p5281_p1 = scmp.lt.s32.totalorder %s5279_s10, %s5272_s23 }
  0xb4   : > { %p5276_p2 = pneg %p5275_p12  ;;  %p5282_p0 = por %p5281_p1, %p5280_p11 }
  0xb6   : > { %p5283_p3 = pnand %p5282_p0, %p5276_p2 }
  0xb8   : > { %5286 = shalt.err (!%p5283_p3)
}
  0xb9   : > { %p7750_p8 = scmp.ne.s32.totalorder %s7744_s0, 0  ;;  %s852_s17 = scalar_lea.vmem [#allocation21], %s6265_s26 }
  0xba   : > { %s859_s18 = sshll.u32 %s852_s17, 4  ;;  %s7751_s13 = sld [smem:[#allocation66_spill]]  ;;  %s6336_s18 = int_to_ptr.vmem [resolvable:$true] %s859_s18 }
  0xbb   : > { %4757 = dma.hbm_to_vmem [thread:$0]  (!%p7750_p8), %s6283_s21, 16, %s842_s25, %s6212_s1  }
  0xbc   : > { %s5287_s22 = scalar_lea.hbm %s6315_s4, 256  ;;  %s5292_s3 = scalar_lea.hbm %s7749_s12, 512 }
  0xbd   : > { %p5288_p0 = scmp.ne.s32.totalorder %s6315_s4, %s5287_s22  ;;  %p5293_p5 = scmp.lt.u32.totalorder %s6315_s4, %s7749_s12 }
  0xbe   : > { %p5294_p7 = scmp.lt.u32.totalorder %s5292_s3, %s5287_s22  ;;  %p5296_p13 = scmp.lt.u32.totalorder %s5287_s22, %s6315_s4 }
  0xbf   : > { %p5290_p6 = pnand %p5288_p0, %p6218_p4 }
  0xc0   : > { %s6342_s30 = scalar_lea.hbm %s7751_s13, %s6186_s19  ;;  %p5295_p10 = por %p5294_p7, %p5293_p5 }
  0xc1   : > { %p5291_p9 = pneg %p5290_p6 }
  0xc2   : > { %p5297_p12 = por %p5296_p13, %p5295_p10 }
  0xc4   : > { %p5298_p2 = pnand %p5297_p12, %p5291_p9 }
  0xc6   : > { %5301 = shalt.err (!%p5298_p2)
}
  0xc7   : > { %s5302_s25 = scalar_lea.vmem %s6336_s18, 256  ;;  %s5930_s10 = smov [#allocation21]  }
  0xc8   : > { %p5303_p11 = scmp.ne.s32.totalorder %s6336_s18, %s5302_s25  ;;  %s5307_s17 = sshll.u32 %s5930_s10, 4  ;;  %s5308_s17 = int_to_ptr.vmem [resolvable:$false] %s5307_s17 }
  0xc9   : > { %s5309_s5 = scalar_lea.vmem %s5308_s17, 512  ;;  %p5310_p0 = scmp.lt.s32.totalorder %s6336_s18, %s5308_s17 }
  0xca   : > { %p5305_p1 = pnand %p5303_p11, %p6218_p4  ;;  %p5311_p6 = scmp.lt.s32.totalorder %s5309_s5, %s5302_s25 }
  0xcc   : > { %p5306_p3 = pneg %p5305_p1  ;;  %p5312_p5 = por %p5311_p6, %p5310_p0 }
  0xce   : > { %p5313_p7 = pnand %p5312_p5, %p5306_p3 }
  0xd0   : > { %5316 = shalt.err (!%p5313_p7)
}
  0xd1   : > { %4760 = dma.hbm_to_vmem [thread:$0]  (!%p7750_p8), %s6315_s4, 256, %s6336_s18, %s6212_s1, %s7693_s8, %s7693_s8, %s7695_s20  }
  0xd2   : > { %s872_s24 = scalar_lea.vmem [#allocation22], %s6180_s2  ;;  %s7752_s14 = sld [smem:[#allocation67_spill]] }
  0xd3   : > { %s879_s22 = sshll.u32 %s872_s24, 4  ;;  %s5317_s27 = scalar_lea.hbm %s6342_s30, 16  ;;  %s880_s22 = int_to_ptr.vmem [resolvable:$true] %s879_s22 }
  0xd4   : > { %p5318_p9 = scmp.ne.s32.totalorder %s6342_s30, %s5317_s27  ;;  %s5322_s10 = scalar_lea.hbm %s7751_s13, 32 }
  0xd5   : > { %p5323_p12 = scmp.lt.u32.totalorder %s6342_s30, %s7751_s13  ;;  %p5324_p2 = scmp.lt.u32.totalorder %s5322_s10, %s5317_s27 }
  0xd6   : > { %p5320_p10 = pnand %p5318_p9, %p6218_p4  ;;  %p5326_p1 = scmp.lt.u32.totalorder %s5317_s27, %s6342_s30 }
  0xd7   : > { %p5325_p11 = por %p5324_p2, %p5323_p12 }
  0xd8   : > { %s6374_s3 = scalar_lea.hbm %s7752_s14, %s6186_s19  ;;  %p5321_p13 = pneg %p5320_p10 }
  0xd9   : > { %p5327_p3 = por %p5326_p1, %p5325_p11 }
  0xdb   : > { %p5328_p0 = pnand %p5327_p3, %p5321_p13 }
  0xdd   : > { %5331 = shalt.err (!%p5328_p0)
}
  0xde   : > { %s5332_s4 = scalar_lea.vmem %s880_s22, 16  ;;  %s5931_s18 = smov [#allocation22]  }
  0xdf   : > { %p5333_p6 = scmp.ne.s32.totalorder %s880_s22, %s5332_s4  ;;  %s5337_s24 = sshll.u32 %s5931_s18, 4  ;;  %s5338_s24 = int_to_ptr.vmem [resolvable:$false] %s5337_s24 }
  0xe0   : > { %s5339_s9 = scalar_lea.vmem %s5338_s24, 32  ;;  %p5340_p9 = scmp.lt.s32.totalorder %s880_s22, %s5338_s24 }
  0xe1   : > { %p5335_p5 = pnand %p5333_p6, %p6218_p4  ;;  %p5341_p10 = scmp.lt.s32.totalorder %s5339_s9, %s5332_s4 }
  0xe3   : > { %p5336_p7 = pneg %p5335_p5  ;;  %p5342_p8 = por %p5341_p10, %p5340_p9 }
  0xe5   : > { %p5343_p2 = pnand %p5342_p8, %p5336_p7 }
  0xe7   : > { %5346 = shalt.err (!%p5343_p2)
}
  0xe8   : > { %p7753_p12 = scmp.ne.s32.totalorder %s7744_s0, 0  ;;  %s889_s23 = scalar_lea.vmem [#allocation23], %s6180_s2 }
  0xe9   : > { %s896_s27 = sshll.u32 %s889_s23, 4  ;;  %s7754_s15 = sld [smem:[#allocation68_spill]]  ;;  %s897_s27 = int_to_ptr.vmem [resolvable:$true] %s896_s27 }
  0xea   : > { %4763 = dma.hbm_to_vmem [thread:$0]  (!%p7753_p12), %s6342_s30, 16, %s880_s22, %s6212_s1  }
  0xeb   : > { %s5347_s17 = scalar_lea.hbm %s6374_s3, 16  ;;  %s5352_s18 = scalar_lea.hbm %s7752_s14, 32 }
  0xec   : > { %p5348_p8 = scmp.ne.s32.totalorder %s6374_s3, %s5347_s17  ;;  %p5353_p1 = scmp.lt.u32.totalorder %s6374_s3, %s7752_s14 }
  0xed   : > { %p5354_p3 = scmp.lt.u32.totalorder %s5352_s18, %s5347_s17  ;;  %p5356_p6 = scmp.lt.u32.totalorder %s5347_s17, %s6374_s3 }
  0xee   : > { %p5350_p13 = pnand %p5348_p8, %p6218_p4 }
  0xef   : > { %s6399_s10 = scalar_lea.hbm %s7754_s15, %s6186_s19  ;;  %p5355_p0 = por %p5354_p3, %p5353_p1 }
  0xf0   : > { %p5351_p11 = pneg %p5350_p13 }
  0xf1   : > { %p5357_p5 = por %p5356_p6, %p5355_p0 }
  0xf3   : > { %p5358_p7 = pnand %p5357_p5, %p5351_p11 }
  0xf5   : > { %5361 = shalt.err (!%p5358_p7)
}
  0xf6   : > { %s5362_s30 = scalar_lea.vmem %s897_s27, 16  ;;  %s5932_s22 = smov [#allocation23]  }
  0xf7   : > { %p5363_p9 = scmp.ne.s32.totalorder %s897_s27, %s5362_s30  ;;  %s5367_s23 = sshll.u32 %s5932_s22, 4  ;;  %s5368_s23 = int_to_ptr.vmem [resolvable:$false] %s5367_s23 }
  0xf8   : > { %s5369_s21 = scalar_lea.vmem %s5368_s23, 32  ;;  %p5370_p8 = scmp.lt.s32.totalorder %s897_s27, %s5368_s23 }
  0xf9   : > { %p5365_p10 = pnand %p5363_p9, %p6218_p4  ;;  %p5371_p13 = scmp.lt.s32.totalorder %s5369_s21, %s5362_s30 }
  0xfb   : > { %p5366_p2 = pneg %p5365_p10  ;;  %p5372_p12 = por %p5371_p13, %p5370_p8 }
  0xfd   : > { %p5373_p1 = pnand %p5372_p12, %p5366_p2 }
  0xff   : > { %5376 = shalt.err (!%p5373_p1)
}
 0x100   : > { %p7755_p3 = scmp.ne.s32.totalorder %s7744_s0, 0  ;;  %s906_s25 = scalar_lea.vmem [#allocation24], %s6180_s2 }
 0x101   : > { %s913_s17 = sshll.u32 %s906_s25, 4  ;;  %s7756_s16 = sld [smem:[#allocation69_spill]]  ;;  %s914_s17 = int_to_ptr.vmem [resolvable:$true] %s913_s17 }
 0x102   : > { %4766 = dma.hbm_to_vmem [thread:$0]  (!%p7755_p3), %s6374_s3, 16, %s897_s27, %s6212_s1  }
 0x103   : > { %s5377_s24 = scalar_lea.hbm %s6399_s10, 16  ;;  %s5382_s22 = scalar_lea.hbm %s7754_s15, 32 }
 0x104   : > { %p5378_p12 = scmp.ne.s32.totalorder %s6399_s10, %s5377_s24  ;;  %p5383_p6 = scmp.lt.u32.totalorder %s6399_s10, %s7754_s15 }
 0x105   : > { %p5384_p5 = scmp.lt.u32.totalorder %s5382_s22, %s5377_s24  ;;  %p5386_p9 = scmp.lt.u32.totalorder %s5377_s24, %s6399_s10 }
 0x106   : > { %p5380_p11 = pnand %p5378_p12, %p6218_p4 }
 0x107   : > { %s6424_s18 = scalar_lea.hbm %s7756_s16, %s6268_s29  ;;  %p5385_p7 = por %p5384_p5, %p5383_p6 }
 0x108   : > { %p5381_p0 = pneg %p5380_p11 }
 0x109   : > { %p5387_p10 = por %p5386_p9, %p5385_p7 }
 0x10b   : > { %p5388_p2 = pnand %p5387_p10, %p5381_p0 }
 0x10d   : > { %5391 = shalt.err (!%p5388_p2)
}
 0x10e   : > { %s5392_s29 = scalar_lea.vmem %s914_s17, 16  ;;  %s5933_s3 = smov [#allocation24]  }
 0x10f   : > { %p5393_p8 = scmp.ne.s32.totalorder %s914_s17, %s5392_s29  ;;  %s5397_s27 = sshll.u32 %s5933_s3, 4  ;;  %s5398_s27 = int_to_ptr.vmem [resolvable:$false] %s5397_s27 }
 0x110   : > { %s5399_s25 = scalar_lea.vmem %s5398_s27, 32  ;;  %p5400_p12 = scmp.lt.s32.totalorder %s914_s17, %s5398_s27 }
 0x111   : > { %p5395_p13 = pnand %p5393_p8, %p6218_p4  ;;  %p5401_p11 = scmp.lt.s32.totalorder %s5399_s25, %s5392_s29 }
 0x113   : > { %p5396_p1 = pneg %p5395_p13  ;;  %p5402_p3 = por %p5401_p11, %p5400_p12 }
 0x115   : > { %p5403_p5 = pnand %p5402_p3, %p5396_p1 }
 0x117   : > { %5406 = shalt.err (!%p5403_p5)
}
 0x118   : > { %p7757_p6 = scmp.ne.s32.totalorder %s7744_s0, 0  ;;  %s924_s5 = scalar_lea.vmem [#allocation25], %s6265_s26 }
 0x119   : > { %s931_s4 = sshll.u32 %s924_s5, 4  ;;  %s5934_s24 = smov [#allocation6]   ;;  %s6445_s4 = int_to_ptr.vmem [resolvable:$true] %s931_s4 }
 0x11a   : > { %4769 = dma.hbm_to_vmem [thread:$0]  (!%p7757_p6), %s6399_s10, 16, %s914_s17, %s6212_s1  }
 0x11b   : > { %s6447_s9 = sshll.u32 %s5934_s24, 4  ;;  %s5407_s30 = scalar_lea.hbm %s6424_s18, 256  ;;  %s660_s9 = int_to_ptr.vmem [resolvable:$true] %s6447_s9 }
 0x11c   : > { %p5408_p3 = scmp.ne.s32.totalorder %s6424_s18, %s5407_s30  ;;  %s5412_s21 = scalar_lea.hbm %s7756_s16, 512 }
 0x11d   : > { %p5413_p9 = scmp.lt.u32.totalorder %s6424_s18, %s7756_s16  ;;  %p5414_p10 = scmp.lt.u32.totalorder %s5412_s21, %s5407_s30 }
 0x11e   : > { %p5410_p0 = pnand %p5408_p3, %p6218_p4  ;;  %p5416_p8 = scmp.lt.u32.totalorder %s5407_s30, %s6424_s18 }
 0x11f   : > { %p5415_p2 = por %p5414_p10, %p5413_p9 }
 0x120   : > { %p5411_p7 = pneg %p5410_p0 }
 0x121   : > { %p5417_p13 = por %p5416_p8, %p5415_p2 }
 0x123   : > { %p5418_p1 = pnand %p5417_p13, %p5411_p7 }
 0x125   : > { %5421 = shalt.err (!%p5418_p1)
}
 0x126   : > { %s5422_s26 = scalar_lea.vmem %s6445_s4, 256  ;;  %s5935_s10 = smov [#allocation25]  }
 0x127   : > { %p5423_p12 = scmp.ne.s32.totalorder %s6445_s4, %s5422_s26  ;;  %s5427_s17 = sshll.u32 %s5935_s10, 4  ;;  %s5428_s17 = int_to_ptr.vmem [resolvable:$false] %s5427_s17 }
 0x128   : > { %s5429_s27 = scalar_lea.vmem %s5428_s17, 512  ;;  %p5430_p3 = scmp.lt.s32.totalorder %s6445_s4, %s5428_s17 }
 0x129   : > { %p5425_p11 = pnand %p5423_p12, %p6218_p4  ;;  %p5431_p0 = scmp.lt.s32.totalorder %s5429_s27, %s5422_s26 }
 0x12b   : > { %p5426_p5 = pneg %p5425_p11  ;;  %p5432_p9 = por %p5431_p0, %p5430_p3 }
 0x12d   : > { %p5433_p10 = pnand %p5432_p9, %p5426_p5 }
 0x12f   : > { %5436 = shalt.err (!%p5433_p10)
}
 0x130   : > { %4772 = dma.hbm_to_vmem [thread:$0]  (!%p7757_p6), %s6424_s18, 256, %s6445_s4, %s6212_s1, %s7693_s8, %s7693_s8, %s7695_s20  }
 0x131   : > { %s7758_s24 = sld [smem:[#allocation54_spill]]  ;;  %p7760_p2 = scmp.ne.s32.totalorder %s7736_s6, 0 }
 0x137   : > { %s7759_s22 = smov %s7758_s24  ;;  %s5437_s30 = scalar_lea.hbm %s7758_s24, 384 }
 0x138   : > { %p5438_p7 = scmp.ne.s32.totalorder %s7759_s22, %s5437_s30  ;;  %p5444_p1 = scmp.lt.u32.totalorder %s5437_s30, %s7759_s22 }
 0x13a   : > { %p5440_p8 = pnand %p5438_p7, %p7760_p2 }
 0x13c   : > { %p5441_p13 = pneg %p5440_p8 }
 0x13e   : > { %p5446_p12 = pnand %p5444_p1, %p5441_p13 }
 0x140   : > { %5449 = shalt.err (!%p5446_p12)
}
 0x141   : > { %s5450_s26 = scalar_lea.vmem %s660_s9, 384  ;;  %p5458_p0 = scmp.lt.s32.totalorder %s660_s9, %s660_s9 }
 0x142   : > { %p5451_p11 = scmp.ne.s32.totalorder %s660_s9, %s5450_s26  ;;  %p5459_p9 = scmp.lt.s32.totalorder %s5450_s26, %s5450_s26 }
 0x144   : > { %p5453_p5 = pnand %p5451_p11, %p7760_p2  ;;  %p5460_p10 = por %p5459_p9, %p5458_p0 }
 0x146   : > { %p5454_p3 = pneg %p5453_p5 }
 0x148   : > { %p5461_p6 = pnand %p5460_p10, %p5454_p3 }
 0x14a   : > { %5464 = shalt.err (!%p5461_p6)
}
 0x14b   : > { %p7761_p7 = scmp.ne.s32.totalorder %s7734_s7, 0  ;;  %s5936_s10 = smov [#allocation9]  }
 0x14c   : > { %s684_s17 = sshll.u32 %s5936_s10, 4  ;;  %s5937_s27 = smov [#allocation12]   ;;  %s685_s17 = int_to_ptr.vmem [resolvable:$true] %s684_s17 }
 0x14d   : > { %4717 = dma.hbm_to_vmem [thread:$0]  (!%p7761_p7), %s7759_s22, 384, %s660_s9, [#allocation7], %s7693_s8, %s7693_s8, %s7695_s20  }
 0x14e   : > { %s705_s25 = sshll.u32 %s5937_s27, 4  ;;  %s7762_s30 = sld [smem:[#allocation56_spill]]  ;;  %s706_s25 = int_to_ptr.vmem [resolvable:$true] %s705_s25 }
 0x154   : > { %s7763_s23 = smov %s7762_s30  ;;  %s5465_s21 = scalar_lea.hbm %s7762_s30, 16 }
 0x155   : > { %p5466_p6 = scmp.ne.s32.totalorder %s7763_s23, %s5465_s21  ;;  %p5472_p1 = scmp.lt.u32.totalorder %s5465_s21, %s7763_s23 }
 0x157   : > { %p5468_p8 = pnand %p5466_p6, %p7760_p2 }
 0x159   : > { %p5469_p13 = pneg %p5468_p8 }
 0x15b   : > { %p5474_p12 = pnand %p5472_p1, %p5469_p13 }
 0x15d   : > { %5477 = shalt.err (!%p5474_p12)
}
 0x15e   : > { %s5478_s9 = scalar_lea.vmem %s685_s17, 16  ;;  %s5485_s4 = scalar_lea.vmem %s685_s17, 32 }
 0x15f   : > { %p5479_p11 = scmp.ne.s32.totalorder %s685_s17, %s5478_s9  ;;  %p5486_p0 = scmp.lt.s32.totalorder %s685_s17, %s685_s17 }
 0x160   : > { %p5487_p9 = scmp.lt.s32.totalorder %s5485_s4, %s5478_s9 }
 0x161   : > { %p5481_p5 = pnand %p5479_p11, %p7760_p2 }
 0x162   : > { %p5488_p10 = por %p5487_p9, %p5486_p0 }
 0x163   : > { %p5482_p3 = pneg %p5481_p5 }
 0x165   : > { %p5489_p4 = pnand %p5488_p10, %p5482_p3 }
 0x167   : > { %5492 = shalt.err (!%p5489_p4)
}
 0x168   : > { %4723 = dma.hbm_to_vmem [thread:$0]  (!%p7761_p7), %s7763_s23, 16, %s685_s17, [#allocation10]  }
 0x169   : > { %s7764_s30 = sld [smem:[#allocation58_spill]] }
 0x16f   : > { %s7765_s21 = smov %s7764_s30  ;;  %s5493_s29 = scalar_lea.hbm %s7764_s30, 256 }
 0x170   : > { %p5494_p6 = scmp.ne.s32.totalorder %s7765_s21, %s5493_s29  ;;  %p5500_p4 = scmp.lt.u32.totalorder %s5493_s29, %s7765_s21 }
 0x172   : > { %p5496_p8 = pnand %p5494_p6, %p7760_p2 }
 0x174   : > { %p5497_p13 = pneg %p5496_p8 }
 0x176   : > { %p5502_p1 = pnand %p5500_p4, %p5497_p13 }
 0x178   : > { %5505 = shalt.err (!%p5502_p1)
}
 0x179   : > { %s5506_s4 = scalar_lea.vmem %s706_s25, 256  ;;  %p5514_p3 = scmp.lt.s32.totalorder %s706_s25, %s706_s25 }
 0x17a   : > { %p5507_p12 = scmp.ne.s32.totalorder %s706_s25, %s5506_s4  ;;  %p5515_p0 = scmp.lt.s32.totalorder %s5506_s4, %s5506_s4 }
 0x17c   : > { %p5509_p11 = pnand %p5507_p12, %p7760_p2  ;;  %p5516_p9 = por %p5515_p0, %p5514_p3 }
 0x17e   : > { %p5510_p5 = pneg %p5509_p11 }
 0x180   : > { %p5517_p10 = pnand %p5516_p9, %p5510_p5 }
 0x182   : > { %5520 = shalt.err (!%p5517_p10)
}
 0x183   : > { %s7766_s17 = smov 8   ;;  %s7767_s10 = smov 128  }
 0x184   : > { %4729 = dma.hbm_to_vmem [thread:$0]  (!%p7761_p7), %s7765_s21, 256, %s706_s25, [#allocation13], %s7767_s10, %s7767_s10, %s7766_s17  }
 0x185   : > { %s7768_s29 = sld [smem:[#allocation70_spill]]  ;;  %s944_s26 = scalar_lea.vmem [#allocation26], %s6180_s2 }
 0x186   : > { %s951_s18 = sshll.u32 %s944_s26, 4  ;;  %p7769_p8 = scmp.ne.s32.totalorder %s7746_s28, 0  ;;  %s952_s18 = int_to_ptr.vmem [resolvable:$true] %s951_s18 }
 0x18b   : > { %s6539_s3 = scalar_lea.hbm %s7768_s29, %s6186_s19  ;;  %s5526_s25 = scalar_lea.hbm %s7768_s29, 32 }
 0x18c   : > { %s5521_s9 = scalar_lea.hbm %s6539_s3, 16  ;;  %p5527_p1 = scmp.lt.u32.totalorder %s6539_s3, %s7768_s29 }
 0x18d   : > { %p5522_p6 = scmp.ne.s32.totalorder %s6539_s3, %s5521_s9  ;;  %p5528_p12 = scmp.lt.u32.totalorder %s5526_s25, %s5521_s9 }
 0x18e   : > { %p5530_p5 = scmp.lt.u32.totalorder %s5521_s9, %s6539_s3 }
 0x18f   : > { %p5524_p13 = pnand %p5522_p6, %p7769_p8  ;;  %p5529_p11 = por %p5528_p12, %p5527_p1 }
 0x191   : > { %p5525_p4 = pneg %p5524_p13  ;;  %p5531_p3 = por %p5530_p5, %p5529_p11 }
 0x193   : > { %p5532_p0 = pnand %p5531_p3, %p5525_p4 }
 0x195   : > { %5535 = shalt.err (!%p5532_p0)
}
 0x196   : > { %s5536_s5 = scalar_lea.vmem %s952_s18, 16  ;;  %s5938_s24 = smov [#allocation26]  }
 0x197   : > { %p5537_p9 = scmp.ne.s32.totalorder %s952_s18, %s5536_s5  ;;  %s5541_s30 = sshll.u32 %s5938_s24, 4  ;;  %s5542_s30 = int_to_ptr.vmem [resolvable:$false] %s5541_s30 }
 0x198   : > { %s5543_s26 = scalar_lea.vmem %s5542_s30, 32  ;;  %p5544_p13 = scmp.lt.s32.totalorder %s952_s18, %s5542_s30 }
 0x199   : > { %p5539_p10 = pnand %p5537_p9, %p7769_p8  ;;  %p5545_p7 = scmp.lt.s32.totalorder %s5543_s26, %s5536_s5 }
 0x19b   : > { %p5540_p6 = pneg %p5539_p10  ;;  %p5546_p2 = por %p5545_p7, %p5544_p13 }
 0x19d   : > { %p5547_p1 = pnand %p5546_p2, %p5540_p6 }
 0x19f   : > { %5550 = shalt.err (!%p5547_p1)
}
 0x1a0   : > { %p7770_p12 = scmp.ne.s32.totalorder %s7744_s0, 0  ;;  %s5939_s9 = smov [#allocation8]  }
 0x1a1   : > { %s673_s4 = sshll.u32 %s5939_s9, 4  ;;  %s5940_s27 = smov [#allocation11]   ;;  %s674_s4 = int_to_ptr.vmem [resolvable:$true] %s673_s4 }
 0x1a2   : > { %4775 = dma.hbm_to_vmem [thread:$0]  (!%p7770_p12), %s6539_s3, 16, %s952_s18, %s6212_s1  }
 0x1a3   : > { %s695_s25 = sshll.u32 %s5940_s27, 4  ;;  %s7771_s24 = sld [smem:[#allocation55_spill]]  ;;  %s696_s25 = int_to_ptr.vmem [resolvable:$true] %s695_s25 }
 0x1a4   : > { %p7773_p7 = scmp.ne.s32.totalorder %s7736_s6, 0 }
 0x1a9   : > { %s7772_s8 = smov %s7771_s24  ;;  %s5551_s20 = scalar_lea.hbm %s7771_s24, 16 }
 0x1aa   : > { %p5552_p2 = scmp.ne.s32.totalorder %s7772_s8, %s5551_s20  ;;  %p5558_p5 = scmp.lt.u32.totalorder %s5551_s20, %s7772_s8 }
 0x1ac   : > { %p5554_p4 = pnand %p5552_p2, %p7773_p7 }
 0x1ae   : > { %p5555_p11 = pneg %p5554_p4 }
 0x1b0   : > { %p5560_p3 = pnand %p5558_p5, %p5555_p11 }
 0x1b2   : > { %5563 = shalt.err (!%p5560_p3)
}
 0x1b3   : > { %s5564_s3 = scalar_lea.vmem %s674_s4, 16  ;;  %s5571_s18 = scalar_lea.vmem %s674_s4, 32 }
 0x1b4   : > { %p5565_p0 = scmp.ne.s32.totalorder %s674_s4, %s5564_s3  ;;  %p5572_p6 = scmp.lt.s32.totalorder %s674_s4, %s674_s4 }
 0x1b5   : > { %p5573_p13 = scmp.lt.s32.totalorder %s5571_s18, %s5564_s3 }
 0x1b6   : > { %p5567_p9 = pnand %p5565_p0, %p7773_p7 }
 0x1b7   : > { %p5574_p1 = por %p5573_p13, %p5572_p6 }
 0x1b8   : > { %p5568_p10 = pneg %p5567_p9 }
 0x1ba   : > { %p5575_p12 = pnand %p5574_p1, %p5568_p10 }
 0x1bc   : > { %5578 = shalt.err (!%p5575_p12)
}
 0x1bd   : > { %p7774_p2 = scmp.ne.s32.totalorder %s7734_s7, 0  ;;  %s7775_s17 = sld [smem:[#allocation57_spill]] }
 0x1bf   : > { %4720 = dma.hbm_to_vmem [thread:$0]  (!%p7774_p2), %s7772_s8, 16, %s674_s4, [#allocation7]  }
 0x1c3   : > { %s5579_s10 = scalar_lea.hbm %s7775_s17, 16 }
 0x1c4   : > { %p5580_p4 = scmp.ne.s32.totalorder %s7775_s17, %s5579_s10  ;;  %p5586_p12 = scmp.lt.u32.totalorder %s5579_s10, %s7775_s17 }
 0x1c6   : > { %p5582_p11 = pnand %p5580_p4, %p7773_p7 }
 0x1c8   : > { %p5583_p5 = pneg %p5582_p11 }
 0x1ca   : > { %p5588_p3 = pnand %p5586_p12, %p5583_p5 }
 0x1cc   : > { %5591 = shalt.err (!%p5588_p3)
}
 0x1cd   : > { %s5592_s3 = scalar_lea.vmem %s696_s25, 16  ;;  %s5599_s4 = scalar_lea.vmem %s696_s25, 32 }
 0x1ce   : > { %p5593_p0 = scmp.ne.s32.totalorder %s696_s25, %s5592_s3  ;;  %p5600_p6 = scmp.lt.s32.totalorder %s696_s25, %s696_s25 }
 0x1cf   : > { %p5601_p13 = scmp.lt.s32.totalorder %s5599_s4, %s5592_s3 }
 0x1d0   : > { %p5595_p9 = pnand %p5593_p0, %p7773_p7 }
 0x1d1   : > { %p5602_p1 = por %p5601_p13, %p5600_p6 }
 0x1d2   : > { %p5596_p10 = pneg %p5595_p9 }
 0x1d4   : > { %p5603_p8 = pnand %p5602_p1, %p5596_p10 }
 0x1d6   : > { %5606 = shalt.err (!%p5603_p8)
}
 0x1d7   : > { %4726 = dma.hbm_to_vmem [thread:$0]  (!%p7774_p2), %s7775_s17, 16, %s696_s25, [#allocation10]  }
 0x1d8   : > { %s5941_s27 = smov [#allocation14]   ;;  %s4185_s20 = sshll.u32 %s6180_s2, 6 }
 0x1d9   : > { %s719_s11 = sshll.u32 %s5941_s27, 4  ;;  %s7776_s30 = sld [smem:[#allocation59_spill]]  ;;  %s720_s11 = int_to_ptr.vmem [resolvable:$true] %s719_s11 }
 0x1df   : > { %s7777_s26 = smov %s7776_s30  ;;  %s5607_s5 = scalar_lea.hbm %s7776_s30, 16 }
 0x1e0   : > { %p5608_p8 = scmp.ne.s32.totalorder %s7777_s26, %s5607_s5  ;;  %p5614_p5 = scmp.lt.u32.totalorder %s5607_s5, %s7777_s26 }
 0x1e2   : > { %p5610_p4 = pnand %p5608_p8, %p7773_p7 }
 0x1e4   : > { %p5611_p11 = pneg %p5610_p4 }
 0x1e6   : > { %p5616_p12 = pnand %p5614_p5, %p5611_p11 }
 0x1e8   : > { %5619 = shalt.err (!%p5616_p12)
}
 0x1e9   : > { %s5620_s25 = scalar_lea.vmem %s720_s11, 16  ;;  %s5627_s9 = scalar_lea.vmem %s720_s11, 32 }
 0x1ea   : > { %p5621_p3 = scmp.ne.s32.totalorder %s720_s11, %s5620_s25  ;;  %p5628_p10 = scmp.lt.s32.totalorder %s720_s11, %s720_s11 }
 0x1eb   : > { %p5629_p6 = scmp.lt.s32.totalorder %s5627_s9, %s5620_s25 }
 0x1ec   : > { %p5623_p0 = pnand %p5621_p3, %p7773_p7 }
 0x1ed   : > { %p5630_p13 = por %p5629_p6, %p5628_p10 }
 0x1ee   : > { %p5624_p9 = pneg %p5623_p0 }
 0x1f0   : > { %p5631_p1 = pnand %p5630_p13, %p5624_p9 }
 0x1f2   : > { %5634 = shalt.err (!%p5631_p1)
}
 0x1f3   : > { %s7778_s8 = sld [smem:[#allocation46_spill]]  ;;  %s962_s30 = scalar_lea.vmem [#allocation27], %s4185_s20 }
 0x1f4   : > { %4732 = dma.hbm_to_vmem [thread:$0]  (!%p7774_p2), %s7777_s26, 16, %s720_s11, [#allocation13]  }
 0x1f5   : > { %s969_s5 = sshll.u32 %s962_s30, 4  ;;  %s7779_s18 = sld [smem:[#allocation71_spill]]  ;;  %s6621_s5 = int_to_ptr.vmem [resolvable:$true] %s969_s5 }
 0x1f6   : > { %p7780_p4 = scmp.ne.s32.totalorder %s7746_s28, 0 }
 0x1f9   : > { %s4294_s24 = sshll.u32 %s7778_s8, 10 }
 0x1fb   : > { %s6619_s12 = scalar_lea.hbm %s7779_s18, %s4294_s24  ;;  %s5640_s20 = scalar_lea.hbm %s7779_s18, 2048 }
 0x1fc   : > { %s5635_s25 = scalar_lea.hbm %s6619_s12, 1024  ;;  %p5641_p12 = scmp.lt.u32.totalorder %s6619_s12, %s7779_s18 }
 0x1fd   : > { %p5636_p8 = scmp.ne.s32.totalorder %s6619_s12, %s5635_s25  ;;  %p5642_p3 = scmp.lt.u32.totalorder %s5640_s20, %s5635_s25 }
 0x1fe   : > { %p5644_p9 = scmp.lt.u32.totalorder %s5635_s25, %s6619_s12 }
 0x1ff   : > { %p5638_p11 = pnand %p5636_p8, %p7780_p4  ;;  %p5643_p0 = por %p5642_p3, %p5641_p12 }
 0x201   : > { %p5639_p5 = pneg %p5638_p11  ;;  %p5645_p10 = por %p5644_p9, %p5643_p0 }
 0x203   : > { %p5646_p6 = pnand %p5645_p10, %p5639_p5 }
 0x205   : > { %5649 = shalt.err (!%p5646_p6)
}
 0x206   : > { %s5650_s8 = scalar_lea.vmem %s6621_s5, 1024  ;;  %s5942_s24 = smov [#allocation27]  }
 0x207   : > { %p5651_p13 = scmp.ne.s32.totalorder %s6621_s5, %s5650_s8  ;;  %s5655_s30 = sshll.u32 %s5942_s24, 4  ;;  %s5656_s30 = int_to_ptr.vmem [resolvable:$false] %s5655_s30 }
 0x208   : > { %s5657_s3 = scalar_lea.vmem %s5656_s30, 2048  ;;  %p5658_p11 = scmp.lt.s32.totalorder %s6621_s5, %s5656_s30 }
 0x209   : > { %p5653_p1 = pnand %p5651_p13, %p7780_p4  ;;  %p5659_p2 = scmp.lt.s32.totalorder %s5657_s3, %s5650_s8 }
 0x20b   : > { %p5654_p8 = pneg %p5653_p1  ;;  %p5660_p12 = por %p5659_p2, %p5658_p11 }
 0x20d   : > { %p5661_p3 = pnand %p5660_p12, %p5654_p8 }
 0x20f   : > { %5664 = shalt.err (!%p5661_p3)
}
 0x210   : > { %p7781_p5 = scmp.ne.s32.totalorder %s7744_s0, 0  ;;  %s7782_s4 = smov 4  }
 0x211   : > { %s7783_s25 = smov 64   ;;  %s5943_s11 = smov [#allocation15]  }
 0x212   : > { %4778 = dma.hbm_to_vmem [thread:$0]  (!%p7781_p5), %s6619_s12, 1024, %s6621_s5, %s6212_s1, %s7783_s25, %s7783_s25, %s7782_s4  }
 0x213   : > { %s730_s9 = sshll.u32 %s5943_s11, 4  ;;  %s5944_s20 = smov [#allocation29]   ;;  %s731_s9 = int_to_ptr.vmem [resolvable:$true] %s730_s9 }
 0x214   : > { %s741_s27 = sshll.u32 %s5944_s20, 4  ;;  %s7784_s24 = sld [smem:[#allocation60_spill]]  ;;  %s6648_s27 = int_to_ptr.vmem [resolvable:$true] %s741_s27 }
 0x21a   : > { %s7785_s3 = smov %s7784_s24  ;;  %s5665_s30 = scalar_lea.hbm %s7784_s24, 16 }
 0x21b   : > { %p5666_p2 = scmp.ne.s32.totalorder %s7785_s3, %s5665_s30  ;;  %p5672_p10 = scmp.lt.u32.totalorder %s5665_s30, %s7785_s3 }
 0x21d   : > { %p5668_p0 = pnand %p5666_p2, %p7773_p7 }
 0x21f   : > { %p5669_p9 = pneg %p5668_p0 }
 0x221   : > { %p5674_p6 = pnand %p5672_p10, %p5669_p9 }
 0x223   : > { %5677 = shalt.err (!%p5674_p6)
}
 0x224   : > { %s5678_s5 = scalar_lea.vmem %s731_s9, 16  ;;  %s5685_s11 = scalar_lea.vmem %s731_s9, 32 }
 0x225   : > { %p5679_p13 = scmp.ne.s32.totalorder %s731_s9, %s5678_s5  ;;  %p5686_p11 = scmp.lt.s32.totalorder %s731_s9, %s731_s9 }
 0x226   : > { %p5687_p12 = scmp.lt.s32.totalorder %s5685_s11, %s5678_s5 }
 0x227   : > { %p5681_p1 = pnand %p5679_p13, %p7773_p7 }
 0x228   : > { %p5688_p3 = por %p5687_p12, %p5686_p11 }
 0x229   : > { %p5682_p8 = pneg %p5681_p1 }
 0x22b   : > { %p5689_p5 = pnand %p5688_p3, %p5682_p8 }
 0x22d   : > { %5692 = shalt.err (!%p5689_p5)
}
 0x22e   : > { %p7786_p2 = scmp.ne.s32.totalorder %s7734_s7, 0  ;;  %s7787_s10 = sld [smem:[#allocation73_spill]] }
 0x230   : > { %4735 = dma.hbm_to_vmem [thread:$0]  (!%p7786_p2), %s7785_s3, 16, %s731_s9, [#allocation16]  }
 0x234   : > { %s5693_s8 = scalar_lea.hbm %s7787_s10, 16 }
 0x235   : > { %p5694_p0 = scmp.ne.s32.totalorder %s7787_s10, %s5693_s8  ;;  %p5700_p5 = scmp.lt.u32.totalorder %s5693_s8, %s7787_s10 }
 0x237   : > { %p5696_p9 = pnand %p5694_p0, %p7773_p7 }
 0x239   : > { %p5697_p10 = pneg %p5696_p9 }
 0x23b   : > { %p5702_p6 = pnand %p5700_p5, %p5697_p10 }
 0x23d   : > { %5705 = shalt.err (!%p5702_p6)
}
 0x23e   : > { %s5706_s9 = scalar_lea.vmem %s6648_s27, 16  ;;  %s5713_s11 = scalar_lea.vmem %s6648_s27, 32 }
 0x23f   : > { %p5707_p13 = scmp.ne.s32.totalorder %s6648_s27, %s5706_s9  ;;  %p5714_p11 = scmp.lt.s32.totalorder %s6648_s27, %s6648_s27 }
 0x240   : > { %p5715_p12 = scmp.lt.s32.totalorder %s5713_s11, %s5706_s9 }
 0x241   : > { %p5709_p1 = pnand %p5707_p13, %p7773_p7 }
 0x242   : > { %p5716_p3 = por %p5715_p12, %p5714_p11 }
 0x243   : > { %p5710_p8 = pneg %p5709_p1 }
 0x245   : > { %p5717_p0 = pnand %p5716_p3, %p5710_p8 }
 0x247   : > { %5720 = shalt.err (!%p5717_p0)
}
 0x248   : > { %4738 = dma.hbm_to_vmem [thread:$0]  (!%p7786_p2), %s7787_s10, 16, %s6648_s27, [#allocation7]  }
 0x249   : > { %s5945_s15 = smov [#allocation30]   ;;  %s5946_s8 = smov [#allocation31]  }
 0x24a   : > { %s752_s20 = sshll.u32 %s5945_s15, 4  ;;  %s762_s24 = sshll.u32 %s5946_s8, 4  ;;  %s753_s20 = int_to_ptr.vmem [resolvable:$true] %s752_s20  ;;  %s6692_s24 = int_to_ptr.vmem [resolvable:$true] %s762_s24 }
 0x24b   : > { %s7788_s5 = sld [smem:[#allocation74_spill]] }
 0x251   : > { %s7789_s9 = smov %s7788_s5  ;;  %s5721_s11 = scalar_lea.hbm %s7788_s5, 16 }
 0x252   : > { %p5722_p9 = scmp.ne.s32.totalorder %s7789_s9, %s5721_s11  ;;  %p5728_p6 = scmp.lt.u32.totalorder %s5721_s11, %s7789_s9 }
 0x254   : > { %p5724_p10 = pnand %p5722_p9, %p7773_p7 }
 0x256   : > { %p5725_p5 = pneg %p5724_p10 }
 0x258   : > { %p5730_p13 = pnand %p5728_p6, %p5725_p5 }
 0x25a   : > { %5733 = shalt.err (!%p5730_p13)
}
 0x25b   : > { %s5734_s14 = scalar_lea.vmem %s753_s20, 16  ;;  %s5741_s15 = scalar_lea.vmem %s753_s20, 32 }
 0x25c   : > { %p5735_p1 = scmp.ne.s32.totalorder %s753_s20, %s5734_s14  ;;  %p5742_p12 = scmp.lt.s32.totalorder %s753_s20, %s753_s20 }
 0x25d   : > { %p5743_p3 = scmp.lt.s32.totalorder %s5741_s15, %s5734_s14 }
 0x25e   : > { %p5737_p8 = pnand %p5735_p1, %p7773_p7 }
 0x25f   : > { %p5744_p0 = por %p5743_p3, %p5742_p12 }
 0x260   : > { %p5738_p11 = pneg %p5737_p8 }
 0x262   : > { %p5745_p4 = pnand %p5744_p0, %p5738_p11 }
 0x264   : > { %5748 = shalt.err (!%p5745_p4)
}
 0x265   : > { %4741 = dma.hbm_to_vmem [thread:$0]  (!%p7786_p2), %s7789_s9, 16, %s753_s20, [#allocation10]  }
 0x266   : > { %s7790_s12 = sld [smem:[#allocation75_spill]] }
 0x26c   : > { %s5749_s5 = scalar_lea.hbm %s7790_s12, 256 }
 0x26d   : > { %p5750_p9 = scmp.ne.s32.totalorder %s7790_s12, %s5749_s5  ;;  %p5756_p4 = scmp.lt.u32.totalorder %s5749_s5, %s7790_s12 }
 0x26f   : > { %p5752_p10 = pnand %p5750_p9, %p7773_p7 }
 0x271   : > { %p5753_p5 = pneg %p5752_p10 }
 0x273   : > { %p5758_p6 = pnand %p5756_p4, %p5753_p5 }
 0x275   : > { %5761 = shalt.err (!%p5758_p6)
}
 0x276   : > { %s5762_s20 = scalar_lea.vmem %s6692_s24, 256  ;;  %p5770_p11 = scmp.lt.s32.totalorder %s6692_s24, %s6692_s24 }
 0x277   : > { %p5763_p13 = scmp.ne.s32.totalorder %s6692_s24, %s5762_s20  ;;  %p5771_p12 = scmp.lt.s32.totalorder %s5762_s20, %s5762_s20 }
 0x279   : > { %p5765_p1 = pnand %p5763_p13, %p7773_p7  ;;  %p5772_p3 = por %p5771_p12, %p5770_p11 }
 0x27b   : > { %p5766_p8 = pneg %p5765_p1 }
 0x27d   : > { %p5773_p0 = pnand %p5772_p3, %p5766_p8 }
 0x27f   : > { %5776 = shalt.err (!%p5773_p0)
}
 0x280   : > { %4744 = dma.hbm_to_vmem [thread:$0]  (!%p7786_p2), %s7790_s12, 256, %s6692_s24, [#allocation13], %s7783_s25, %s7783_s25, %s7782_s4  }
 0x281   : > { %s7791_s8 = sld [smem:[#allocation72_spill]]  ;;  %s982_s7 = scalar_lea.vmem [#allocation28], %s6180_s2 }
 0x282   : > { %s989_s5 = sshll.u32 %s982_s7, 4  ;;  %p7792_p9 = scmp.ne.s32.totalorder %s7746_s28, 0  ;;  %s990_s5 = int_to_ptr.vmem [resolvable:$true] %s989_s5 }
 0x287   : > { %s6742_s30 = scalar_lea.hbm %s7791_s8, %s6186_s19  ;;  %s5782_s4 = scalar_lea.hbm %s7791_s8, 32 }
 0x288   : > { %s5777_s11 = scalar_lea.hbm %s6742_s30, 16  ;;  %p5783_p2 = scmp.lt.u32.totalorder %s6742_s30, %s7791_s8 }
 0x289   : > { %p5778_p7 = scmp.ne.s32.totalorder %s6742_s30, %s5777_s11  ;;  %p5784_p4 = scmp.lt.u32.totalorder %s5782_s4, %s5777_s11 }
 0x28a   : > { %p5786_p13 = scmp.lt.u32.totalorder %s5777_s11, %s6742_s30 }
 0x28b   : > { %p5780_p10 = pnand %p5778_p7, %p7792_p9  ;;  %p5785_p6 = por %p5784_p4, %p5783_p2 }
 0x28d   : > { %p5781_p5 = pneg %p5780_p10  ;;  %p5787_p1 = por %p5786_p13, %p5785_p6 }
 0x28f   : > { %p5788_p8 = pnand %p5787_p1, %p5781_p5 }
 0x291   : > { %5791 = shalt.err (!%p5788_p8)
}
 0x292   : > { %s5792_s19 = scalar_lea.vmem %s990_s5, 16  ;;  %s5947_s2 = smov [#allocation28]  }
 0x293   : > { %p5793_p11 = scmp.ne.s32.totalorder %s990_s5, %s5792_s19  ;;  %s5797_s14 = sshll.u32 %s5947_s2, 4  ;;  %s5798_s14 = int_to_ptr.vmem [resolvable:$false] %s5797_s14 }
 0x294   : > { %s5799_s20 = scalar_lea.vmem %s5798_s14, 32  ;;  %p5800_p0 = scmp.lt.s32.totalorder %s990_s5, %s5798_s14 }
 0x295   : > { %p5795_p12 = pnand %p5793_p11, %p7792_p9  ;;  %p5801_p7 = scmp.lt.s32.totalorder %s5799_s20, %s5792_s19 }
 0x297   : > { %p5796_p3 = pneg %p5795_p12  ;;  %p5802_p10 = por %p5801_p7, %p5800_p0 }
 0x299   : > { %p5803_p2 = pnand %p5802_p10, %p5796_p3 }
 0x29b   : > { %5806 = shalt.err (!%p5803_p2)
}
 0x29c   : > { %p7793_p4 = scmp.ne.s32.totalorder %s7744_s0, 0  ;;  %s7794_s15 = sld [smem:[#allocation49_spill]] }
 0x29e   : > { %4781 = dma.hbm_to_vmem [thread:$0]  (!%p7793_p4), %s6742_s30, 16, %s990_s5, %s6212_s1  }
 0x2a2   : > { %p7795_p5 = scmp.ne.s32.totalorder %s7794_s15, 0 }
 0x2a3   : > { %s7796_s28 = sld [smem:[#allocation48_spill]] (!%p7795_p5) }
 0x2a4   : > { %998 = sbr.rel (%p7795_p5) target bundleno = 4609 (0x1201), region = 112 }
 0x2a9   : > { %p7797_p9 = scmp.eq.s32.totalorder (!%p7795_p5), %s7796_s28, 0 }
 0x2ab   : > { %5858 = dma.done.wait (%p7797_p9), [#allocation4], 512   ;;  %p7798_p6 = pmov %p7797_p9 }
 0x2ad   : > { %5860 = vsyncadd (%p7798_p6), [#allocation4], 4294966784  ;;  %p7799_p13 = pmov %p7798_p6 }
 0x2ae   : > { %p7800_p1 = pmov %p7798_p6 }
 0x2af   : > { %5862 = dma.done.wait (%p7799_p13), [#allocation7], 400  }
 0x2b0   : > { %5864 = vsyncadd (%p7800_p1), [#allocation7], 4294966896  ;;  %p7801_p8 = pmov %p7800_p1 }
 0x2b1   : > { %p7802_p11 = pmov %p7800_p1 }
 0x2b2   : > { %5866 = dma.done.wait (%p7801_p8), [#allocation10], 32  }
 0x2b3   : > { %5868 = vsyncadd (%p7802_p11), [#allocation10], 4294967264  ;;  %p7803_p12 = pmov %p7800_p1 }
 0x2b4   : > { %p7804_p3 = pmov %p7800_p1 }
 0x2b5   : > { %5870 = dma.done.wait (%p7803_p12), [#allocation13], 272  }
 0x2b6   : > { %5872 = vsyncadd (%p7804_p3), [#allocation13], 4294967024  ;;  %p7805_p0 = pmov %p7800_p1 }
 0x2b8   : > { %5874 = dma.done.wait (%p7805_p0), [#allocation16], 16   ;;  %p7806_p7 = pmov %p7805_p0 }
 0x2b9   : > { %s7807_s1 = sld [smem:[#allocation43_spill]]  ;;  %s7808_s0 = sld [smem:[#allocation51_spill]] }
 0x2ba   : > { %5876 = vsyncadd (%p7806_p7), [#allocation16], 4294967280  ;;  %s1032_s16 = sand.u32 1, %s7796_s28  }
 0x2bb   : > { %s1033_s3 = scalar_lea.sflag [#allocation4], %s1032_s16 }
 0x2bf   : > { %s6787_s6 = sand.u32 1, %s7807_s1   ;;  %p7809_p10 = scmp.ne.s32.totalorder %s7808_s0, 0 }
 0x2c0   : > { %s1035_s30 = scalar_lea.vmem [#allocation17], %s6787_s6 }
 0x2c1   : > { %5878 = dma.done.wait (%p7809_p10), %s1033_s3, 1920  }
 0x2c2   : > { %5880 = vsyncadd (%p7809_p10), %s1033_s3, 4294965376  ;;  %s6795_s7 = sshll.u32 %s6787_s6, 4  ;;  %s4201_s5 = sshll.u32 %s6787_s6, 6 }
 0x2c3   : > { %s1043_s11 = scalar_lea.vmem [#allocation18], %s6787_s6  ;;  %s1052_s13 = scalar_lea.vmem [#allocation19], %s6795_s7 }
 0x2c4   : > { %s1060_s27 = scalar_lea.vmem [#allocation20], %s6787_s6  ;;  %s1069_s4 = scalar_lea.vmem [#allocation21], %s6795_s7 }
 0x2c5   : > { %s1077_s25 = scalar_lea.vmem [#allocation22], %s6787_s6  ;;  %s1085_s24 = scalar_lea.vmem [#allocation23], %s6787_s6 }
 0x2c6   : > { %s1093_s19 = scalar_lea.vmem [#allocation24], %s6787_s6  ;;  %s1102_s2 = scalar_lea.vmem [#allocation25], %s6795_s7 }
 0x2c7   : > { %s1110_s14 = scalar_lea.vmem [#allocation26], %s6787_s6  ;;  %s6807_s20 = scalar_lea.vmem [#allocation27], %s4201_s5 }
 0x2c8   : > { %s1127_s15 = scalar_lea.vmem [#allocation28], %s6787_s6  ;;  %p7810_p2 = pmov %p7805_p0 }
 0x2c9   : > { %p7811_p4 = pmov %p7805_p0 }
 0x2ca   : > { %5882 = dma.done.wait (%p7810_p2), [#allocation7], 16  }
 0x2cb   : > { %5884 = vsyncadd (%p7811_p4), [#allocation7], 4294967280  ;;  %p7812_p5 = pmov %p7805_p0 }
 0x2cc   : > { %p7813_p9 = pmov %p7805_p0 }
 0x2cd   : > { %5886 = dma.done.wait (%p7812_p5), [#allocation10], 16  }
 0x2ce   : > { %5888 = vsyncadd (%p7813_p9), [#allocation10], 4294967280  ;;  %p7814_p6 = pmov %p7805_p0 }
 0x2cf   : > { %p7815_p13 = pmov %p7805_p0 }
 0x2d0   : > { %5890 = dma.done.wait (%p7814_p6), [#allocation13], 256  }
 0x2d1   : > { %5892 = vsyncadd (%p7815_p13), [#allocation13], 4294967040  ;;  %s7816_s1 = sld [smem:[#allocation45_spill]] }
 0x2d7   : > { %p4205_p1 = scmp.ne.s32.totalorder %s7816_s1, 0 }
 0x2d8   : > { %v4883_v0 = vld [vmem:[#allocation6] sm:$0xff] (!%p4205_p1)   ;;  %v4884_v1 = vld [vmem:[#allocation6 + $0x8] sm:$0xff] (!%p4205_p1)   ;;  %vm1289_vm0 = vcmask (!%p4205_p1), 392192   ;;  %v4885_v4 = vld [vmem:[#allocation6 + $0x10] sm:$0xff] (!%p4205_p1)   ;;  %vm1428_vm1 = vcmask (!%p4205_p1), 253952   ;;  %vm1351_vm2 = vcmask (!%p4205_p1), 261120   ;;  %v1406_v60 = vlaneseq (!%p4205_p1) }
 0x2d9   : > { %1249 = sbr.rel (%p4205_p1) target bundleno = 1279 (0x4ff), region = 208  ;;  %4393 = vmatprep.subr.bf16.mxu0 (!%p4205_p1), %v4883_v0  ;;  %v1252_v2 = vld [vmem:[#allocation3] sm:$0xff] (!%p4205_p1)  ;;  %v1253_v3 = vld [vmem:[#allocation3 + $0x8] sm:$0xff] (!%p4205_p1)  ;;  %v1425_v6 = vld [vmem:[#allocation9] sm:$0x1] (!%p4205_p1) }
 0x2da   : > { %4394 = vmatpush3.bf16.msra.mxu0 (!%p4205_p1), %v4883_v0  ;;  %v1256_v5 = vpack.c.bf16 (!%p4205_p1), %v1253_v3, %v1252_v2  ;;  %v1426_v7 = vld [vmem:[#allocation11] sm:$0x1] (!%p4205_p1)  ;;  %v1254_v9 = vld [vmem:[#allocation3 + $0x10] sm:$0xff] (!%p4205_p1)  ;;  %v4206_v13 = vld [vmem:[#allocation8] ss:$0 sm:$0xff] (!%p4205_p1)  ;;  %v1407_v61 = vshrl.u32 (!%p4205_p1), %v1406_v60, 7 }
 0x2db   : > { %4395 = vmatprep.subr.bf16.mxu0 (!%p4205_p1), %v4884_v1  ;;  %v1427_v8 = vadd.f32 (!%p4205_p1), %v1426_v7, %v1425_v6  ;;  %v1255_v10 = vld [vmem:[#allocation3 + $0x18] sm:$0xff] (!%p4205_p1)  ;;  %v1346_v23 = vld [vmem:[#allocation12 + $0x8] sm:$0xff] (!%p4205_p1)  ;;  %v1250_v63 = vld [vmem:[#allocation14] sm:$0x1] (!%p4205_p1) }
 0x2dc   : > { %4399 = vmatprep.mubr.msk.bf16.mxu0 (!%p4205_p1), %vm1289_vm0, %v1256_v5  ;;  %v1257_v12 = vpack.c.bf16 (!%p4205_p1), %v1255_v10, %v1254_v9  ;;  %v1345_v17 = vld [vmem:[#allocation12] sm:$0xff] (!%p4205_p1)  ;;  %v1408_v2 = vsub.s32 (!%p4205_p1), 0, %v1407_v61 }
 0x2dd   : > { %v1429_v11 = vsel (!%p4205_p1), %vm1428_vm1, %v1427_v8, 0.0 }
 0x2de   : > { %4396 = vmatpush3.bf16.msra.mxu0 (!%p4205_p1), %v4884_v1  ;;  %1430 = vadd.xlane.f32.xlu0 (!%p4205_p1), %v1429_v11  ;;  %v1251_v1 = vld [vmem:[#allocation15] sm:$0x1] (!%p4205_p1) }
 0x2df   : > { %4397 = vmatprep.subr.bf16.mxu0 (!%p4205_p1), %v4885_v4 }
 0x2e2   : > { %4398 = vmatpush3.bf16.msra.mxu0 %v4885_v4 }
 0x2e5   : > { %4400 = vmatmul.mubr.msk.bf16.vlgmr.msra.gmra.mrb[0].mxu0 %vm1289_vm0, %v1257_v12 }
 0x36b   : > { %v1431_v14 = vpop.xlane.xlu0 %1430 }
 0x36c   : > { %v1432_v20 = vmul.f32 0.03125, %v1431_v14 }
 0x36e   : > { %v1433_v28 = vsub.f32 %v1427_v8, %v1432_v20  ;;  %v1419_v20 = vrot.slane %v1251_v1, %v1408_v2 }
 0x370   : > { %v1434_v34 = vmul.f32 %v1433_v28, %v1433_v28 }
 0x372   : > { %v1435_v36 = vsel %vm1428_vm1, %v1434_v34, 0.0 }
 0x3b8   : > { %v4401_v15 = vpop.f32.mrb[0].mxu0 }
 0x3b9   : > { %v1330_v16 = vpop.f32.mrb[1].mxu0  ;;  %v1339_v24 = vadd.f32 %v4401_v15, %v4206_v13 }
 0x3ba   : > { %v1331_v18 = vadd.f32 %v4206_v13, %v1330_v16  ;;  %v4402_v19 = vpop.f32.mrb[2].mxu0 }
 0x3bb   : > { %v1342_v21 = vadd.f32 %v4402_v19, %v4206_v13  ;;  %v1333_v22 = vpop.f32.mrb[3].mxu0  ;;  %v1349_v32 = vadd.f32 %v1345_v17, %v1339_v24 }
 0x3bc   : > { %v1334_v25 = vadd.f32 %v4206_v13, %v1333_v22  ;;  %v1347_v26 = vadd.f32 %v1345_v17, %v1331_v18  ;;  %v1409_v18 = vrot.slane %v1250_v63, %v1408_v2 }
 0x3bd   : > { %v1350_v30 = vadd.f32 %v1346_v23, %v1342_v21  ;;  %v1358_v35 = vsel %vm1351_vm2, %v1349_v32, 0.0 }
 0x3be   : > { %v1352_v27 = vsel %vm1351_vm2, %v1347_v26, 0.0  ;;  %v1348_v29 = vadd.f32 %v1346_v23, %v1334_v25 }
 0x3bf   : > { %1353 = vadd.xlane.f32.xlu0 %v1352_v27  ;;  %v1361_v33 = vsel %vm1351_vm2, %v1350_v30, 0.0 }
 0x3c0   : > { %v1355_v31 = vsel %vm1351_vm2, %v1348_v29, 0.0 }
 0x3c1   : > { %1356 = vadd.xlane.f32.xlu1 %v1355_v31 }
 0x3c3   : > { %1362 = vadd.xlane.f32.xlu0 %v1361_v33 }
 0x3c5   : > { %1359 = vadd.xlane.f32.xlu1 %v1358_v35 }
 0x3c9   : > { %1436 = vadd.xlane.f32.xlu1 %v1435_v36 }
 0x44c   : > { %v1354_v37 = vpop.xlane.xlu0 %1353 }
 0x44d   : > { %v1365_v38 = vmul.f32 0.03125, %v1354_v37 }
 0x44e   : > { %v1357_v39 = vpop.xlane.xlu1 %1356 }
 0x44f   : > { %v1369_v40 = vsub.f32 %v1347_v26, %v1365_v38  ;;  %v1366_v41 = vmul.f32 0.03125, %v1357_v39 }
 0x450   : > { %v1363_v42 = vpop.xlane.xlu0 %1362 }
 0x451   : > { %v1370_v43 = vsub.f32 %v1348_v29, %v1366_v41  ;;  %v1368_v44 = vmul.f32 0.03125, %v1363_v42  ;;  %v1373_v45 = vmul.f32 %v1369_v40, %v1369_v40 }
 0x452   : > { %v1360_v46 = vpop.xlane.xlu1 %1359 }
 0x453   : > { %v1372_v47 = vsub.f32 %v1350_v30, %v1368_v44  ;;  %v1367_v48 = vmul.f32 0.03125, %v1360_v46  ;;  %v1377_v49 = vsel %vm1351_vm2, %v1373_v45, 0.0  ;;  %v1374_v50 = vmul.f32 %v1370_v43, %v1370_v43 }
 0x454   : > { %1378 = vadd.xlane.f32.xlu0 %v1377_v49 }
 0x455   : > { %v1371_v51 = vsub.f32 %v1349_v32, %v1367_v48  ;;  %v1380_v52 = vsel %vm1351_vm2, %v1374_v50, 0.0  ;;  %v1376_v53 = vmul.f32 %v1372_v47, %v1372_v47 }
 0x456   : > { %1381 = vadd.xlane.f32.xlu1 %v1380_v52  ;;  %v1437_v54 = vpop.xlane.xlu1 %1436 }
 0x457   : > { %v1438_v55 = vmul.f32 0.03125, %v1437_v54  ;;  %v1375_v56 = vmul.f32 %v1371_v51, %v1371_v51  ;;  %v1386_v59 = vsel %vm1351_vm2, %v1376_v53, 0.0 }
 0x459   : > { %v1439_v57 = vadd.f32 1e-05, %v1438_v55  ;;  %v1383_v58 = vsel %vm1351_vm2, %v1375_v56, 0.0 }
 0x45a   : > { %1384 = vadd.xlane.f32.xlu0 %v1383_v58  ;;  %1387 = vadd.xlane.f32.xlu1 %v1386_v59 }
 0x45b   : > { %4886 = vrsqrt.f32 %v1439_v57 }
 0x465   : > { %v4887_v62 = vpop.eup %4886 }
 0x466   : > { %v1441_v0 = vmul.f32 %v4887_v62, %v1433_v28 }
 0x468   : > { %v1442_v3 = vmul.f32 %v1441_v0, %v1250_v63 }
 0x46a   : > { %v1443_v4 = vadd.f32 %v1442_v3, %v1251_v1 }
 0x46c   : > { %v1452_v5 = vrot.slane %v1443_v4, %v1408_v2 }
 0x46e   : > { %1454 = vst.msk [vmem:[#allocation2 + $0x10] sm:$0xff] %vm1351_vm2, %v1452_v5  ;;  %1455 = vst.msk [vmem:[#allocation2 + $0x28] sm:$0xff] %vm1351_vm2, %v1452_v5 }
 0x4e1   : > { %v1379_v6 = vpop.xlane.xlu0 %1378 }
 0x4e2   : > { %v1389_v7 = vmul.f32 0.03125, %v1379_v6 }
 0x4e3   : > { %v1382_v8 = vpop.xlane.xlu1 %1381 }
 0x4e4   : > { %v1393_v9 = vadd.f32 1e-05, %v1389_v7  ;;  %v1390_v10 = vmul.f32 0.03125, %v1382_v8 }
 0x4e6   : > { %4888 = vrsqrt.f32 %v1393_v9  ;;  %v1394_v11 = vadd.f32 1e-05, %v1390_v10 }
 0x4e7   : > { %v1388_v12 = vpop.xlane.xlu1 %1387  ;;  %v1385_v13 = vpop.xlane.xlu0 %1384 }
 0x4e8   : > { %4890 = vrsqrt.f32 %v1394_v11  ;;  %v1392_v14 = vmul.f32 0.03125, %v1388_v12  ;;  %v1391_v15 = vmul.f32 0.03125, %v1385_v13 }
 0x4ea   : > { %v1396_v16 = vadd.f32 1e-05, %v1392_v14  ;;  %v1395_v17 = vadd.f32 1e-05, %v1391_v15 }
 0x4ec   : > { %4892 = vrsqrt.f32 %v1396_v16 }
 0x4ed   : > { %4894 = vrsqrt.f32 %v1395_v17 }
 0x4f0   : > { %v4889_v19 = vpop.eup %4888 }
 0x4f1   : > { %v1401_v21 = vmul.f32 %v4889_v19, %v1369_v40 }
 0x4f2   : > { %v4891_v22 = vpop.eup %4890 }
 0x4f3   : > { %v1411_v23 = vmul.f32 %v1409_v18, %v1401_v21  ;;  %v1402_v24 = vmul.f32 %v4891_v22, %v1370_v43 }
 0x4f5   : > { %v1421_v25 = vadd.f32 %v1419_v20, %v1411_v23  ;;  %v1412_v26 = vmul.f32 %v1409_v18, %v1402_v24 }
 0x4f6   : > { %v4893_v27 = vpop.eup %4892 }
 0x4f7   : > { %v4895_v28 = vpop.eup %4894  ;;  %1444 = vst.msk [vmem:[#allocation2] sm:$0xff] %vm1351_vm2, %v1421_v25  ;;  %v1422_v29 = vadd.f32 %v1419_v20, %v1412_v26  ;;  %v1404_v30 = vmul.f32 %v4893_v27, %v1372_v47 }
 0x4f8   : > { %v1403_v31 = vmul.f32 %v4895_v28, %v1371_v51 }
 0x4f9   : > { %1445 = vst.msk [vmem:[#allocation2 + $0x8] sm:$0xff] %vm1351_vm2, %v1422_v29  ;;  %v1414_v32 = vmul.f32 %v1409_v18, %v1404_v30 }
 0x4fa   : > { %v1413_v33 = vmul.f32 %v1409_v18, %v1403_v31 }
 0x4fb   : > { %v1424_v34 = vadd.f32 %v1419_v20, %v1414_v32 }
 0x4fc   : > { %v1423_v35 = vadd.f32 %v1419_v20, %v1413_v33 }
 0x4fd   : > { %1447 = vst.msk [vmem:[#allocation2 + $0x20] sm:$0xff] %vm1351_vm2, %v1424_v34 }
 0x4fe   : > { %1446 = vst.msk [vmem:[#allocation2 + $0x18] sm:$0xff] %vm1351_vm2, %v1423_v35 }
 0x4ff PF: > { %v1456_v36 = vld [vmem:[#allocation2] sm:$0xff]  ;;  %vm1464_vm3 = vcmask 261120   ;;  %v1458_v37 = vld [vmem:[#allocation2 + $0x10] sm:$0xff]  ;;  %v1461_v43 = vld [vmem:[#allocation2 + $0x28] sm:$0xff]  ;;  %v5948_v15 = vmov 0.0   ;;  %vm5949_vm4 = vmmov 0  }
 0x500   : > { %v1457_v38 = vld [vmem:[#allocation2 + $0x8] sm:$0xff]  ;;  %v1465_v39 = vsel %vm1464_vm3, %v1456_v36, 0.0  ;;  %v1471_v40 = vsel %vm1464_vm3, %v1458_v37, 0.0  ;;  %v1480_v47 = vsel %vm1464_vm3, %v1461_v43, 0.0  ;;  %4403 = vmatprep.subr.bf16.mxu1 %v5948_v15  ;;  %4407 = vmatprep.mubr.msk.bf16.mxu1 %vm5949_vm4, %v5948_v15  ;;  %vm1742_vm5 = vcmask 64512   ;;  %s5950_s28 = smov 120  }
 0x501   : > { %1466 = vadd.xlane.f32.xlu0 %v1465_v39  ;;  %1472 = vadd.xlane.f32.xlu1 %v1471_v40  ;;  %v1468_v44 = vsel %vm1464_vm3, %v1457_v38, 0.0  ;;  %v4971_v14 = vld [vmem:[%s1052_s13] sm:$0xff]   ;;  %v4972_v16 = vld [vmem:[%s1052_s13 + $0x8] sm:$0xff]   ;;  %s5951_s0 = smov 112   ;;  %s5952_s16 = smov 104   ;;  %vm2586_vm6 = vcmask 1043456  }
 0x502   : > { %4404 = vmatpush3.bf16.msra.mxu1 %v4971_v14  ;;  %s5953_s3 = smov 96   ;;  %vm2294_vm8 = vcmask 195584   ;;  %s5955_s5 = smov 8   ;;  %vm3150_vm9 = vcmask 130048  }
 0x503   : > { %4405 = vmatprep.subr.bf16.mxu1 %v5948_v15  ;;  %s5957_s13 = smov 24   ;;  %s7817_s6 = sld [smem:[#allocation45_spill]] }
 0x504   : > { %v1460_v42 = vld [vmem:[#allocation2 + $0x20] sm:$0xff] }
 0x505   : > { %v1459_v41 = vld [vmem:[#allocation2 + $0x18] sm:$0xff]  ;;  %v1477_v46 = vsel %vm1464_vm3, %v1460_v42, 0.0  ;;  %1469 = vadd.xlane.f32.xlu0 %v1468_v44 }
 0x506   : > { %v1474_v45 = vsel %vm1464_vm3, %v1459_v41, 0.0  ;;  %4406 = vmatpush3.bf16.msra.mxu1 %v4972_v16 }
 0x507   : > { %1475 = vadd.xlane.f32.xlu1 %v1474_v45 }
 0x509   : > { %1478 = vadd.xlane.f32.xlu0 %v1477_v46  ;;  %p4281_p8 = scmp.ne.s32.totalorder %s7817_s6, 1 }
 0x50a   : > { %vm3665_vm10 = vcmask (!%p4281_p8), 1041409   ;;  %vm3668_vm11 = vcmask (!%p4281_p8), 254976   ;;  %vm5959_vm12 = vmmov (!%p4281_p8), 0   ;;  %vm3782_vm13 = vcmask (!%p4281_p8), 123904  }
 0x50b   : > { %1481 = vadd.xlane.f32.xlu1 %v1480_v47 }
 0x58e   : > { %v1467_v48 = vpop.xlane.xlu0 %1466  ;;  %v1473_v49 = vpop.xlane.xlu1 %1472 }
 0x58f   : > { %v1484_v50 = vmul.f32 0.03125, %v1467_v48  ;;  %v1486_v51 = vmul.f32 0.03125, %v1473_v49 }
 0x591   : > { %v6847_v52 = vsub.f32 %v1456_v36, %v1484_v50  ;;  %v6849_v53 = vsub.f32 %v1458_v37, %v1486_v51  ;;  %v4212_v37 = vld [vmem:[%s1035_s30] ss:$0 sm:$0xff]  ;;  %s5954_s30 = smov 64  }
 0x592   : > { %v1470_v54 = vpop.xlane.xlu0 %1469 }
 0x593   : > { %v1485_v56 = vmul.f32 0.03125, %v1470_v54  ;;  %v1496_v58 = vmul.f32 %v6847_v52, %v6847_v52  ;;  %v1498_v59 = vmul.f32 %v6849_v53, %v6849_v53 }
 0x594   : > { %v1476_v55 = vpop.xlane.xlu1 %1475 }
 0x595   : > { %v1487_v57 = vmul.f32 0.03125, %v1476_v55  ;;  %v1491_v60 = vsub.f32 %v1457_v38, %v1485_v56  ;;  %v1502_v62 = vsel %vm1464_vm3, %v1496_v58, 0.0  ;;  %v1508_v1 = vsel %vm1464_vm3, %v1498_v59, 0.0 }
 0x596   : > { %1503 = vadd.xlane.f32.xlu0 %v1502_v62  ;;  %v1479_v63 = vpop.xlane.xlu0 %1478 }
 0x597   : > { %v6855_v61 = vsub.f32 %v1459_v41, %v1487_v57  ;;  %v1488_v2 = vmul.f32 0.03125, %v1479_v63  ;;  %v1497_v4 = vmul.f32 %v1491_v60, %v1491_v60 }
 0x598   : > { %v1482_v0 = vpop.xlane.xlu1 %1481 }
 0x599   : > { %v1489_v3 = vmul.f32 0.03125, %v1482_v0  ;;  %v1499_v5 = vmul.f32 %v6855_v61, %v6855_v61  ;;  %v6861_v6 = vsub.f32 %v1460_v42, %v1488_v2  ;;  %v1505_v8 = vsel %vm1464_vm3, %v1497_v4, 0.0  ;;  %v4213_v42 = vld [vmem:[%s1043_s11] ss:$0 sm:$0xff]  ;;  %s5956_s11 = smov 16  }
 0x59a   : > { %1509 = vadd.xlane.f32.xlu0 %v1508_v1  ;;  %1506 = vadd.xlane.f32.xlu1 %v1505_v8  ;;  %v4214_v0 = vld [vmem:[%s1060_s27] ss:$0 sm:$0xff] }
 0x59b   : > { %v6863_v7 = vsub.f32 %v1461_v43, %v1489_v3  ;;  %v1511_v9 = vsel %vm1464_vm3, %v1499_v5, 0.0  ;;  %v1500_v10 = vmul.f32 %v6861_v6, %v6861_v6 }
 0x59d   : > { %v1501_v11 = vmul.f32 %v6863_v7, %v6863_v7  ;;  %v1514_v12 = vsel %vm1464_vm3, %v1500_v10, 0.0 }
 0x59e   : > { %1512 = vadd.xlane.f32.xlu1 %v1511_v9  ;;  %1515 = vadd.xlane.f32.xlu0 %v1514_v12 }
 0x59f   : > { %v1517_v13 = vsel %vm1464_vm3, %v1501_v11, 0.0 }
 0x5a2   : > { %1518 = vadd.xlane.f32.xlu1 %v1517_v13 }
 0x623   : > { %v1504_v17 = vpop.xlane.xlu0 %1503 }
 0x624   : > { %v1520_v18 = vmul.f32 0.03125, %v1504_v17 }
 0x626   : > { %v1526_v19 = vadd.f32 1e-05, %v1520_v18 }
 0x627   : > { %v1507_v20 = vpop.xlane.xlu1 %1506  ;;  %v1510_v21 = vpop.xlane.xlu0 %1509 }
 0x628   : > { %4985 = vrsqrt.f32 %v1526_v19  ;;  %v1521_v22 = vmul.f32 0.03125, %v1507_v20  ;;  %v1522_v23 = vmul.f32 0.03125, %v1510_v21 }
 0x62a   : > { %v1527_v24 = vadd.f32 1e-05, %v1521_v22  ;;  %v1528_v25 = vadd.f32 1e-05, %v1522_v23 }
 0x62b   : > { %v1513_v26 = vpop.xlane.xlu1 %1512  ;;  %v1516_v27 = vpop.xlane.xlu0 %1515 }
 0x62c   : > { %4987 = vrsqrt.f32 %v1527_v24  ;;  %v1523_v28 = vmul.f32 0.03125, %v1513_v26  ;;  %v1524_v30 = vmul.f32 0.03125, %v1516_v27 }
 0x62d   : > { %4989 = vrsqrt.f32 %v1528_v25 }
 0x62e   : > { %v1529_v29 = vadd.f32 1e-05, %v1523_v28  ;;  %v1530_v34 = vadd.f32 1e-05, %v1524_v30 }
 0x62f   : > { %v1519_v31 = vpop.xlane.xlu1 %1518 }
 0x630   : > { %4991 = vrsqrt.f32 %v1529_v29  ;;  %v1525_v32 = vmul.f32 0.03125, %v1519_v31 }
 0x632   : > { %v4986_v33 = vpop.eup %4985  ;;  %v1531_v35 = vadd.f32 1e-05, %v1525_v32 }
 0x633   : > { %v1538_v36 = vmul.f32 %v4986_v33, %v6847_v52 }
 0x634   : > { %4993 = vrsqrt.f32 %v1531_v35 }
 0x635   : > { %4995 = vrsqrt.f32 %v1530_v34  ;;  %v1550_v40 = vmul.f32 %v4212_v37, %v1538_v36 }
 0x636   : > { %v4988_v38 = vpop.eup %4987 }
 0x637   : > { %v1539_v39 = vmul.f32 %v4988_v38, %v1491_v60  ;;  %v4990_v41 = vpop.eup %4989  ;;  %v1562_v45 = vadd.f32 %v4213_v42, %v1550_v40 }
 0x638   : > { %v1540_v47 = vmul.f32 %v4990_v41, %v6849_v53 }
 0x639   : > { %v1551_v43 = vmul.f32 %v4212_v37, %v1539_v39 }
 0x63a   : > { %v4992_v44 = vpop.eup %4991  ;;  %v1552_v52 = vmul.f32 %v4212_v37, %v1540_v47 }
 0x63b   : > { %v1563_v46 = vadd.f32 %v4213_v42, %v1551_v43  ;;  %v1541_v48 = vmul.f32 %v4992_v44, %v6855_v61 }
 0x63c   : > { %v1564_v57 = vadd.f32 %v4213_v42, %v1552_v52 }
 0x63d   : > { %v1568_v49 = vpack.c.bf16 %v1563_v46, %v1562_v45  ;;  %v1553_v50 = vmul.f32 %v4212_v37, %v1541_v48 }
 0x63e   : > { %v4994_v51 = vpop.eup %4993 }
 0x63f   : > { %4408 = vmatmul.mubr.msk.bf16.vlgmr.msra.gmra.mrb[0].mxu1 %vm1464_vm3, %v1568_v49  ;;  %v4996_v54 = vpop.eup %4995  ;;  %v1565_v55 = vadd.f32 %v4213_v42, %v1553_v50  ;;  %v1543_v56 = vmul.f32 %v4994_v51, %v6863_v7 }
 0x640   : > { %4411 = vmatprep.mubr.msk.bf16.mxu1 %vm5949_vm4, %v5948_v15  ;;  %v1542_v58 = vmul.f32 %v4996_v54, %v6861_v6 }
 0x641   : > { %v1569_v53 = vpack.c.bf16 %v1565_v55, %v1564_v57  ;;  %v1555_v59 = vmul.f32 %v4212_v37, %v1543_v56 }
 0x642   : > { %v1554_v60 = vmul.f32 %v4212_v37, %v1542_v58 }
 0x643   : > { %v1567_v61 = vadd.f32 %v4213_v42, %v1555_v59 }
 0x644   : > { %v1566_v62 = vadd.f32 %v4213_v42, %v1554_v60 }
 0x646   : > { %v1570_v63 = vpack.c.bf16 %v1567_v61, %v1566_v62 }
 0x647   : > { %4412 = vmatmul.mubr.msk.bf16.gmra.mrb[4].mxu1 %vm1464_vm3, %v1569_v53 }
 0x648   : > { %4415 = vmatprep.mubr.msk.bf16.mxu1 %vm5949_vm4, %v5948_v15 }
 0x64f   : > { %4416 = vmatmul.mubr.msk.bf16.gmra.mrb[8].mxu1 %vm1464_vm3, %v1570_v63 }
 0x712   : > { %v1637_v1 = vpop.f32.mrb[0].mxu1 }
 0x713   : > { %v4409_v2 = vpop.f32.mrb[1].mxu1  ;;  %v1638_v4 = vadd.f32 %v4214_v0, %v1637_v1 }
 0x714   : > { %v1640_v3 = vpop.f32.mrb[2].mxu1 }
 0x715   : > { %v1641_v5 = vadd.f32 %v4214_v0, %v1640_v3  ;;  %v4410_v6 = vpop.f32.mrb[3].mxu1 }
 0x717   : > { %v4896_v7 = vpack.i.bf16 %v1641_v5, %v1638_v4  ;;  %v6899_v8 = vpack.c.bf16 %v1641_v5, %v1638_v4 }
 0x719   : > { %4897 = vrot.lane.b32.xlu0 %v4896_v7, %s5950_s28  ;;  %4423 = vmatprep.mubr.msk.bf16.mxu1 %vm1742_vm5, %v6899_v8 }
 0x71a   : > { %v1645_v9 = vpop.f32.mrb[4].mxu1 }
 0x71b   : > { %v4413_v10 = vpop.f32.mrb[5].mxu1  ;;  %v1646_v12 = vadd.f32 %v4214_v0, %v1645_v9 }
 0x71c   : > { %v1648_v11 = vpop.f32.mrb[6].mxu1 }
 0x71d   : > { %v1649_v13 = vadd.f32 %v4214_v0, %v1648_v11  ;;  %v4414_v14 = vpop.f32.mrb[7].mxu1  ;;  %v6911_v24 = vpack.c.bf16 %v1646_v12, %v1646_v12 }
 0x71f   : > { %v4901_v16 = vpack.i.bf16 %v1649_v13, %v1646_v12 }
 0x721   : > { %4902 = vrot.lane.b32.xlu1 %v4901_v16, %s5950_s28 }
 0x722   : > { %v1653_v17 = vpop.f32.mrb[8].mxu1 }
 0x723   : > { %v1654_v18 = vadd.f32 %v4214_v0, %v1653_v17  ;;  %v4417_v19 = vpop.f32.mrb[9].mxu1 }
 0x724   : > { %v1656_v20 = vpop.f32.mrb[10].mxu1 }
 0x725   : > { %v1657_v21 = vadd.f32 %v4214_v0, %v1656_v20  ;;  %1674 = vrot.lane.b32.xlu1 %v1654_v18, %s5950_s28  ;;  %v4418_v22 = vpop.f32.mrb[11].mxu1  ;;  %v6903_v23 = vpack.c.bf16 %v1654_v18, %v1649_v13 }
 0x727   : > { %4431 = vmatprep.mubr.msk.bf16.mxu0 %vm1742_vm5, %v6903_v23  ;;  %1676 = vrot.lane.b32.xlu0 %v1657_v21, %s5950_s28  ;;  %v6915_v25 = vpack.c.bf16 %v1657_v21, %v1657_v21 }
 0x729   : > { %4907 = vrot.lane.b32.xlu1 %v4896_v7, %s5951_s0 }
 0x72b   : > { %1692 = vrot.lane.b32.xlu0 %v1654_v18, %s5951_s0 }
 0x72d   : > { %4912 = vrot.lane.b32.xlu1 %v4901_v16, %s5951_s0 }
 0x72f   : > { %1694 = vrot.lane.b32.xlu0 %v1657_v21, %s5951_s0 }
 0x731   : > { %4917 = vrot.lane.b32.xlu1 %v4896_v7, %s5952_s16 }
 0x733   : > { %1710 = vrot.lane.b32.xlu0 %v1654_v18, %s5952_s16 }
 0x735   : > { %4922 = vrot.lane.b32.xlu1 %v4901_v16, %s5952_s16 }
 0x737   : > { %1712 = vrot.lane.b32.xlu0 %v1657_v21, %s5952_s16 }
 0x739   : > { %1738 = vrot.lane.b32.xlu1 %v6899_v8, %s5953_s3 }
 0x73b   : > { %1805 = vrot.lane.b32.xlu0 %v6903_v23, %s5953_s3 }
 0x73d   : > { %1740 = vrot.lane.b32.xlu1 %v6911_v24, %s5953_s3 }
 0x73f   : > { %1807 = vrot.lane.b32.xlu0 %v6915_v25, %s5953_s3 }
 0x78b   : > { %v4898_v26 = vpop.permute.xlu0 %4897 }
 0x78c   : > { %v4900_v27 = vunpack.i.h.bf16 %v4898_v26  ;;  %v4899_v28 = vunpack.i.l.bf16 %v4898_v26 }
 0x78e   : > { %v6919_v29 = vpack.c.bf16 %v4900_v27, %v4899_v28 }
 0x790   : > { %1871 = vrot.lane.b32.xlu1 %v6919_v29, %s5953_s3 }
 0x793   : > { %v4903_v30 = vpop.permute.xlu1 %4902 }
 0x794   : > { %v4904_v31 = vunpack.i.l.bf16 %v4903_v30  ;;  %v4905_v32 = vunpack.i.h.bf16 %v4903_v30 }
 0x796   : > { %v6923_v33 = vpack.c.bf16 %v4904_v31, %v4904_v31 }
 0x797   : > { %v1675_v34 = vpop.permute.xlu1 %1674 }
 0x798   : > { %v6925_v35 = vpack.c.bf16 %v1675_v34, %v4905_v32  ;;  %1873 = vrot.lane.b32.xlu1 %v6923_v33, %s5953_s3 }
 0x799   : > { %v1677_v36 = vpop.permute.xlu0 %1676 }
 0x79a   : > { %1937 = vrot.lane.b32.xlu0 %v6925_v35, %s5953_s3  ;;  %v6931_v38 = vpack.c.bf16 %v1677_v36, %v1677_v36 }
 0x79b   : > { %v4908_v37 = vpop.permute.xlu1 %4907 }
 0x79c   : > { %v4910_v39 = vunpack.i.h.bf16 %v4908_v37  ;;  %v4909_v40 = vunpack.i.l.bf16 %v4908_v37 }
 0x79d   : > { %v1693_v41 = vpop.permute.xlu0 %1692 }
 0x79e   : > { %1939 = vrot.lane.b32.xlu0 %v6931_v38, %s5953_s3  ;;  %v6935_v42 = vpack.c.bf16 %v4910_v39, %v4909_v40  ;;  %v2265_v39 = vlaneseq }
 0x79f   : > { %v4913_v43 = vpop.permute.xlu1 %4912 }
 0x7a0   : > { %v4915_v44 = vunpack.i.h.bf16 %v4913_v43  ;;  %v4914_v45 = vunpack.i.l.bf16 %v4913_v43  ;;  %2003 = vrot.lane.b32.xlu1 %v6935_v42, %s5953_s3  ;;  %v7061_v40 = vand.u32 127, %v2265_v39 }
 0x7a1   : > { %v1695_v46 = vpop.permute.xlu0 %1694 }
 0x7a2   : > { %v6939_v47 = vpack.c.bf16 %v1693_v41, %v4915_v44  ;;  %v6941_v48 = vpack.c.bf16 %v4914_v45, %v4914_v45  ;;  %v6947_v54 = vpack.c.bf16 %v1695_v46, %v1695_v46  ;;  %vm2267_vm7 = vcmp.lt.s32.totalorder %v7061_v40, 17 }
 0x7a3   : > { %v4918_v49 = vpop.permute.xlu1 %4917 }
 0x7a4   : > { %v4920_v50 = vunpack.i.h.bf16 %v4918_v49  ;;  %v4919_v51 = vunpack.i.l.bf16 %v4918_v49  ;;  %2069 = vrot.lane.b32.xlu0 %v6939_v47, %s5953_s3  ;;  %2005 = vrot.lane.b32.xlu1 %v6941_v48, %s5953_s3 }
 0x7a5   : > { %v1711_v52 = vpop.permute.xlu0 %1710 }
 0x7a6   : > { %v6949_v55 = vpack.c.bf16 %v4920_v50, %v4919_v51 }
 0x7a7   : > { %v4923_v56 = vpop.permute.xlu1 %4922 }
 0x7a8   : > { %v4925_v57 = vunpack.i.h.bf16 %v4923_v56  ;;  %v4924_v58 = vunpack.i.l.bf16 %v4923_v56  ;;  %2071 = vrot.lane.b32.xlu0 %v6947_v54, %s5953_s3  ;;  %2135 = vrot.lane.b32.xlu1 %v6949_v55, %s5953_s3 }
 0x7a9   : > { %v1713_v53 = vpop.permute.xlu0 %1712 }
 0x7aa   : > { %v6955_v59 = vpack.c.bf16 %v1711_v52, %v4925_v57  ;;  %v6957_v60 = vpack.c.bf16 %v4924_v58, %v4924_v58  ;;  %v6967_v1 = vpack.c.bf16 %v1713_v53, %v1713_v53 }
 0x7ab   : > { %v1739_v61 = vpop.permute.xlu1 %1738 }
 0x7ac   : > { %4615 = vmatprep.subr.msk.bf16.mxu1 %vm1742_vm5, %v1739_v61  ;;  %2201 = vrot.lane.b32.xlu0 %v6955_v59, %s5953_s3  ;;  %v1750_v62 = vsel %vm1742_vm5, %v1739_v61, 0 }
 0x7ad   : > { %2137 = vrot.lane.b32.xlu1 %v6957_v60, %s5953_s3  ;;  %4420 = vmatpush3.bf16.xpose.msra.mxu1 %v1750_v62  ;;  %v1806_v63 = vpop.permute.xlu0 %1805 }
 0x7ae   : > { %4617 = vmatprep.subr.msk.bf16.mxu0 %vm1742_vm5, %v1806_v63  ;;  %v1816_v0 = vsel %vm1742_vm5, %v1806_v63, 0 }
 0x7af   : > { %v1741_v2 = vpop.permute.xlu1 %1740  ;;  %4428 = vmatpush3.bf16.xpose.msra.mxu0 %v1816_v0 }
 0x7b0   : > { %4616 = vmatprep.subr.msk.bf16.mxu1 %vm1742_vm5, %v1741_v2  ;;  %2700 = vrot.lane.b32.xlu0 %v6919_v29, %s5954_s30  ;;  %v1753_v4 = vsel %vm1742_vm5, %v1741_v2, 0 }
 0x7b1   : > { %2203 = vrot.lane.b32.xlu1 %v6967_v1, %s5953_s3  ;;  %v1808_v3 = vpop.permute.xlu0 %1807 }
 0x7b2   : > { %4618 = vmatprep.subr.msk.bf16.mxu0 %vm1742_vm5, %v1808_v3  ;;  %v1819_v5 = vsel %vm1742_vm5, %v1808_v3, 0 }
 0x7b4   : > { %2640 = vrot.lane.b32.xlu0 %v6915_v25, %s5954_s30 }
 0x7b5   : > { %2575 = vrot.lane.b32.xlu1 %v6899_v8, %s5954_s30  ;;  %4422 = vmatpush3.bf16.xpose.msra.mxu1 %v1753_v4 }
 0x7b7   : > { %4430 = vmatpush3.bf16.xpose.msra.mxu0 %v1819_v5 }
 0x7b9   : > { %2577 = vrot.lane.b32.xlu1 %v6911_v24, %s5954_s30 }
 0x7bc   : > { %4424 = vmatmul.mubr.msk.bf16.vlgmr.msra.gmra.mrb[12].mxu1 %vm1742_vm5, %v6911_v24 }
 0x7bd   : > { %2638 = vrot.lane.b32.xlu1 %v6903_v23, %s5954_s30  ;;  %4439 = vmatprep.mubr.msk.bf16.mxu1 %vm1742_vm5, %v6919_v29 }
 0x7be   : > { %4432 = vmatmul.mubr.msk.bf16.vlgmr.msra.gmra.mrb[0].mxu0 %vm1742_vm5, %v6915_v25 }
 0x7bf   : > { %4447 = vmatprep.mubr.msk.bf16.mxu0 %vm1742_vm5, %v6925_v35 }
 0x7c1   : > { %2702 = vrot.lane.b32.xlu1 %v6923_v33, %s5954_s30 }
 0x7c5   : > { %2824 = vrot.lane.b32.xlu1 %v6935_v42, %s5954_s30 }
 0x7c9   : > { %2762 = vrot.lane.b32.xlu1 %v6925_v35, %s5954_s30 }
 0x7cd   : > { %2826 = vrot.lane.b32.xlu1 %v6941_v48, %s5954_s30 }
 0x7d1   : > { %2948 = vrot.lane.b32.xlu1 %v6949_v55, %s5954_s30 }
 0x7d5   : > { %2886 = vrot.lane.b32.xlu1 %v6939_v47, %s5954_s30 }
 0x7d9   : > { %2764 = vrot.lane.b32.xlu1 %v6931_v38, %s5954_s30 }
 0x802   : > { %v1872_v6 = vpop.permute.xlu1 %1871 }
 0x803   : > { %v1882_v7 = vsel %vm1742_vm5, %v1872_v6, 0  ;;  %4619 = vmatprep.subr.msk.bf16.mxu1 %vm1742_vm5, %v1872_v6 }
 0x804   : > { %4436 = vmatpush3.bf16.xpose.msra.mxu1 %v1882_v7 }
 0x80a   : > { %v1874_v8 = vpop.permute.xlu1 %1873 }
 0x80b   : > { %v1885_v9 = vsel %vm1742_vm5, %v1874_v8, 0  ;;  %4620 = vmatprep.subr.msk.bf16.mxu1 %vm1742_vm5, %v1874_v8 }
 0x80c   : > { %v1938_v10 = vpop.permute.xlu0 %1937  ;;  %4438 = vmatpush3.bf16.xpose.msra.mxu1 %v1885_v9 }
 0x80d   : > { %v1948_v11 = vsel %vm1742_vm5, %v1938_v10, 0  ;;  %4621 = vmatprep.subr.msk.bf16.mxu0 %vm1742_vm5, %v1938_v10 }
 0x80e   : > { %4444 = vmatpush3.bf16.xpose.msra.mxu0 %v1948_v11 }
 0x810   : > { %v1940_v12 = vpop.permute.xlu0 %1939 }
 0x811   : > { %4622 = vmatprep.subr.msk.bf16.mxu0 %vm1742_vm5, %v1940_v12  ;;  %v1951_v16 = vsel %vm1742_vm5, %v1940_v12, 0 }
 0x812   : > { %v2004_v13 = vpop.permute.xlu1 %2003 }
 0x813   : > { %v2014_v14 = vsel %vm1742_vm5, %v2004_v13, 0  ;;  %4440 = vmatmul.mubr.msk.bf16.vlgmr.msra.gmra.mrb[16].mxu1 %vm1742_vm5, %v6923_v33  ;;  %4623 = vmatprep.subr.msk.bf16.mxu1 %vm1742_vm5, %v2004_v13 }
 0x814   : > { %4452 = vmatpush3.bf16.xpose.msra.mxu1 %v2014_v14  ;;  %4455 = vmatprep.mubr.msk.bf16.mxu1 %vm1742_vm5, %v6935_v42 }
 0x816   : > { %4446 = vmatpush3.bf16.xpose.msra.mxu0 %v1951_v16  ;;  %v2070_v17 = vpop.permute.xlu0 %2069  ;;  %v2006_v18 = vpop.permute.xlu1 %2005 }
 0x817   : > { %4624 = vmatprep.subr.msk.bf16.mxu1 %vm1742_vm5, %v2006_v18  ;;  %4625 = vmatprep.subr.msk.bf16.mxu0 %vm1742_vm5, %v2070_v17  ;;  %v2017_v20 = vsel %vm1742_vm5, %v2006_v18, 0  ;;  %v2080_v21 = vsel %vm1742_vm5, %v2070_v17, 0 }
 0x81a   : > { %v2136_v19 = vpop.permute.xlu1 %2135  ;;  %v2072_v22 = vpop.permute.xlu0 %2071 }
 0x81b   : > { %v2146_v24 = vsel %vm1742_vm5, %v2136_v19, 0  ;;  %v2083_v26 = vsel %vm1742_vm5, %v2072_v22, 0 }
 0x81c   : > { %4454 = vmatpush3.bf16.xpose.msra.mxu1 %v2017_v20 }
 0x81d   : > { %4448 = vmatmul.mubr.msk.bf16.vlgmr.msra.gmra.mrb[4].mxu0 %vm1742_vm5, %v6931_v38  ;;  %4627 = vmatprep.subr.msk.bf16.mxu1 %vm1742_vm5, %v2136_v19 }
 0x81e   : > { %4460 = vmatpush3.bf16.xpose.msra.mxu0 %v2080_v21  ;;  %4463 = vmatprep.mubr.msk.bf16.mxu0 %vm1742_vm5, %v6939_v47  ;;  %v2202_v27 = vpop.permute.xlu0 %2201 }
 0x81f   : > { %v2138_v23 = vpop.permute.xlu1 %2137  ;;  %4626 = vmatprep.subr.msk.bf16.mxu0 %vm1742_vm5, %v2072_v22  ;;  %v2212_v30 = vsel %vm1742_vm5, %v2202_v27, 0 }
 0x820   : > { %v2149_v29 = vsel %vm1742_vm5, %v2138_v23, 0 }
 0x822   : > { %v2701_v33 = vpop.permute.xlu0 %2700 }
 0x823   : > { %4456 = vmatmul.mubr.msk.bf16.vlgmr.msra.gmra.mrb[20].mxu1 %vm1742_vm5, %v6941_v48  ;;  %v2204_v25 = vpop.permute.xlu1 %2203 }
 0x824   : > { %4468 = vmatpush3.bf16.xpose.msra.mxu1 %v2146_v24  ;;  %4471 = vmatprep.mubr.msk.bf16.mxu1 %vm1742_vm5, %v6949_v55  ;;  %v2215_v32 = vsel %vm1742_vm5, %v2204_v25, 0 }
 0x825   : > { %4628 = vmatprep.subr.msk.bf16.mxu1 %vm1742_vm5, %v2138_v23 }
 0x826   : > { %4462 = vmatpush3.bf16.xpose.msra.mxu0 %v2083_v26 }
 0x827   : > { %4629 = vmatprep.subr.msk.bf16.mxu0 %vm1742_vm5, %v2202_v27  ;;  %v2576_v28 = vpop.permute.xlu1 %2575 }
 0x82b   : > { %v2578_v31 = vpop.permute.xlu1 %2577 }
 0x82c   : > { %4470 = vmatpush3.bf16.xpose.msra.mxu1 %v2149_v29  ;;  %v2588_v35 = vsel %vm2586_vm6, %v2578_v31, 0 }
 0x82d   : > { %4464 = vmatmul.mubr.msk.bf16.vlgmr.msra.gmra.mrb[8].mxu0 %vm1742_vm5, %v6947_v54  ;;  %4483 = vmatprep.subr.bf16.mxu1 %v2576_v28 }
 0x82e   : > { %4476 = vmatpush3.bf16.xpose.msra.mxu0 %v2212_v30  ;;  %4479 = vmatprep.mubr.msk.bf16.mxu0 %vm1742_vm5, %v6955_v59 }
 0x82f   : > { %4630 = vmatprep.subr.msk.bf16.mxu0 %vm1742_vm5, %v2204_v25  ;;  %v7050_v34 = vpop.permute.xlu1 %2638 }
 0x833   : > { %4472 = vmatmul.mubr.msk.bf16.vlgmr.msra.gmra.mrb[24].mxu1 %vm1742_vm5, %v6957_v60  ;;  %v2703_v36 = vpop.permute.xlu1 %2702 }
 0x834   : > { %4484 = vmatpush3.bf16.msra.mxu1 %v2576_v28  ;;  %v2712_v37 = vsel %vm2586_vm6, %v2703_v36, 0 }
 0x835   : > { %4631 = vmatprep.subr.msk.bf16.mxu1 %vm2586_vm6, %v2578_v31 }
 0x836   : > { %4478 = vmatpush3.bf16.xpose.msra.mxu0 %v2215_v32 }
 0x837   : > { %4499 = vmatprep.subr.bf16.mxu0 %v2701_v33  ;;  %v7058_v38 = vpop.permute.xlu1 %2824 }
 0x838   : > { %4486 = vmatpush3.bf16.msra.mxu1 %v2588_v35 }
 0x839   : > { %4491 = vmatprep.subr.bf16.mxu1 %v7050_v34 }
 0x83d   : > { %4480 = vmatmul.mubr.msk.bf16.vlgmr.msra.gmra.mrb[12].mxu0 %vm1742_vm5, %v6967_v1 }
 0x83e   : > { %4500 = vmatpush3.bf16.msra.mxu0 %v2701_v33 }
 0x83f   : > { %4633 = vmatprep.subr.msk.bf16.mxu0 %vm2586_vm6, %v2703_v36 }
 0x842   : > { %4502 = vmatpush3.bf16.msra.mxu0 %v2712_v37 }
 0x843   : > { %4515 = vmatprep.subr.bf16.mxu0 %v7058_v38 }
 0x88f   : > { %v4425_v41 = vpop.f32.mrb[12].mxu1 }
 0x890   : > { %v7066_v42 = vsel %vm2267_vm7, %v4425_v41, -1e+30  ;;  %v1789_v43 = vpop.f32.mrb[13].mxu1 }
 0x891   : > { %v4426_v44 = vpop.f32.mrb[14].mxu1  ;;  %v4433_v45 = vpop.f32.mrb[0].mxu0  ;;  %v2301_v46 = vsel %vm2294_vm8, %v7066_v42, -inf  ;;  %v7072_v47 = vsel %vm2267_vm7, %v1789_v43, -1e+30 }
 0x892   : > { %v1792_v48 = vpop.f32.mrb[15].mxu1  ;;  %v1855_v49 = vpop.f32.mrb[1].mxu0  ;;  %2302 = vmax.xlane.f32.xlu0 %v2301_v46  ;;  %v2295_v57 = vsel %vm2294_vm8, %v7072_v47, -inf  ;;  %v7088_v58 = vsel %vm2267_vm7, %v4433_v45, -1e+30 }
 0x893   : > { %v7076_v50 = vsel %vm2267_vm7, %v1792_v48, -1e+30  ;;  %v4434_v51 = vpop.f32.mrb[2].mxu0  ;;  %v2310_v61 = vsel %vm2294_vm8, %v7088_v58, -inf  ;;  %v7096_v62 = vsel %vm2267_vm7, %v1855_v49, -1e+30  ;;  %v7164_v43 = vpop.permute.xlu1 %2762 }
 0x894   : > { %v1858_v52 = vpop.f32.mrb[3].mxu0  ;;  %v2298_v55 = vsel %vm2294_vm8, %v7076_v50, -inf  ;;  %v2304_v63 = vsel %vm2294_vm8, %v7096_v62, -inf }
 0x895   : > { %v7082_v56 = vsel %vm2267_vm7, %v1858_v52, -1e+30  ;;  %2299 = vmax.xlane.f32.xlu1 %v2298_v55 }
 0x896   : > { %2296 = vmax.xlane.f32.xlu0 %v2295_v57  ;;  %v2307_v53 = vsel %vm2294_vm8, %v7082_v56, -inf }
 0x899   : > { %2308 = vmax.xlane.f32.xlu1 %v2307_v53 }
 0x89a   : > { %2311 = vmax.xlane.f32.xlu0 %v2310_v61  ;;  %v7184_v61 = vpop.permute.xlu1 %2826 }
 0x89e   : > { %2305 = vmax.xlane.f32.xlu0 %v2304_v63 }
 0x8e6   : > { %v4441_v0 = vpop.f32.mrb[16].mxu1 }
 0x8e7   : > { %v7102_v2 = vsel %vm2267_vm7, %v4441_v0, -1e+30  ;;  %v1921_v3 = vpop.f32.mrb[17].mxu1 }
 0x8e8   : > { %v7106_v4 = vsel %vm2267_vm7, %v1921_v3, -1e+30  ;;  %v4442_v5 = vpop.f32.mrb[18].mxu1  ;;  %v2319_v6 = vsel %vm2294_vm8, %v7102_v2, -inf }
 0x8e9   : > { %2320 = vmax.xlane.f32.xlu1 %v2319_v6  ;;  %v1924_v7 = vpop.f32.mrb[19].mxu1  ;;  %v2313_v8 = vsel %vm2294_vm8, %v7106_v4, -inf }
 0x8ea   : > { %v7114_v9 = vsel %vm2267_vm7, %v1924_v7, -1e+30  ;;  %2314 = vmax.xlane.f32.xlu0 %v2313_v8  ;;  %v7198_v8 = vpop.permute.xlu1 %2948 }
 0x8eb   : > { %v2316_v10 = vsel %vm2294_vm8, %v7114_v9, -inf }
 0x8ee   : > { %2317 = vmax.xlane.f32.xlu0 %v2316_v10 }
 0x8f0   : > { %v4449_v11 = vpop.f32.mrb[4].mxu0 }
 0x8f1   : > { %v7120_v12 = vsel %vm2267_vm7, %v4449_v11, -1e+30  ;;  %v1987_v13 = vpop.f32.mrb[5].mxu0 }
 0x8f2   : > { %v4450_v14 = vpop.f32.mrb[6].mxu0  ;;  %v2328_v16 = vsel %vm2294_vm8, %v7120_v12, -inf  ;;  %v7126_v17 = vsel %vm2267_vm7, %v1987_v13, -1e+30 }
 0x8f3   : > { %v1990_v18 = vpop.f32.mrb[7].mxu0  ;;  %2329 = vmax.xlane.f32.xlu0 %v2328_v16  ;;  %v2322_v20 = vsel %vm2294_vm8, %v7126_v17, -inf  ;;  %v7202_v14 = vpop.permute.xlu1 %2886 }
 0x8f4   : > { %v7150_v30 = vsel %vm2267_vm7, %v1990_v18, -1e+30  ;;  %v7204_v16 = vpop.permute.xlu0 %2640 }
 0x8f5   : > { %v2325_v32 = vsel %vm2294_vm8, %v7150_v30, -inf }
 0x8f6   : > { %v4457_v19 = vpop.f32.mrb[20].mxu1 }
 0x8f7   : > { %v7132_v21 = vsel %vm2267_vm7, %v4457_v19, -1e+30  ;;  %2323 = vmax.xlane.f32.xlu0 %v2322_v20  ;;  %v2053_v22 = vpop.f32.mrb[21].mxu1  ;;  %v7206_v18 = vpop.permute.xlu1 %2764 }
 0x8f8   : > { %v4458_v23 = vpop.f32.mrb[22].mxu1  ;;  %v2337_v24 = vsel %vm2294_vm8, %v7132_v21, -inf  ;;  %v7138_v25 = vsel %vm2267_vm7, %v2053_v22, -1e+30 }
 0x8f9   : > { %2338 = vmax.xlane.f32.xlu1 %v2337_v24  ;;  %v2056_v26 = vpop.f32.mrb[23].mxu1  ;;  %v2331_v29 = vsel %vm2294_vm8, %v7138_v25, -inf }
 0x8fa   : > { %v7142_v27 = vsel %vm2267_vm7, %v2056_v26, -1e+30 }
 0x8fb   : > { %v2334_v28 = vsel %vm2294_vm8, %v7142_v27, -inf }
 0x8fc   : > { %2335 = vmax.xlane.f32.xlu0 %v2334_v28 }
 0x8fd   : > { %2332 = vmax.xlane.f32.xlu1 %v2331_v29 }
 0x900   : > { %v4465_v31 = vpop.f32.mrb[8].mxu0 }
 0x901   : > { %v7156_v33 = vsel %vm2267_vm7, %v4465_v31, -1e+30  ;;  %v2119_v35 = vpop.f32.mrb[9].mxu0  ;;  %2326 = vmax.xlane.f32.xlu1 %v2325_v32 }
 0x902   : > { %v4466_v36 = vpop.f32.mrb[10].mxu0  ;;  %v2346_v37 = vsel %vm2294_vm8, %v7156_v33, -inf  ;;  %v7162_v39 = vsel %vm2267_vm7, %v2119_v35, -1e+30 }
 0x903   : > { %v2122_v41 = vpop.f32.mrb[11].mxu0  ;;  %2347 = vmax.xlane.f32.xlu0 %v2346_v37  ;;  %v2340_v45 = vsel %vm2294_vm8, %v7162_v39, -inf }
 0x904   : > { %v7190_v0 = vsel %vm2267_vm7, %v2122_v41, -1e+30 }
 0x905   : > { %v2343_v5 = vsel %vm2294_vm8, %v7190_v0, -inf }
 0x906   : > { %v4473_v44 = vpop.f32.mrb[24].mxu1 }
 0x907   : > { %v7170_v46 = vsel %vm2267_vm7, %v4473_v44, -1e+30  ;;  %2341 = vmax.xlane.f32.xlu0 %v2340_v45  ;;  %v2185_v48 = vpop.f32.mrb[25].mxu1 }
 0x908   : > { %v4474_v49 = vpop.f32.mrb[26].mxu1  ;;  %v2355_v51 = vsel %vm2294_vm8, %v7170_v46, -inf  ;;  %v7176_v52 = vsel %vm2267_vm7, %v2185_v48, -1e+30 }
 0x909   : > { %2356 = vmax.xlane.f32.xlu1 %v2355_v51  ;;  %v2188_v55 = vpop.f32.mrb[27].mxu1  ;;  %v2349_v63 = vsel %vm2294_vm8, %v7176_v52, -inf }
 0x90a   : > { %v7180_v57 = vsel %vm2267_vm7, %v2188_v55, -1e+30 }
 0x90b   : > { %v2352_v53 = vsel %vm2294_vm8, %v7180_v57, -inf }
 0x90c   : > { %2353 = vmax.xlane.f32.xlu0 %v2352_v53 }
 0x90d   : > { %2350 = vmax.xlane.f32.xlu1 %v2349_v63 }
 0x910   : > { %v4481_v3 = vpop.f32.mrb[12].mxu0 }
 0x911   : > { %v7196_v6 = vsel %vm2267_vm7, %v4481_v3, -1e+30  ;;  %v2251_v7 = vpop.f32.mrb[13].mxu0  ;;  %2344 = vmax.xlane.f32.xlu1 %v2343_v5 }
 0x912   : > { %v4482_v10 = vpop.f32.mrb[14].mxu0  ;;  %v2364_v13 = vsel %vm2294_vm8, %v7196_v6, -inf }
 0x913   : > { %v2254_v11 = vpop.f32.mrb[15].mxu0 }
 0x914   : > { %v7229_v41 = vsel %vm2267_vm7, %v2254_v11, -1e+30 }
 0x915   : > { %2365 = vmax.xlane.f32.xlu1 %v2364_v13  ;;  %v2361_v45 = vsel %vm2294_vm8, %v7229_v41, -inf }
 0x91f   : > { %v2303_v19 = vpop.xlane.xlu0 %2302 }
 0x920   : > { %v2369_v20 = vsub.f32 %v7066_v42, %v2303_v19 }
 0x922   : > { %v2395_v22 = vmul.f32 1.442695, %v2369_v20  ;;  %v2300_v23 = vpop.xlane.xlu1 %2299 }
 0x923   : > { %v2368_v24 = vsub.f32 %v7076_v50, %v2300_v23  ;;  %v2297_v26 = vpop.xlane.xlu0 %2296 }
 0x924   : > { %4997 = vpow2.f32 %v2395_v22  ;;  %v2367_v28 = vsub.f32 %v7072_v47, %v2297_v26  ;;  %v7223_v47 = vsel %vm2267_vm7, %v2251_v7, -1e+30 }
 0x925   : > { %v2393_v29 = vmul.f32 1.442695, %v2368_v24  ;;  %v2358_v44 = vsel %vm2294_vm8, %v7223_v47, -inf }
 0x926   : > { %v2391_v31 = vmul.f32 1.442695, %v2367_v28  ;;  %v2309_v49 = vpop.xlane.xlu1 %2308 }
 0x927   : > { %4999 = vpow2.f32 %v2393_v29  ;;  %v2312_v48 = vpop.xlane.xlu0 %2311  ;;  %v2371_v40 = vsub.f32 %v7082_v56, %v2309_v49 }
 0x928   : > { %5001 = vpow2.f32 %v2391_v31  ;;  %v2372_v51 = vsub.f32 %v7088_v58, %v2312_v48 }
 0x929   : > { %v2399_v53 = vmul.f32 1.442695, %v2371_v40 }
 0x92a   : > { %v2401_v63 = vmul.f32 1.442695, %v2372_v51 }
 0x92b   : > { %v2306_v55 = vpop.xlane.xlu0 %2305  ;;  %5003 = vpow2.f32 %v2399_v53 }
 0x92c   : > { %v2370_v3 = vsub.f32 %v7096_v62, %v2306_v55  ;;  %5005 = vpow2.f32 %v2401_v63 }
 0x92e   : > { %v7211_v32 = vpop.eup %4997  ;;  %v2397_v5 = vmul.f32 1.442695, %v2370_v3 }
 0x92f   : > { %v2445_v35 = vsel %vm2294_vm8, %v7211_v32, 0.0 }
 0x930   : > { %2446 = vadd.xlane.f32.xlu0 %v2445_v35  ;;  %5007 = vpow2.f32 %v2397_v5 }
 0x931   : > { %v7215_v36 = vpop.eup %4999 }
 0x932   : > { %v7217_v42 = vpop.eup %5001  ;;  %v2442_v50 = vsel %vm2294_vm8, %v7215_v36, 0.0 }
 0x933   : > { %2443 = vadd.xlane.f32.xlu1 %v2442_v50  ;;  %v2439_v37 = vsel %vm2294_vm8, %v7217_v42, 0.0 }
 0x934   : > { %2440 = vadd.xlane.f32.xlu0 %v2439_v37 }
 0x935   : > { %v7242_v7 = vpop.eup %5003 }
 0x937   : > { %2359 = vmax.xlane.f32.xlu1 %v2358_v44 }
 0x938   : > { %2362 = vmax.xlane.f32.xlu0 %v2361_v45 }
 0x948   : > { %2888 = vrot.lane.b32.xlu1 %v6947_v54, %s5954_s30  ;;  %v7244_v54 = vpop.eup %5005 }
 0x949   : > { %v2454_v56 = vsel %vm2294_vm8, %v7244_v54, 0.0  ;;  %v7250_v58 = vpop.eup %5007 }
 0x94a   : > { %v2448_v62 = vsel %vm2294_vm8, %v7250_v58, 0.0 }
 0x94e   : > { %2950 = vrot.lane.b32.xlu0 %v6957_v60, %s5954_s30  ;;  %v2451_v60 = vsel %vm2294_vm8, %v7242_v7, 0.0 }
 0x96c   : > { %2452 = vadd.xlane.f32.xlu1 %v2451_v60 }
 0x96d   : > { %2455 = vadd.xlane.f32.xlu0 %v2454_v56 }
 0x971   : > { %2449 = vadd.xlane.f32.xlu0 %v2448_v62 }
 0x976   : > { %v2321_v10 = vpop.xlane.xlu1 %2320 }
 0x977   : > { %v2375_v11 = vsub.f32 %v7102_v2, %v2321_v10  ;;  %v2315_v13 = vpop.xlane.xlu0 %2314 }
 0x978   : > { %v2373_v19 = vsub.f32 %v7106_v4, %v2315_v13 }
 0x979   : > { %v2407_v20 = vmul.f32 1.442695, %v2375_v11 }
 0x97a   : > { %v2403_v22 = vmul.f32 1.442695, %v2373_v19 }
 0x97b   : > { %5009 = vpow2.f32 %v2407_v20  ;;  %v2318_v23 = vpop.xlane.xlu0 %2317 }
 0x97c   : > { %v2374_v24 = vsub.f32 %v7114_v9, %v2318_v23  ;;  %5011 = vpow2.f32 %v2403_v22 }
 0x97e   : > { %v2405_v26 = vmul.f32 1.442695, %v2374_v24 }
 0x980   : > { %5013 = vpow2.f32 %v2405_v26  ;;  %v2330_v28 = vpop.xlane.xlu0 %2329 }
 0x981   : > { %v2378_v29 = vsub.f32 %v7120_v12, %v2330_v28 }
 0x983   : > { %v2413_v31 = vmul.f32 1.442695, %v2378_v29 }
 0x984   : > { %v2324_v35 = vpop.xlane.xlu0 %2323 }
 0x985   : > { %v7258_v50 = vpop.eup %5009  ;;  %5015 = vpow2.f32 %v2413_v31  ;;  %v2376_v2 = vsub.f32 %v7126_v17, %v2324_v35 }
 0x986   : > { %v2339_v4 = vpop.xlane.xlu1 %2338  ;;  %v2463_v37 = vsel %vm2294_vm8, %v7258_v50, 0.0  ;;  %v7263_v44 = vpop.eup %5011 }
 0x987   : > { %v2409_v9 = vmul.f32 1.442695, %v2376_v2  ;;  %v2381_v45 = vsub.f32 %v7132_v21, %v2339_v4  ;;  %2464 = vadd.xlane.f32.xlu1 %v2463_v37  ;;  %v2457_v17 = vsel %vm2294_vm8, %v7263_v44, 0.0 }
 0x989   : > { %5017 = vpow2.f32 %v2409_v9  ;;  %v2419_v48 = vmul.f32 1.442695, %v2381_v45  ;;  %v2336_v12 = vpop.xlane.xlu0 %2335 }
 0x98a   : > { %v7266_v49 = vpop.eup %5013  ;;  %v2380_v40 = vsub.f32 %v7142_v27, %v2336_v12  ;;  %v2333_v51 = vpop.xlane.xlu1 %2332 }
 0x98b   : > { %5019 = vpow2.f32 %v2419_v48  ;;  %v2379_v55 = vsub.f32 %v7138_v25, %v2333_v51  ;;  %2458 = vadd.xlane.f32.xlu1 %v2457_v17  ;;  %v2460_v53 = vsel %vm2294_vm8, %v7266_v49, 0.0 }
 0x98c   : > { %v2417_v21 = vmul.f32 1.442695, %v2380_v40  ;;  %2461 = vadd.xlane.f32.xlu0 %v2460_v53 }
 0x98d   : > { %v2415_v63 = vmul.f32 1.442695, %v2379_v55 }
 0x98e   : > { %5021 = vpow2.f32 %v2417_v21  ;;  %v2327_v3 = vpop.xlane.xlu1 %2326 }
 0x98f   : > { %v7274_v5 = vpop.eup %5015  ;;  %5023 = vpow2.f32 %v2415_v63  ;;  %v2377_v27 = vsub.f32 %v7150_v30, %v2327_v3 }
 0x990   : > { %v2348_v60 = vpop.xlane.xlu0 %2347  ;;  %v2472_v56 = vsel %vm2294_vm8, %v7274_v5, 0.0 }
 0x991   : > { %v2411_v62 = vmul.f32 1.442695, %v2377_v27  ;;  %v2384_v25 = vsub.f32 %v7156_v33, %v2348_v60  ;;  %2473 = vadd.xlane.f32.xlu0 %v2472_v56 }
 0x993   : > { %v7280_v10 = vpop.eup %5017  ;;  %5025 = vpow2.f32 %v2411_v62  ;;  %v2425_v11 = vmul.f32 1.442695, %v2384_v25 }
 0x994   : > { %v2342_v13 = vpop.xlane.xlu0 %2341  ;;  %v2466_v19 = vsel %vm2294_vm8, %v7280_v10, 0.0 }
 0x995   : > { %v7284_v20 = vpop.eup %5019  ;;  %5027 = vpow2.f32 %v2425_v11  ;;  %v2382_v30 = vsub.f32 %v7162_v39, %v2342_v13  ;;  %2467 = vadd.xlane.f32.xlu0 %v2466_v19 }
 0x996   : > { %v2357_v22 = vpop.xlane.xlu1 %2356  ;;  %v2481_v23 = vsel %vm2294_vm8, %v7284_v20, 0.0 }
 0x997   : > { %v2421_v33 = vmul.f32 1.442695, %v2382_v30  ;;  %v2387_v24 = vsub.f32 %v7170_v46, %v2357_v22  ;;  %2482 = vadd.xlane.f32.xlu1 %v2481_v23 }
 0x998   : > { %v7290_v26 = vpop.eup %5021 }
 0x999   : > { %v7292_v28 = vpop.eup %5023  ;;  %5029 = vpow2.f32 %v2421_v33  ;;  %v2431_v29 = vmul.f32 1.442695, %v2387_v24  ;;  %v2478_v31 = vsel %vm2294_vm8, %v7290_v26, 0.0  ;;  %v2354_v35 = vpop.xlane.xlu0 %2353 }
 0x99a   : > { %v2351_v39 = vpop.xlane.xlu1 %2350  ;;  %2479 = vadd.xlane.f32.xlu0 %v2478_v31  ;;  %v2475_v2 = vsel %vm2294_vm8, %v7292_v28, 0.0  ;;  %v2386_v37 = vsub.f32 %v7180_v57, %v2354_v35 }
 0x99b   : > { %5031 = vpow2.f32 %v2431_v29  ;;  %v2385_v4 = vsub.f32 %v7176_v52, %v2351_v39  ;;  %2476 = vadd.xlane.f32.xlu1 %v2475_v2 }
 0x99c   : > { %v2429_v52 = vmul.f32 1.442695, %v2386_v37 }
 0x99d   : > { %v7299_v46 = vpop.eup %5025  ;;  %v2427_v9 = vmul.f32 1.442695, %v2385_v4 }
 0x99e   : > { %v2345_v45 = vpop.xlane.xlu1 %2344  ;;  %v2469_v48 = vsel %vm2294_vm8, %v7299_v46, 0.0 }
 0x99f   : > { %v7304_v12 = vpop.eup %5027  ;;  %5033 = vpow2.f32 %v2427_v9  ;;  %v2383_v40 = vsub.f32 %v7190_v0, %v2345_v45  ;;  %2470 = vadd.xlane.f32.xlu1 %v2469_v48 }
 0x9a0   : > { %v2490_v51 = vsel %vm2294_vm8, %v7304_v12, 0.0 }
 0x9a1   : > { %v2423_v17 = vmul.f32 1.442695, %v2383_v40  ;;  %2491 = vadd.xlane.f32.xlu0 %v2490_v51 }
 0x9a2   : > { %v2366_v55 = vpop.xlane.xlu1 %2365 }
 0x9a3   : > { %v7309_v53 = vpop.eup %5029  ;;  %5035 = vpow2.f32 %v2423_v17  ;;  %v2390_v57 = vsub.f32 %v7196_v6, %v2366_v55 }
 0x9a4   : > { %v2484_v21 = vsel %vm2294_vm8, %v7309_v53, 0.0  ;;  %5037 = vpow2.f32 %v2429_v52 }
 0x9a5   : > { %v7314_v63 = vpop.eup %5031  ;;  %v2437_v0 = vmul.f32 1.442695, %v2390_v57  ;;  %2485 = vadd.xlane.f32.xlu0 %v2484_v21 }
 0x9a6   : > { %v2499_v3 = vsel %vm2294_vm8, %v7314_v63, 0.0 }
 0x9a7   : > { %5039 = vpow2.f32 %v2437_v0 }
 0x9a9   : > { %v7318_v27 = vpop.eup %5033  ;;  %2500 = vadd.xlane.f32.xlu0 %v2499_v3 }
 0x9aa   : > { %v2493_v60 = vsel %vm2294_vm8, %v7318_v27, 0.0 }
 0x9ab   : > { %2494 = vadd.xlane.f32.xlu1 %v2493_v60 }
 0x9ad   : > { %v7322_v6 = vpop.eup %5035 }
 0x9ae   : > { %v2487_v56 = vsel %vm2294_vm8, %v7322_v6, 0.0  ;;  %v7326_v62 = vpop.eup %5037 }
 0x9af   : > { %2488 = vadd.xlane.f32.xlu0 %v2487_v56  ;;  %v2496_v25 = vsel %vm2294_vm8, %v7326_v62, 0.0  ;;  %v2774_v56 = vsel %vm2586_vm6, %v7206_v18, 0 }
 0x9b1   : > { %v7330_v11 = vpop.eup %5039 }
 0x9b2   : > { %v2508_v13 = vsel %vm2294_vm8, %v7330_v11, 0.0 }
 0x9b3   : > { %2497 = vadd.xlane.f32.xlu0 %v2496_v25 }
 0x9b7   : > { %2509 = vadd.xlane.f32.xlu0 %v2508_v13 }
 0x9bd   : > { %v2447_v19 = vpop.xlane.xlu0 %2446 }
 0x9be   : > { %5041 = vrcp.f32 %v2447_v19 }
 0x9c0   : > { %v2444_v30 = vpop.xlane.xlu1 %2443 }
 0x9c1   : > { %5043 = vrcp.f32 %v2444_v30  ;;  %v2441_v22 = vpop.xlane.xlu0 %2440 }
 0x9c2   : > { %5045 = vrcp.f32 %v2441_v22 }
 0x9c4   : > { %v2360_v23 = vpop.xlane.xlu1 %2359 }
 0x9c5   : > { %v2388_v33 = vsub.f32 %v7223_v47, %v2360_v23  ;;  %v2363_v24 = vpop.xlane.xlu0 %2362 }
 0x9c6   : > { %v2389_v29 = vsub.f32 %v7229_v41, %v2363_v24 }
 0x9c7   : > { %v2433_v31 = vmul.f32 1.442695, %v2388_v33 }
 0x9c8   : > { %v2435_v35 = vmul.f32 1.442695, %v2389_v29  ;;  %v5042_v39 = vpop.eup %5041 }
 0x9c9   : > { %5047 = vpow2.f32 %v2433_v31  ;;  %v2537_v37 = vmul.f32 %v5042_v39, %v7211_v32  ;;  %v7361_v51 = vpop.permute.xlu0 %2950 }
 0x9ca   : > { %5049 = vpow2.f32 %v2435_v35 }
 0x9cb   : > { %v5044_v2 = vpop.eup %5043  ;;  %v2560_v40 = vpack.c.bf16 %v2537_v37, %v2537_v37 }
 0x9cc   : > { %v5046_v4 = vpop.eup %5045  ;;  %v2536_v9 = vmul.f32 %v5044_v2, %v7215_v36 }
 0x9cd   : > { %v2535_v45 = vmul.f32 %v5046_v4, %v7217_v42  ;;  %v2650_v42 = vsel %vm2586_vm6, %v7204_v16, 0 }
 0x9cf   : > { %v2559_v48 = vpack.c.bf16 %v2536_v9, %v2535_v45 }
 0x9d1   : > { %4487 = vmatprep.mubr.msk.bf16.mxu1 %vm2294_vm8, %v2559_v48 }
 0x9d2   : > { %4488 = vmatmul.mubr.msk.bf16.vlgmr.msra.gmra.mrb[28].mxu1 %vm2294_vm8, %v2560_v40 }
 0x9d3   : > { %v7341_v47 = vpop.eup %5047  ;;  %4492 = vmatpush3.bf16.msra.mxu1 %v7050_v34  ;;  %v7359_v34 = vpop.permute.xlu1 %2888 }
 0x9d4   : > { %v7344_v41 = vpop.eup %5049  ;;  %4632 = vmatprep.subr.msk.bf16.mxu1 %vm2586_vm6, %v7204_v16  ;;  %v2502_v32 = vsel %vm2294_vm8, %v7341_v47, 0.0 }
 0x9d5   : > { %2503 = vadd.xlane.f32.xlu1 %v2502_v32  ;;  %v2505_v36 = vsel %vm2294_vm8, %v7344_v41, 0.0 }
 0x9d6   : > { %2506 = vadd.xlane.f32.xlu0 %v2505_v36 }
 0x9d7   : > { %4494 = vmatpush3.bf16.msra.mxu1 %v2650_v42 }
 0x9d8   : > { %4507 = vmatprep.subr.bf16.mxu1 %v7164_v43 }
 0x9e6   : > { %3012 = vrot.lane.b32.xlu1 %v6967_v1, %s5954_s30 }
 0x9ec   : > { %3010 = vrot.lane.b32.xlu0 %v6955_v59, %s5954_s30 }
 0x9f9   : > { %v2453_v52 = vpop.xlane.xlu1 %2452 }
 0x9fa   : > { %v2456_v17 = vpop.xlane.xlu0 %2455 }
 0x9fb   : > { %5051 = vrcp.f32 %v2456_v17 }
 0x9fc   : > { %5053 = vrcp.f32 %v2453_v52 }
 0x9fe   : > { %v2450_v55 = vpop.xlane.xlu0 %2449 }
 0x9ff   : > { %5055 = vrcp.f32 %v2450_v55 }
 0xa05   : > { %v5052_v16 = vpop.eup %5051 }
 0xa06   : > { %v5054_v57 = vpop.eup %5053  ;;  %v2540_v0 = vmul.f32 %v5052_v16, %v7244_v54 }
 0xa07   : > { %v2539_v3 = vmul.f32 %v5054_v57, %v7242_v7 }
 0xa08   : > { %v2562_v60 = vpack.c.bf16 %v2540_v0, %v2540_v0 }
 0xa09   : > { %v5056_v21 = vpop.eup %5055 }
 0xa0a   : > { %v2538_v1 = vmul.f32 %v5056_v21, %v7250_v58 }
 0xa0c   : > { %v2561_v59 = vpack.c.bf16 %v2539_v3, %v2538_v1 }
 0xa0e   : > { %4495 = vmatprep.mubr.msk.bf16.mxu1 %vm2294_vm8, %v2561_v59 }
 0xa0f   : > { %4496 = vmatmul.mubr.msk.bf16.vlgmr.msra.gmra.mrb[32].mxu1 %vm2294_vm8, %v2562_v60 }
 0xa10   : > { %4508 = vmatpush3.bf16.msra.mxu1 %v7164_v43 }
 0xa11   : > { %4634 = vmatprep.subr.msk.bf16.mxu1 %vm2586_vm6, %v7206_v18 }
 0xa14   : > { %4510 = vmatpush3.bf16.msra.mxu1 %v2774_v56  ;;  %v2465_v54 = vpop.xlane.xlu1 %2464 }
 0xa15   : > { %4523 = vmatprep.subr.bf16.mxu1 %v7202_v14  ;;  %5057 = vrcp.f32 %v2465_v54 }
 0xa18   : > { %v2459_v7 = vpop.xlane.xlu1 %2458 }
 0xa19   : > { %5059 = vrcp.f32 %v2459_v7  ;;  %v2462_v58 = vpop.xlane.xlu0 %2461 }
 0xa1a   : > { %5061 = vrcp.f32 %v2462_v58 }
 0xa1e   : > { %v2474_v25 = vpop.xlane.xlu0 %2473 }
 0xa1f   : > { %v5058_v13 = vpop.eup %5057 }
 0xa20   : > { %v2543_v22 = vmul.f32 %v5058_v13, %v7258_v50 }
 0xa22   : > { %v2468_v19 = vpop.xlane.xlu0 %2467  ;;  %v2564_v35 = vpack.c.bf16 %v2543_v22, %v2543_v22 }
 0xa23   : > { %v5060_v30 = vpop.eup %5059 }
 0xa24   : > { %v5062_v43 = vpop.eup %5061  ;;  %v2483_v23 = vpop.xlane.xlu1 %2482  ;;  %v2541_v33 = vmul.f32 %v5060_v30, %v7263_v44  ;;  %v2836_v44 = vsel %vm2586_vm6, %v7184_v61, 0 }
 0xa25   : > { %v2542_v18 = vmul.f32 %v5062_v43, %v7266_v49  ;;  %5063 = vrcp.f32 %v2483_v23 }
 0xa27   : > { %v2480_v24 = vpop.xlane.xlu0 %2479  ;;  %v2563_v29 = vpack.c.bf16 %v2542_v18, %v2541_v33 }
 0xa28   : > { %5065 = vrcp.f32 %v2480_v24  ;;  %v2477_v31 = vpop.xlane.xlu1 %2476 }
 0xa29   : > { %5067 = vrcp.f32 %v2477_v31  ;;  %4503 = vmatprep.mubr.msk.bf16.mxu0 %vm2294_vm8, %v2563_v29 }
 0xa2a   : > { %5069 = vrcp.f32 %v2474_v25  ;;  %4504 = vmatmul.mubr.msk.bf16.vlgmr.msra.gmra.mrb[16].mxu0 %vm2294_vm8, %v2564_v35 }
 0xa2b   : > { %5071 = vrcp.f32 %v2468_v19  ;;  %4516 = vmatpush3.bf16.msra.mxu0 %v7058_v38 }
 0xa2c   : > { %4635 = vmatprep.subr.msk.bf16.mxu0 %vm2586_vm6, %v7184_v61  ;;  %v2471_v50 = vpop.xlane.xlu1 %2470 }
 0xa2d   : > { %5073 = vrcp.f32 %v2471_v50 }
 0xa2e   : > { %v2492_v49 = vpop.xlane.xlu0 %2491 }
 0xa2f   : > { %4518 = vmatpush3.bf16.msra.mxu0 %v2836_v44  ;;  %v5064_v39 = vpop.eup %5063  ;;  %5075 = vrcp.f32 %v2492_v49 }
 0xa30   : > { %4531 = vmatprep.subr.bf16.mxu0 %v7198_v8  ;;  %v2549_v9 = vmul.f32 %v5064_v39, %v7284_v20 }
 0xa32   : > { %v5066_v2 = vpop.eup %5065  ;;  %v2486_v4 = vpop.xlane.xlu0 %2485  ;;  %v2568_v42 = vpack.c.bf16 %v2549_v9, %v2549_v9 }
 0xa33   : > { %v5068_v37 = vpop.eup %5067  ;;  %v2548_v38 = vmul.f32 %v5066_v2, %v7290_v26  ;;  %5077 = vrcp.f32 %v2486_v4 }
 0xa34   : > { %v5070_v45 = vpop.eup %5069  ;;  %v2547_v48 = vmul.f32 %v5068_v37, %v7292_v28  ;;  %v4973_v37 = vld [vmem:[%s1069_s4] sm:$0xff]  }
 0xa35   : > { %v5072_v40 = vpop.eup %5071  ;;  %v2546_v61 = vmul.f32 %v5070_v45, %v7274_v5 }
 0xa36   : > { %v2567_v32 = vpack.c.bf16 %v2548_v38, %v2547_v48  ;;  %v2501_v52 = vpop.xlane.xlu0 %2500  ;;  %v2544_v17 = vmul.f32 %v5072_v40, %v7280_v10  ;;  %v2960_v10 = vsel %vm2586_vm6, %v7361_v51, 0 }
 0xa37   : > { %v5074_v36 = vpop.eup %5073  ;;  %v2566_v26 = vpack.c.bf16 %v2546_v61, %v2546_v61 }
 0xa38   : > { %4519 = vmatprep.mubr.msk.bf16.mxu0 %vm2294_vm8, %v2567_v32  ;;  %v2545_v55 = vmul.f32 %v5074_v36, %v7299_v46  ;;  %v2495_v5 = vpop.xlane.xlu1 %2494  ;;  %v2898_v46 = vsel %vm2586_vm6, %v7359_v34, 0 }
 0xa39   : > { %4520 = vmatmul.mubr.msk.bf16.vlgmr.msra.gmra.mrb[20].mxu0 %vm2294_vm8, %v2568_v42 }
 0xa3a   : > { %4532 = vmatpush3.bf16.msra.mxu0 %v7198_v8  ;;  %v2565_v20 = vpack.c.bf16 %v2545_v55, %v2544_v17  ;;  %v4974_v55 = vld [vmem:[%s1069_s4 + $0x8] sm:$0xff]  }
 0xa3b   : > { %4637 = vmatprep.subr.msk.bf16.mxu0 %vm2586_vm6, %v7361_v51  ;;  %v5076_v51 = vpop.eup %5075 }
 0xa3c   : > { %4511 = vmatprep.mubr.msk.bf16.mxu1 %vm2294_vm8, %v2565_v20  ;;  %v2489_v28 = vpop.xlane.xlu0 %2488  ;;  %v2552_v21 = vmul.f32 %v5076_v51, %v7304_v12 }
 0xa3d   : > { %5079 = vrcp.f32 %v2489_v28  ;;  %4512 = vmatmul.mubr.msk.bf16.vlgmr.msra.gmra.mrb[36].mxu1 %vm2294_vm8, %v2566_v26  ;;  %v5078_v16 = vpop.eup %5077 }
 0xa3e   : > { %5081 = vrcp.f32 %v2501_v52  ;;  %4524 = vmatpush3.bf16.msra.mxu1 %v7202_v14  ;;  %4534 = vmatpush3.bf16.msra.mxu0 %v2960_v10  ;;  %v2550_v14 = vmul.f32 %v5078_v16, %v7309_v53  ;;  %v2570_v54 = vpack.c.bf16 %v2552_v21, %v2552_v21 }
 0xa3f   : > { %5083 = vrcp.f32 %v2495_v5  ;;  %4636 = vmatprep.subr.msk.bf16.mxu1 %vm2586_vm6, %v7359_v34  ;;  %4547 = vmatprep.subr.bf16.mxu0 %v5948_v15 }
 0xa40   : > { %v2498_v8 = vpop.xlane.xlu0 %2497 }
 0xa41   : > { %5085 = vrcp.f32 %v2498_v8 }
 0xa42   : > { %4526 = vmatpush3.bf16.msra.mxu1 %v2898_v46 }
 0xa44   : > { %v2510_v53 = vpop.xlane.xlu0 %2509 }
 0xa45   : > { %5087 = vrcp.f32 %v2510_v53 }
 0xa47   : > { %v5080_v57 = vpop.eup %5079 }
 0xa48   : > { %v5082_v0 = vpop.eup %5081  ;;  %v2551_v1 = vmul.f32 %v5080_v57, %v7322_v6 }
 0xa49   : > { %v5084_v3 = vpop.eup %5083  ;;  %v2555_v56 = vmul.f32 %v5082_v0, %v7314_v63 }
 0xa4a   : > { %v2569_v59 = vpack.c.bf16 %v2551_v1, %v2550_v14  ;;  %v2553_v34 = vmul.f32 %v5084_v3, %v7318_v27 }
 0xa4b   : > { %v5086_v60 = vpop.eup %5085  ;;  %v2572_v58 = vpack.c.bf16 %v2555_v56, %v2555_v56 }
 0xa4c   : > { %4527 = vmatprep.mubr.msk.bf16.mxu1 %vm2294_vm8, %v2569_v59  ;;  %v2554_v7 = vmul.f32 %v5086_v60, %v7326_v62 }
 0xa4d   : > { %4528 = vmatmul.mubr.msk.bf16.vlgmr.msra.gmra.mrb[40].mxu1 %vm2294_vm8, %v2570_v54 }
 0xa4e   : > { %v2571_v12 = vpack.c.bf16 %v2554_v7, %v2553_v34 }
 0xa4f   : > { %v5088_v25 = vpop.eup %5087 }
 0xa50   : > { %4535 = vmatprep.mubr.msk.bf16.mxu0 %vm2294_vm8, %v2571_v12  ;;  %v2558_v43 = vmul.f32 %v5088_v25, %v7330_v11 }
 0xa51   : > { %4536 = vmatmul.mubr.msk.bf16.vlgmr.msra.gmra.mrb[24].mxu0 %vm2294_vm8, %v2572_v58 }
 0xa52   : > { %4551 = vmatprep.mubr.msk.bf16.mxu0 %vm5949_vm4, %v5948_v15  ;;  %v2574_v18 = vpack.c.bf16 %v2558_v43, %v2558_v43  ;;  %4548 = vmatpush3.bf16.msra.mxu0 %v4973_v37 }
 0xa53   : > { %4549 = vmatprep.subr.bf16.mxu0 %v5948_v15 }
 0xa56   : > { %4550 = vmatpush3.bf16.msra.mxu0 %v4974_v55 }
 0xa57   : > { %4579 = vmatprep.subr.bf16.mxu0 %v5948_v15 }
 0xa62   : > { %v2504_v63 = vpop.xlane.xlu1 %2503 }
 0xa63   : > { %5089 = vrcp.f32 %v2504_v63  ;;  %v2507_v6 = vpop.xlane.xlu0 %2506 }
 0xa64   : > { %5091 = vrcp.f32 %v2507_v6 }
 0xa66   : > { %v3013_v62 = vpop.permute.xlu1 %3012 }
 0xa67   : > { %v3011_v27 = vpop.permute.xlu0 %3010  ;;  %v3022_v13 = vsel %vm2586_vm6, %v3013_v62, 0 }
 0xa68   : > { %4539 = vmatprep.subr.bf16.mxu1 %v3011_v27 }
 0xa69   : > { %4540 = vmatpush3.bf16.msra.mxu1 %v3011_v27 }
 0xa6a   : > { %4638 = vmatprep.subr.msk.bf16.mxu1 %vm2586_vm6, %v3013_v62 }
 0xa6d   : > { %v5090_v19 = vpop.eup %5089  ;;  %4542 = vmatpush3.bf16.msra.mxu1 %v3022_v13 }
 0xa6e   : > { %v5092_v30 = vpop.eup %5091  ;;  %v2556_v22 = vmul.f32 %v5090_v19, %v7341_v47  ;;  %4563 = vmatprep.subr.bf16.mxu1 %v5948_v15 }
 0xa6f   : > { %v2557_v23 = vmul.f32 %v5092_v30, %v7344_v41 }
 0xa71   : > { %v2573_v33 = vpack.c.bf16 %v2557_v23, %v2556_v22 }
 0xa73   : > { %4543 = vmatprep.mubr.msk.bf16.mxu1 %vm2294_vm8, %v2573_v33 }
 0xa74   : > { %4544 = vmatmul.mubr.msk.bf16.vlgmr.msra.gmra.mrb[44].mxu1 %vm2294_vm8, %v2574_v18 }
 0xa75   : > { %4567 = vmatprep.mubr.msk.bf16.mxu1 %vm5949_vm4, %v5948_v15 }
 0xaa5   : > { %v7428_v24 = vpop.f32.mrb[28].mxu1 }
 0xaa6   : > { %v7430_v29 = vpop.f32.mrb[29].mxu1 }
 0xaa7   : > { %v4490_v11 = vpop.f32.mrb[30].mxu1 }
 0xaa8   : > { %v7432_v47 = vpop.f32.mrb[31].mxu1 }
 0xae2   : > { %v7434_v31 = vpop.f32.mrb[32].mxu1 }
 0xae3   : > { %v7436_v41 = vpop.f32.mrb[33].mxu1 }
 0xae4   : > { %v4498_v35 = vpop.f32.mrb[34].mxu1 }
 0xae5   : > { %v7438_v50 = vpop.f32.mrb[35].mxu1 }
 0xafd   : > { %v4505_v44 = vpop.f32.mrb[16].mxu0 }
 0xafe   : > { %v2748_v49 = vpop.f32.mrb[17].mxu0 }
 0xaff   : > { %v4506_v39 = vpop.f32.mrb[18].mxu0 }
 0xb00   : > { %v2751_v2 = vpop.f32.mrb[19].mxu0 }
 0xb01   : > { %v4926_v4 = vpack.i.bf16 %v2751_v2, %v2748_v49 }
 0xb03   : > { %4927 = vrot.lane.b32.xlu0 %v4926_v4, %s5955_s5 }
 0xb0c   : > { %v4521_v9 = vpop.f32.mrb[20].mxu0 }
 0xb0d   : > { %v2872_v38 = vpop.f32.mrb[21].mxu0 }
 0xb0e   : > { %v4522_v45 = vpop.f32.mrb[22].mxu0 }
 0xb0f   : > { %v2875_v48 = vpop.f32.mrb[23].mxu0 }
 0xb10   : > { %v4931_v40 = vpack.i.bf16 %v2875_v48, %v2872_v38  ;;  %v4513_v32 = vpop.f32.mrb[36].mxu1 }
 0xb11   : > { %v2810_v36 = vpop.f32.mrb[37].mxu1 }
 0xb12   : > { %v4941_v61 = vpack.i.bf16 %v2810_v36, %v4505_v44  ;;  %v4514_v42 = vpop.f32.mrb[38].mxu1  ;;  %4932 = vrot.lane.b32.xlu1 %v4931_v40, %s5956_s11 }
 0xb13   : > { %v2813_v52 = vpop.f32.mrb[39].mxu1 }
 0xb14   : > { %v4956_v17 = vpack.i.bf16 %v4513_v32, %v2813_v52 }
 0xb16   : > { %4942 = vrot.lane.b32.xlu1 %v4941_v61, %s5955_s5 }
 0xb20   : > { %v4529_v20 = vpop.f32.mrb[40].mxu1 }
 0xb21   : > { %v2934_v26 = vpop.f32.mrb[41].mxu1 }
 0xb22   : > { %v4946_v5 = vpack.i.bf16 %v2934_v26, %v4521_v9  ;;  %v4530_v28 = vpop.f32.mrb[42].mxu1 }
 0xb23   : > { %v2937_v10 = vpop.f32.mrb[43].mxu1 }
 0xb24   : > { %v4961_v8 = vpack.i.bf16 %v4529_v20, %v2937_v10  ;;  %v4537_v46 = vpop.f32.mrb[24].mxu0 }
 0xb25   : > { %v2996_v51 = vpop.f32.mrb[25].mxu0 }
 0xb26   : > { %v4538_v16 = vpop.f32.mrb[26].mxu0 }
 0xb27   : > { %v2999_v57 = vpop.f32.mrb[27].mxu0 }
 0xb28   : > { %v4936_v21 = vpack.i.bf16 %v2999_v57, %v2996_v51  ;;  %v5129_v51 = vld [vmem:[#allocation2] sm:$0xff] }
 0xb2a   : > { %4937 = vrot.lane.b32.xlu0 %v4936_v21, %s5957_s13 }
 0xb2e   : > { %4947 = vrot.lane.b32.xlu0 %v4946_v5, %s5956_s11 }
 0xb32   : > { %4957 = vrot.lane.b32.xlu0 %v4956_v17, %s5955_s5 }
 0xb47   : > { %v4545_v0 = vpop.f32.mrb[44].mxu1 }
 0xb48   : > { %v3058_v14 = vpop.f32.mrb[45].mxu1 }
 0xb49   : > { %v4951_v1 = vpack.i.bf16 %v3058_v14, %v4537_v46  ;;  %v4546_v3 = vpop.f32.mrb[46].mxu1 }
 0xb4a   : > { %v3061_v59 = vpop.f32.mrb[47].mxu1 }
 0xb4b   : > { %v4966_v60 = vpack.i.bf16 %v4545_v0, %v3061_v59  ;;  %4952 = vrot.lane.b32.xlu1 %v4951_v1, %s5957_s13  ;;  %v5130_v0 = vld [vmem:[#allocation2 + $0x8] sm:$0xff] }
 0xb4d   : > { %4967 = vrot.lane.b32.xlu0 %v4966_v60, %s5957_s13 }
 0xb4f   : > { %4962 = vrot.lane.b32.xlu1 %v4961_v8, %s5956_s11 }
 0xb75   : > { %v4928_v56 = vpop.permute.xlu0 %4927 }
 0xb76   : > { %v4930_v34 = vunpack.i.h.bf16 %v4928_v56  ;;  %v4929_v7 = vunpack.i.l.bf16 %v4928_v56 }
 0xb78   : > { %v3145_v63 = vsel %vm1742_vm5, %v7432_v47, %v4930_v34  ;;  %v3144_v6 = vsel %vm1742_vm5, %v7430_v29, %v4929_v7  ;;  %v5131_v34 = vld [vmem:[#allocation2 + $0x10] sm:$0xff] }
 0xb84   : > { %v4933_v54 = vpop.permute.xlu1 %4932 }
 0xb85   : > { %v4935_v12 = vunpack.i.h.bf16 %v4933_v54  ;;  %v4934_v58 = vunpack.i.l.bf16 %v4933_v54 }
 0xb87   : > { %v3151_v25 = vsel %vm3150_vm9, %v3144_v6, %v4934_v58  ;;  %v3152_v13 = vsel %vm3150_vm9, %v3145_v63, %v4935_v12 }
 0xb88   : > { %v4943_v23 = vpop.permute.xlu1 %4942 }
 0xb89   : > { %v4945_v33 = vunpack.i.h.bf16 %v4943_v23  ;;  %v4944_v18 = vunpack.i.l.bf16 %v4943_v23 }
 0xb8b   : > { %v3147_v44 = vsel %vm1742_vm5, %v7436_v41, %v4945_v33  ;;  %v3146_v49 = vsel %vm1742_vm5, %v7428_v24, %v4944_v18  ;;  %v5134_v33 = vld [vmem:[#allocation2 + $0x28] sm:$0xff] }
 0xb9c   : > { %v4938_v53 = vpop.permute.xlu0 %4937 }
 0xb9d   : > { %v4940_v27 = vunpack.i.h.bf16 %v4938_v53  ;;  %v4939_v62 = vunpack.i.l.bf16 %v4938_v53  ;;  %v5132_v53 = vld [vmem:[#allocation2 + $0x18] sm:$0xff] }
 0xb9f   : > { %v3157_v19 = vsel %vm2294_vm8, %v3151_v25, %v4939_v62  ;;  %v3158_v30 = vsel %vm2294_vm8, %v3152_v13, %v4940_v27 }
 0xba0   : > { %v3163_v43 = vpack.c.bf16 %v3158_v30, %v3157_v19  ;;  %v4948_v22 = vpop.permute.xlu0 %4947  ;;  %v5133_v30 = vld [vmem:[#allocation2 + $0x20] sm:$0xff] }
 0xba1   : > { %v4950_v29 = vunpack.i.h.bf16 %v4948_v22  ;;  %v4949_v11 = vunpack.i.l.bf16 %v4948_v22 }
 0xba2   : > { %4552 = vmatmul.mubr.msk.bf16.vlgmr.msra.gmra.mrb[28].mxu0 %vm1464_vm3, %v3163_v43 }
 0xba3   : > { %4555 = vmatprep.mubr.msk.bf16.mxu0 %vm5949_vm4, %v5948_v15  ;;  %v3154_v4 = vsel %vm3150_vm9, %v3147_v44, %v4950_v29  ;;  %v3153_v37 = vsel %vm3150_vm9, %v3146_v49, %v4949_v11 }
 0xba4   : > { %v4958_v47 = vpop.permute.xlu0 %4957 }
 0xba5   : > { %v4960_v9 = vunpack.i.h.bf16 %v4958_v47  ;;  %v4959_v38 = vunpack.i.l.bf16 %v4958_v47 }
 0xba7   : > { %v3149_v24 = vsel %vm1742_vm5, %v7434_v31, %v4960_v9  ;;  %v3148_v42 = vsel %vm1742_vm5, %v7438_v50, %v4959_v38  ;;  %v4252_v31 = vld [vmem:[%s1077_s25] ss:$0 sm:$0xff] }
 0xbbd   : > { %v4953_v35 = vpop.permute.xlu1 %4952 }
 0xbbe   : > { %v4955_v39 = vunpack.i.h.bf16 %v4953_v35  ;;  %v4954_v2 = vunpack.i.l.bf16 %v4953_v35 }
 0xbbf   : > { %v4968_v40 = vpop.permute.xlu0 %4967 }
 0xbc0   : > { %v3159_v45 = vsel %vm2294_vm8, %v3153_v37, %v4954_v2  ;;  %v3160_v48 = vsel %vm2294_vm8, %v3154_v4, %v4955_v39  ;;  %v4970_v52 = vunpack.i.h.bf16 %v4968_v40  ;;  %v4969_v17 = vunpack.i.l.bf16 %v4968_v40 }
 0xbc1   : > { %v3164_v32 = vpack.c.bf16 %v3160_v48, %v3159_v45  ;;  %v4963_v36 = vpop.permute.xlu1 %4962 }
 0xbc2   : > { %v4965_v41 = vunpack.i.h.bf16 %v4963_v36  ;;  %v4964_v61 = vunpack.i.l.bf16 %v4963_v36 }
 0xbc3   : > { %4556 = vmatmul.mubr.msk.bf16.gmra.mrb[32].mxu0 %vm1464_vm3, %v3164_v32 }
 0xbc4   : > { %v3155_v55 = vsel %vm3150_vm9, %v3148_v42, %v4964_v61  ;;  %v3156_v20 = vsel %vm3150_vm9, %v3149_v24, %v4965_v41  ;;  %4559 = vmatprep.mubr.msk.bf16.mxu0 %vm5949_vm4, %v5948_v15  ;;  %v4975_v61 = vld [vmem:[%s1102_s2] sm:$0xff]  }
 0xbc5   : > { %v3161_v26 = vsel %vm2294_vm8, %v3155_v55, %v4969_v17  ;;  %v3162_v5 = vsel %vm2294_vm8, %v3156_v20, %v4970_v52  ;;  %4564 = vmatpush3.bf16.msra.mxu1 %v4975_v61  ;;  %v4976_v17 = vld [vmem:[%s1102_s2 + $0x8] sm:$0xff]  }
 0xbc6   : > { %v3165_v28 = vpack.c.bf16 %v3162_v5, %v3161_v26  ;;  %4565 = vmatprep.subr.bf16.mxu1 %v5948_v15 }
 0xbc9   : > { %4566 = vmatpush3.bf16.msra.mxu1 %v4976_v17 }
 0xbcb   : > { %4560 = vmatmul.mubr.msk.bf16.gmra.mrb[36].mxu0 %vm1464_vm3, %v3165_v28 }
 0xbcc   : > { %4595 = vmatprep.mubr.msk.bf16.mxu0 %vm5949_vm4, %v5948_v15 }
 0xc75   : > { %v3232_v50 = vpop.f32.mrb[28].mxu0 }
 0xc76   : > { %v3233_v10 = vadd.f32 %v4252_v31, %v3232_v50  ;;  %v4553_v8 = vpop.f32.mrb[29].mxu0 }
 0xc77   : > { %v3235_v46 = vpop.f32.mrb[30].mxu0 }
 0xc78   : > { %v7487_v16 = vadd.f32 %v5129_v51, %v3233_v10  ;;  %v3236_v57 = vadd.f32 %v4252_v31, %v3235_v46  ;;  %v4554_v21 = vpop.f32.mrb[31].mxu0 }
 0xc7a   : > { %v7489_v14 = vadd.f32 %v5130_v0, %v3236_v57  ;;  %v3263_v1 = vsel %vm1464_vm3, %v7487_v16, 0.0 }
 0xc7b   : > { %3264 = vadd.xlane.f32.xlu1 %v3263_v1 }
 0xc7c   : > { %v3266_v3 = vsel %vm1464_vm3, %v7489_v14, 0.0 }
 0xc7d   : > { %3267 = vadd.xlane.f32.xlu0 %v3266_v3 }
 0xc96   : > { %v3240_v59 = vpop.f32.mrb[32].mxu0 }
 0xc97   : > { %v3241_v60 = vadd.f32 %v4252_v31, %v3240_v59  ;;  %v4557_v56 = vpop.f32.mrb[33].mxu0 }
 0xc98   : > { %v3243_v54 = vpop.f32.mrb[34].mxu0  ;;  %v4258_v56 = vld [vmem:[%s1085_s24] ss:$0 sm:$0xff] }
 0xc99   : > { %v7495_v7 = vadd.f32 %v5131_v34, %v3241_v60  ;;  %v3244_v12 = vadd.f32 %v4252_v31, %v3243_v54  ;;  %v4558_v58 = vpop.f32.mrb[35].mxu0 }
 0xc9b   : > { %v7497_v63 = vadd.f32 %v5132_v53, %v3244_v12  ;;  %v3269_v6 = vsel %vm1464_vm3, %v7495_v7, 0.0  ;;  %v4259_v53 = vld [vmem:[%s1093_s19] ss:$0 sm:$0xff] }
 0xc9c   : > { %3270 = vadd.xlane.f32.xlu0 %v3269_v6 }
 0xc9d   : > { %v3272_v13 = vsel %vm1464_vm3, %v7497_v63, 0.0 }
 0xc9e   : > { %v3248_v27 = vpop.f32.mrb[36].mxu0 }
 0xc9f   : > { %v3249_v62 = vadd.f32 %v4252_v31, %v3248_v27  ;;  %v4561_v25 = vpop.f32.mrb[37].mxu0 }
 0xca0   : > { %3273 = vadd.xlane.f32.xlu0 %v3272_v13  ;;  %v3251_v19 = vpop.f32.mrb[38].mxu0 }
 0xca1   : > { %v7503_v43 = vadd.f32 %v5133_v30, %v3249_v62  ;;  %v3252_v22 = vadd.f32 %v4252_v31, %v3251_v19  ;;  %v4562_v23 = vpop.f32.mrb[39].mxu0 }
 0xca3   : > { %v7505_v18 = vadd.f32 %v5134_v33, %v3252_v22  ;;  %v3275_v29 = vsel %vm1464_vm3, %v7503_v43, 0.0 }
 0xca4   : > { %3276 = vadd.xlane.f32.xlu1 %v3275_v29 }
 0xca5   : > { %v3278_v11 = vsel %vm1464_vm3, %v7505_v18, 0.0 }
 0xca6   : > { %3279 = vadd.xlane.f32.xlu0 %v3278_v11 }
 0xd08   : > { %v3265_v47 = vpop.xlane.xlu1 %3264 }
 0xd09   : > { %v3281_v35 = vmul.f32 0.03125, %v3265_v47 }
 0xd0a   : > { %v3268_v44 = vpop.xlane.xlu0 %3267 }
 0xd0b   : > { %v3287_v49 = vsub.f32 %v7487_v16, %v3281_v35  ;;  %v3282_v39 = vmul.f32 0.03125, %v3268_v44 }
 0xd0d   : > { %v3288_v2 = vsub.f32 %v7489_v14, %v3282_v39  ;;  %v3293_v4 = vmul.f32 %v3287_v49, %v3287_v49 }
 0xd0f   : > { %v3299_v37 = vsel %vm1464_vm3, %v3293_v4, 0.0  ;;  %v3294_v9 = vmul.f32 %v3288_v2, %v3288_v2 }
 0xd10   : > { %3300 = vadd.xlane.f32.xlu1 %v3299_v37 }
 0xd11   : > { %v3302_v38 = vsel %vm1464_vm3, %v3294_v9, 0.0 }
 0xd12   : > { %3303 = vadd.xlane.f32.xlu0 %v3302_v38 }
 0xd29   : > { %v3271_v45 = vpop.xlane.xlu0 %3270 }
 0xd2a   : > { %v3283_v48 = vmul.f32 0.03125, %v3271_v45 }
 0xd2c   : > { %v7516_v40 = vsub.f32 %v7495_v7, %v3283_v48 }
 0xd2d   : > { %v3274_v32 = vpop.xlane.xlu0 %3273 }
 0xd2e   : > { %v3284_v36 = vmul.f32 0.03125, %v3274_v32  ;;  %v3295_v41 = vmul.f32 %v7516_v40, %v7516_v40 }
 0xd30   : > { %v3290_v24 = vsub.f32 %v7497_v63, %v3284_v36  ;;  %v3305_v42 = vsel %vm1464_vm3, %v3295_v41, 0.0 }
 0xd31   : > { %3306 = vadd.xlane.f32.xlu1 %v3305_v42  ;;  %v3277_v52 = vpop.xlane.xlu1 %3276 }
 0xd32   : > { %v3285_v55 = vmul.f32 0.03125, %v3277_v52  ;;  %v3296_v20 = vmul.f32 %v3290_v24, %v3290_v24 }
 0xd33   : > { %v3280_v26 = vpop.xlane.xlu0 %3279 }
 0xd34   : > { %v3291_v5 = vsub.f32 %v7503_v43, %v3285_v55  ;;  %v3286_v28 = vmul.f32 0.03125, %v3280_v26  ;;  %v3308_v31 = vsel %vm1464_vm3, %v3296_v20, 0.0  ;;  %v4977_v20 = vld [vmem:[%s6807_s20] sm:$0xff]   ;;  %v4978_v26 = vld [vmem:[%s6807_s20 + $0x8] sm:$0xff]  }
 0xd35   : > { %3309 = vadd.xlane.f32.xlu0 %v3308_v31  ;;  %4580 = vmatpush3.bf16.msra.mxu0 %v4977_v20  ;;  %v4981_v31 = vld [vmem:[%s6807_s20 + $0x20] sm:$0xff]  }
 0xd36   : > { %v3292_v50 = vsub.f32 %v7505_v18, %v3286_v28  ;;  %v3297_v10 = vmul.f32 %v3291_v5, %v3291_v5  ;;  %4581 = vmatprep.subr.bf16.mxu0 %v5948_v15  ;;  %v4980_v28 = vld [vmem:[%s6807_s20 + $0x18] sm:$0xff]  }
 0xd38   : > { %v3311_v8 = vsel %vm1464_vm3, %v3297_v10, 0.0  ;;  %v3298_v46 = vmul.f32 %v3292_v50, %v3292_v50  ;;  %v4983_v10 = vld [vmem:[%s6807_s20 + $0x30] sm:$0xff]  }
 0xd39   : > { %3312 = vadd.xlane.f32.xlu1 %v3311_v8  ;;  %4582 = vmatpush3.bf16.msra.mxu0 %v4978_v26  ;;  %v4984_v8 = vld [vmem:[%s6807_s20 + $0x38] sm:$0xff]  }
 0xd3a   : > { %v3314_v51 = vsel %vm1464_vm3, %v3298_v46, 0.0  ;;  %4583 = vmatprep.subr.bf16.mxu0 %v5948_v15  ;;  %v4260_v46 = vld [vmem:[%s1110_s14] ss:$0 sm:$0xff] }
 0xd3b   : > { %3315 = vadd.xlane.f32.xlu0 %v3314_v51 }
 0xd9d   : > { %v3301_v57 = vpop.xlane.xlu1 %3300 }
 0xd9e   : > { %v3317_v21 = vmul.f32 0.03125, %v3301_v57 }
 0xd9f   : > { %v3304_v0 = vpop.xlane.xlu0 %3303 }
 0xda0   : > { %v3323_v1 = vadd.f32 1e-05, %v3317_v21  ;;  %v3318_v3 = vmul.f32 0.03125, %v3304_v0 }
 0xda2   : > { %5093 = vrsqrt.f32 %v3323_v1  ;;  %v3324_v59 = vadd.f32 1e-05, %v3318_v3 }
 0xda4   : > { %5095 = vrsqrt.f32 %v3324_v59 }
 0xdac   : > { %v5094_v60 = vpop.eup %5093 }
 0xdad   : > { %v3335_v54 = vmul.f32 %v5094_v60, %v3287_v49 }
 0xdae   : > { %v5096_v34 = vpop.eup %5095 }
 0xdaf   : > { %v3347_v12 = vmul.f32 %v4258_v56, %v3335_v54  ;;  %v3336_v58 = vmul.f32 %v5096_v34, %v3288_v2 }
 0xdb1   : > { %v3348_v6 = vmul.f32 %v4258_v56, %v3336_v58  ;;  %v3359_v27 = vadd.f32 %v4259_v53, %v3347_v12 }
 0xdb3   : > { %v3360_v62 = vadd.f32 %v4259_v53, %v3348_v6 }
 0xdb5   : > { %v3365_v25 = vpack.c.bf16 %v3360_v62, %v3359_v27 }
 0xdb7   : > { %4568 = vmatmul.mubr.msk.bf16.vlgmr.msra.gmra.mrb[48].mxu1 %vm1464_vm3, %v3365_v25 }
 0xdb8   : > { %4571 = vmatprep.mubr.msk.bf16.mxu1 %vm5949_vm4, %v5948_v15 }
 0xdbe   : > { %v3307_v13 = vpop.xlane.xlu1 %3306 }
 0xdbf   : > { %v3319_v19 = vmul.f32 0.03125, %v3307_v13 }
 0xdc1   : > { %v3325_v30 = vadd.f32 1e-05, %v3319_v19 }
 0xdc2   : > { %v3310_v22 = vpop.xlane.xlu0 %3309 }
 0xdc3   : > { %5097 = vrsqrt.f32 %v3325_v30  ;;  %v3320_v23 = vmul.f32 0.03125, %v3310_v22 }
 0xdc5   : > { %v3326_v33 = vadd.f32 1e-05, %v3320_v23 }
 0xdc6   : > { %v3313_v29 = vpop.xlane.xlu1 %3312 }
 0xdc7   : > { %5099 = vrsqrt.f32 %v3326_v33  ;;  %v3321_v11 = vmul.f32 0.03125, %v3313_v29 }
 0xdc8   : > { %v3316_v47 = vpop.xlane.xlu0 %3315 }
 0xdc9   : > { %v3327_v35 = vadd.f32 1e-05, %v3321_v11  ;;  %v3322_v44 = vmul.f32 0.03125, %v3316_v47 }
 0xdcb   : > { %5101 = vrsqrt.f32 %v3327_v35  ;;  %v3328_v49 = vadd.f32 1e-05, %v3322_v44 }
 0xdcd   : > { %v5098_v39 = vpop.eup %5097  ;;  %5103 = vrsqrt.f32 %v3328_v49 }
 0xdce   : > { %v3337_v2 = vmul.f32 %v5098_v39, %v7516_v40 }
 0xdd0   : > { %v3349_v9 = vmul.f32 %v4258_v56, %v3337_v2 }
 0xdd1   : > { %v5100_v4 = vpop.eup %5099 }
 0xdd2   : > { %v3338_v37 = vmul.f32 %v5100_v4, %v3290_v24  ;;  %v3361_v32 = vadd.f32 %v4259_v53, %v3349_v9 }
 0xdd4   : > { %v3350_v38 = vmul.f32 %v4258_v56, %v3338_v37 }
 0xdd5   : > { %v5102_v45 = vpop.eup %5101 }
 0xdd6   : > { %v3339_v48 = vmul.f32 %v5102_v45, %v3291_v5  ;;  %v3362_v36 = vadd.f32 %v4259_v53, %v3350_v38  ;;  %v4979_v5 = vld [vmem:[%s6807_s20 + $0x10] sm:$0xff]  }
 0xdd7   : > { %v5104_v41 = vpop.eup %5103  ;;  %4584 = vmatpush3.bf16.msra.mxu0 %v4979_v5 }
 0xdd8   : > { %v3340_v61 = vmul.f32 %v5104_v41, %v3292_v50  ;;  %v3366_v42 = vpack.c.bf16 %v3362_v36, %v3361_v32  ;;  %v3351_v52 = vmul.f32 %v4258_v56, %v3339_v48  ;;  %4585 = vmatprep.subr.bf16.mxu0 %v5948_v15  ;;  %v4982_v50 = vld [vmem:[%s6807_s20 + $0x28] sm:$0xff]  }
 0xdda   : > { %4572 = vmatmul.mubr.msk.bf16.gmra.mrb[52].mxu1 %vm1464_vm3, %v3366_v42  ;;  %v3352_v17 = vmul.f32 %v4258_v56, %v3340_v61  ;;  %v3363_v24 = vadd.f32 %v4259_v53, %v3351_v52 }
 0xddb   : > { %4575 = vmatprep.mubr.msk.bf16.mxu1 %vm5949_vm4, %v5948_v15  ;;  %4586 = vmatpush3.bf16.msra.mxu0 %v4980_v28 }
 0xddc   : > { %v3364_v40 = vadd.f32 %v4259_v53, %v3352_v17  ;;  %4587 = vmatprep.subr.bf16.mxu0 %v5948_v15 }
 0xdde   : > { %v3367_v55 = vpack.c.bf16 %v3364_v40, %v3363_v24 }
 0xddf   : > { %4588 = vmatpush3.bf16.msra.mxu0 %v4981_v31 }
 0xde0   : > { %4589 = vmatprep.subr.bf16.mxu0 %v5948_v15 }
 0xde2   : > { %4576 = vmatmul.mubr.msk.bf16.gmra.mrb[56].mxu1 %vm1464_vm3, %v3367_v55 }
 0xde3   : > { %4590 = vmatpush3.bf16.msra.mxu0 %v4982_v50 }
 0xde4   : > { %4591 = vmatprep.subr.bf16.mxu0 %v5948_v15 }
 0xde7   : > { %4592 = vmatpush3.bf16.msra.mxu0 %v4983_v10 }
 0xde8   : > { %4593 = vmatprep.subr.bf16.mxu0 %v5948_v15 }
 0xdeb   : > { %4594 = vmatpush3.bf16.msra.mxu0 %v4984_v8 }
 0xe8a   : > { %v3434_v51 = vpop.f32.mrb[48].mxu1 }
 0xe8b   : > { %v3435_v57 = vadd.f32 %v4260_v46, %v3434_v51  ;;  %v4569_v21 = vpop.f32.mrb[49].mxu1 }
 0xe8c   : > { %v3437_v0 = vpop.f32.mrb[50].mxu1 }
 0xe8d   : > { %v4266_v1 = vmul.f32 -1.702, %v3435_v57  ;;  %v3438_v3 = vadd.f32 %v4260_v46, %v3437_v0  ;;  %v4570_v59 = vpop.f32.mrb[51].mxu1 }
 0xe8f   : > { %v3469_v60 = vmul.f32 1.442695, %v4266_v1  ;;  %v4267_v56 = vmul.f32 -1.702, %v3438_v3 }
 0xe91   : > { %5105 = vpow2.f32 %v3469_v60  ;;  %v3471_v54 = vmul.f32 1.442695, %v4267_v56 }
 0xe93   : > { %5107 = vpow2.f32 %v3471_v54 }
 0xe9b   : > { %v5106_v34 = vpop.eup %5105 }
 0xe9c   : > { %v3481_v12 = vadd.f32 1.0, %v5106_v34 }
 0xe9d   : > { %v5108_v58 = vpop.eup %5107 }
 0xe9e   : > { %5109 = vrcp.f32 %v3481_v12  ;;  %v3482_v53 = vadd.f32 1.0, %v5108_v58 }
 0xea0   : > { %5111 = vrcp.f32 %v3482_v53 }
 0xea8   : > { %v5110_v6 = vpop.eup %5109 }
 0xea9   : > { %v3499_v62 = vmul.f32 %v5110_v6, %v3435_v57  ;;  %v4280_v57 = vld [vmem:[%s1127_s15] ss:$0 sm:$0xff] }
 0xeaa   : > { %v5112_v27 = vpop.eup %5111 }
 0xeab   : > { %v3500_v25 = vmul.f32 %v5112_v27, %v3438_v3 }
 0xead   : > { %v3505_v13 = vpack.c.bf16 %v3500_v25, %v3499_v62  ;;  %v3442_v19 = vpop.f32.mrb[52].mxu1 }
 0xeae   : > { %v3443_v30 = vadd.f32 %v4260_v46, %v3442_v19  ;;  %v4573_v22 = vpop.f32.mrb[53].mxu1 }
 0xeaf   : > { %v3445_v23 = vpop.f32.mrb[54].mxu1  ;;  %4596 = vmatmul.mubr.bf16.vlgmr.msra.gmra.mrb[40].mxu0 %v3505_v13 }
 0xeb0   : > { %v4268_v33 = vmul.f32 -1.702, %v3443_v30  ;;  %v3446_v29 = vadd.f32 %v4260_v46, %v3445_v23  ;;  %v4574_v11 = vpop.f32.mrb[55].mxu1  ;;  %4599 = vmatprep.mubr.msk.bf16.mxu0 %vm5949_vm4, %v5948_v15 }
 0xeb2   : > { %v3473_v47 = vmul.f32 1.442695, %v4268_v33  ;;  %v4269_v35 = vmul.f32 -1.702, %v3446_v29 }
 0xeb4   : > { %5113 = vpow2.f32 %v3473_v47  ;;  %v3475_v44 = vmul.f32 1.442695, %v4269_v35 }
 0xeb5   : > { %v3450_v49 = vpop.f32.mrb[56].mxu1 }
 0xeb6   : > { %5115 = vpow2.f32 %v3475_v44  ;;  %v3451_v39 = vadd.f32 %v4260_v46, %v3450_v49  ;;  %v4577_v2 = vpop.f32.mrb[57].mxu1 }
 0xeb7   : > { %v3453_v4 = vpop.f32.mrb[58].mxu1 }
 0xeb8   : > { %v4270_v37 = vmul.f32 -1.702, %v3451_v39  ;;  %v3454_v9 = vadd.f32 %v4260_v46, %v3453_v4  ;;  %v4578_v38 = vpop.f32.mrb[59].mxu1 }
 0xeb9   : > { %v5136_v38 = vld [vmem:[#allocation31 + $0x8] sm:$0xff] (!%p4281_p8)  }
 0xeba   : > { %v3477_v45 = vmul.f32 1.442695, %v4270_v37  ;;  %v4271_v48 = vmul.f32 -1.702, %v3454_v9  ;;  %v5135_v37 = vld [vmem:[#allocation31] sm:$0xff] (!%p4281_p8)  }
 0xebc   : > { %5117 = vpow2.f32 %v3477_v45  ;;  %v3479_v32 = vmul.f32 1.442695, %v4271_v48 }
 0xebe   : > { %v5114_v36 = vpop.eup %5113  ;;  %5119 = vpow2.f32 %v3479_v32 }
 0xebf   : > { %v3483_v41 = vadd.f32 1.0, %v5114_v36 }
 0xec0   : > { %v5116_v61 = vpop.eup %5115 }
 0xec1   : > { %5121 = vrcp.f32 %v3483_v41  ;;  %v3484_v42 = vadd.f32 1.0, %v5116_v61  ;;  %v4282_v41 = vld [vmem:[#allocation29] ss:$0 sm:$0xff] (!%p4281_p8) }
 0xec3   : > { %5123 = vrcp.f32 %v3484_v42 }
 0xec6   : > { %v5118_v52 = vpop.eup %5117 }
 0xec7   : > { %v3485_v17 = vadd.f32 1.0, %v5118_v52  ;;  %v4283_v52 = vld [vmem:[#allocation30] ss:$0 sm:$0xff] (!%p4281_p8) }
 0xec8   : > { %v5120_v40 = vpop.eup %5119 }
 0xec9   : > { %5125 = vrcp.f32 %v3485_v17  ;;  %v3486_v24 = vadd.f32 1.0, %v5120_v40 }
 0xecb   : > { %v5122_v55 = vpop.eup %5121  ;;  %5127 = vrcp.f32 %v3486_v24 }
 0xecc   : > { %v3501_v26 = vmul.f32 %v5122_v55, %v3443_v30 }
 0xecd   : > { %v5124_v20 = vpop.eup %5123 }
 0xece   : > { %v3502_v5 = vmul.f32 %v5124_v20, %v3446_v29 }
 0xed0   : > { %v3506_v28 = vpack.c.bf16 %v3502_v5, %v3501_v26 }
 0xed2   : > { %4600 = vmatmul.mubr.bf16.gmra.mrb[44].mxu0 %v3506_v28 }
 0xed3   : > { %v5126_v31 = vpop.eup %5125  ;;  %4603 = vmatprep.mubr.msk.bf16.mxu0 %vm5949_vm4, %v5948_v15 }
 0xed4   : > { %v3503_v10 = vmul.f32 %v5126_v31, %v3451_v39 }
 0xed5   : > { %v5128_v50 = vpop.eup %5127 }
 0xed6   : > { %v3504_v8 = vmul.f32 %v5128_v50, %v3454_v9  ;;  %v5958_v9 = vmov (!%p4281_p8), 0.0  }
 0xed7   : > { %4607 = vmatprep.subr.bf16.mxu0 (!%p4281_p8), %v5958_v9 }
 0xed8   : > { %v3507_v46 = vpack.c.bf16 %v3504_v8, %v3503_v10  ;;  %4608 = vmatpush3.bf16.msra.mxu0 (!%p4281_p8), %v5135_v37 }
 0xed9   : > { %4609 = vmatprep.subr.bf16.mxu0 (!%p4281_p8), %v5958_v9 }
 0xeda   : > { %4604 = vmatmul.mubr.bf16.gmra.mrb[48].mxu0 %v3507_v46 }
 0xedb   : > { %4611 = vmatprep.mubr.msk.bf16.mxu0 (!%p4281_p8), %vm5959_vm12, %v5958_v9 }
 0xedc   : > { %4610 = vmatpush3.bf16.msra.mxu0 (!%p4281_p8), %v5136_v38 }
 0xf82   : > { %v3606_v51 = vpop.f32.mrb[40].mxu0 }
 0xf83   : > { %v3629_v21 = vadd.f32 %v3606_v51, %v7487_v16  ;;  %v4597_v0 = vpop.f32.mrb[41].mxu0 }
 0xf84   : > { %v3609_v1 = vpop.f32.mrb[42].mxu0 }
 0xf85   : > { %v3642_v3 = vadd.f32 %v4280_v57, %v3629_v21  ;;  %v3630_v59 = vadd.f32 %v3609_v1, %v7489_v14  ;;  %v4598_v60 = vpop.f32.mrb[43].mxu0 }
 0xf87   : > { %3648 = vst.msk [vmem:[#allocation2] sm:$0xff] %vm1464_vm3, %v3642_v3  ;;  %v3643_v56 = vadd.f32 %v4280_v57, %v3630_v59 }
 0xf89   : > { %3649 = vst.msk [vmem:[#allocation2 + $0x8] sm:$0xff] %vm1464_vm3, %v3643_v56 }
 0xfa5   : > { %v3614_v15 = vpop.f32.mrb[44].mxu0 }
 0xfa6   : > { %v3631_v54 = vadd.f32 %v3614_v15, %v7495_v7  ;;  %v4601_v34 = vpop.f32.mrb[45].mxu0 }
 0xfa7   : > { %v3617_v12 = vpop.f32.mrb[46].mxu0 }
 0xfa8   : > { %v3644_v58 = vadd.f32 %v4280_v57, %v3631_v54  ;;  %v3632_v53 = vadd.f32 %v3617_v12, %v7497_v63  ;;  %v4602_v16 = vpop.f32.mrb[47].mxu0 }
 0xfaa   : > { %3650 = vst.msk [vmem:[#allocation2 + $0x10] sm:$0xff] %vm1464_vm3, %v3644_v58  ;;  %v3645_v6 = vadd.f32 %v4280_v57, %v3632_v53 }
 0xfac   : > { %3651 = vst.msk [vmem:[#allocation2 + $0x18] sm:$0xff] %vm1464_vm3, %v3645_v6 }
 0xfad   : > { %v3622_v14 = vpop.f32.mrb[48].mxu0 }
 0xfae   : > { %v3633_v27 = vadd.f32 %v3622_v14, %v7503_v43  ;;  %v4605_v62 = vpop.f32.mrb[49].mxu0  ;;  %3657 = sbr.rel (%p4281_p8) target bundleno = 4575 (0x11df), region = 212 }
 0xfaf   : > { %v3625_v25 = vpop.f32.mrb[50].mxu0 }
 0xfb0   : > { %v3646_v13 = vadd.f32 %v4280_v57, %v3633_v27  ;;  %v3634_v19 = vadd.f32 %v3625_v25, %v7505_v18  ;;  %v4606_v7 = vpop.f32.mrb[51].mxu0 }
 0xfb1   : > { %v3658_v63 = vld [vmem:[#allocation2 + $0x10] sm:$0xff] (!%p4281_p8) }
 0xfb2   : > { %3652 = vst.msk [vmem:[#allocation2 + $0x20] sm:$0xff] %vm1464_vm3, %v3646_v13  ;;  %v3647_v30 = vadd.f32 %v4280_v57, %v3634_v19 }
 0xfb4   : > { %3653 = vst.msk [vmem:[#allocation2 + $0x28] sm:$0xff] %vm1464_vm3, %v3647_v30 }
 0xfbb   : > { %v3659_v22 = vld [vmem:[#allocation2 + $0x28] sm:$0xff] }
 0xfbc   : > { %v3664_v23 = vrot.slane %v3659_v22, 7 }
 0xfbe   : > { %v3666_v43 = vsel %vm3665_vm10, %v3664_v23, %v3658_v63 }
 0xfbf   : > { %v3669_v33 = vsel %vm3668_vm11, %v3666_v43, 0.0 }
 0xfc0   : > { %3670 = vadd.xlane.f32.xlu0 %v3669_v33 }
0x104d   : > { %v3671_v29 = vpop.xlane.xlu0 %3670 }
0x104e   : > { %v3672_v18 = vmul.f32 0.03125, %v3671_v29 }
0x1050   : > { %v3674_v11 = vrot.slane %v3672_v18, 1  ;;  %v3677_v47 = vsub.f32 %v3658_v63, %v3672_v18 }
0x1052   : > { %v3678_v35 = vsub.f32 %v3659_v22, %v3674_v11  ;;  %v3679_v49 = vmul.f32 %v3677_v47, %v3677_v47 }
0x1054   : > { %v3680_v44 = vmul.f32 %v3678_v35, %v3678_v35 }
0x1056   : > { %v3683_v39 = vrot.slane %v3680_v44, 7 }
0x1058   : > { %v3684_v2 = vsel %vm3665_vm10, %v3683_v39, %v3679_v49 }
0x1059   : > { %v3686_v4 = vsel %vm3668_vm11, %v3684_v2, 0.0 }
0x105a   : > { %3687 = vadd.xlane.f32.xlu0 %v3686_v4 }
0x10e7   : > { %v3688_v45 = vpop.xlane.xlu0 %3687 }
0x10e8   : > { %v3689_v48 = vmul.f32 0.03125, %v3688_v45 }
0x10ea   : > { %v3690_v32 = vadd.f32 1e-05, %v3689_v48 }
0x10ec   : > { %5137 = vrsqrt.f32 %v3690_v32 }
0x10f6   : > { %v5138_v36 = vpop.eup %5137 }
0x10f7   : > { %v3693_v61 = vrot.slane %v5138_v36, 1  ;;  %v3696_v42 = vmul.f32 %v5138_v36, %v3677_v47 }
0x10f9   : > { %v3697_v17 = vmul.f32 %v3693_v61, %v3678_v35  ;;  %v3704_v40 = vmul.f32 %v4282_v41, %v3696_v42 }
0x10fb   : > { %v3705_v24 = vmul.f32 %v4282_v41, %v3697_v17  ;;  %v3712_v55 = vadd.f32 %v4283_v52, %v3704_v40 }
0x10fd   : > { %v3713_v20 = vadd.f32 %v4283_v52, %v3705_v24  ;;  %v3714_v26 = vpack.c.bf16 %v3712_v55, %v3712_v55 }
0x10ff   : > { %v3715_v5 = vpack.c.bf16 %v3713_v20, %v3713_v20  ;;  %v3722_v31 = vunpack.c.l.b16 %v3714_v26 }
0x1101   : > { %v3723_v28 = vunpack.c.l.b16 %v3715_v5 }
0x1103   : > { %v3724_v50 = vrot.slane %v3723_v28, 7 }
0x1105   : > { %v3725_v10 = vsel %vm3665_vm10, %v3724_v50, %v3722_v31 }
0x1106   : > { %v3726_v8 = vpack.c.b16 %v3725_v10, %v3725_v10 }
0x1108   : > { %4612 = vmatmul.mubr.msk.bf16.vlgmr.msra.gmra.mrb[0].mxu0 %vm1464_vm3, %v3726_v8 }
0x11db   : > { %v3776_v46 = vpop.f32.mrb[0].mxu0 }
0x11dc   : > { %3783 = vst.msk [vmem:[#allocation32] sm:$0x3] %vm3782_vm13, %v3776_v46  ;;  %v4613_v51 = vpop.f32.mrb[1].mxu0 }
0x11dd   : > { %v3779_v57 = vpop.f32.mrb[2].mxu0 }
0x11de   : > { %v4614_v21 = vpop.f32.mrb[3].mxu0 }
0x11df PF: > { %s7818_s7 = sld [smem:[#allocation48_spill]]  ;;  %s5960_s27 = smov [#allocation32]  }
0x11e0   : > { %s3793_s4 = sshll.u32 %s5960_s27, 4  ;;  %s3794_s4 = int_to_ptr.vmem [resolvable:$true] %s3793_s4 }
0x11e1   : > { %s5807_s25 = scalar_lea.vmem %s3794_s4, 32  ;;  %p5814_p7 = scmp.lt.s32.totalorder %s3794_s4, %s3794_s4 }
0x11e2   : > { %p5808_p12 = scmp.ne.s32.totalorder %s3794_s4, %s5807_s25  ;;  %p5815_p10 = scmp.lt.s32.totalorder %s5807_s25, %s5807_s25 }
0x11e4   : > { %p5816_p2 = por %p5815_p10, %p5814_p7 }
0x11e5   : > { %p4805_p11 = scmp.eq.s32.totalorder %s7818_s7, 1 }
0x11e7   : > { %p5809_p3 = pnand %p5808_p12, %p4805_p11 }
0x11e9   : > { %p5810_p0 = pneg %p5809_p3 }
0x11eb   : > { %p5817_p4 = pnand %p5816_p2, %p5810_p0 }
0x11ed   : > { %5820 = shalt.err (!%p5817_p4)
}
0x11ee   : > { %s7819_s2 = sld [smem:[#allocation76_spill]] }
0x11f4   : > { %s5821_s14 = scalar_lea.hbm %s7819_s2, 32 }
0x11f5   : > { %p5822_p5 = scmp.ne.s32.totalorder %s7819_s2, %s5821_s14  ;;  %p5827_p13 = scmp.lt.u32.totalorder %s5821_s14, %s7819_s2 }
0x11f7   : > { %p5823_p9 = pnand %p5822_p5, %p4805_p11 }
0x11f9   : > { %p5824_p6 = pneg %p5823_p9 }
0x11fb   : > { %p5829_p1 = pnand %p5827_p13, %p5824_p6 }
0x11fd   : > { %5832 = shalt.err (!%p5829_p1)
}
0x11fe   : > { %4708 = dma.vmem_to_hbm [thread:$0]  (%p4805_p11), %s3794_s4, 32, %s7819_s2, [#allocation5]  }
0x11ff   : > { %5894 = dma.done.wait (%p4805_p11), [#allocation5], 32  }
0x1200   : > { %5896 = vsyncadd (%p4805_p11), [#allocation5], 4294967264 }
0x1201 PF: > { %s7820_s3 = sld [smem:[#allocation47_spill]]  ;;  %s7821_s4 = sld [smem:[#allocation43_spill]] }
0x1202   : > { %s7822_s30 = sld [smem:[#allocation44_spill]]  ;;  %s7823_s24 = sld [smem:[#allocation52_spill]] }
0x1203   : > { %s7824_s25 = sld [smem:[#allocation46_spill]]  ;;  %s7825_s5 = sld [smem:[#allocation50_spill]] }
0x1207   : > { %s39_s1 = sadd.s32 1, %s7820_s3  }
0x1208   : > { %p36_p8 = scmp.ge.s32.totalorder %s39_s1, 4  }
0x120a   :  { %38 = sbr.rel (!%p36_p8) target bundleno = 33 (0x21), region = 323 }
0x1211   :  { %3806 = vsyncpa [#allocation4], 1 }
0x1212   :  { %3808 = vsyncpa [#allocation4 + $0x1], 1 }
0x1213   :  { %3809 = vsyncpa [#allocation7], 1 }
0x1214   :  { %3810 = vsyncpa [#allocation10], 1 }
0x1215   :  { %3811 = vsyncpa [#allocation13], 1 }
0x1216   :  { %3812 = vsyncpa [#allocation16], 1 }
0x1217   :  { %3813 = vsyncpa [#allocation5], 1 }
0x1218   :  { %3815 = vsyncpa [#allocation5 + $0x1], 1 }

</bundles_post_ra>
